<compile_context>
chip_gen: v6e
topology: v6e:2x2x1
jax: 0.10.0
libtpu: 0.0.40
codegen_flags: <defaults>
</compile_context>

<pallas_src>
import jax
import jax.numpy as jnp
from jax.experimental import pallas as pl
from jax.experimental.pallas import tpu as pltpu

SLICE_D = 10                    # spatial size hardcoded by the module
Z_DIM = 30
H_DIM = 200
C_IN = 4
C_MID = 8
HW = SLICE_D * SLICE_D          # 100
IN_FLAT = C_IN * HW             # 400
MID_FLAT = C_MID * HW           # 800  (== 8 * slice_d * slice_d)


# ----------------------------------------------------------------------------
# Trace-time weight preprocessing: fold the convs into dense matmul matrices
# acting on PyTorch (c, h, w)-flattened vectors.  Tiny one-off work on weights.
# ----------------------------------------------------------------------------
def conv3x3_to_dense(w):
    """Conv2d weight (Cout, Cin, 3, 3), stride 1, pad 1 -> (Cin*H*W, Cout*H*W)."""
    cout, cin, kh, kw = w.shape
    H = W = SLICE_D
    hi = jnp.arange(H)[:, None]
    ho = jnp.arange(H)[None, :]
    dh = hi - ho + 1                                    # (Hi, Ho) kernel row offset
    wi = jnp.arange(W)[:, None]
    wo = jnp.arange(W)[None, :]
    dw = wi - wo + 1                                    # (Wi, Wo) kernel col offset
    mask = ((dh >= 0) & (dh < kh))[:, :, None, None] & \
           ((dw >= 0) & (dw < kw))[None, None, :, :]    # (Hi, Ho, Wi, Wo)
    dh_c = jnp.clip(dh, 0, kh - 1)
    dw_c = jnp.clip(dw, 0, kw - 1)
    # g[co, ci, hi, ho, wi, wo] = w[co, ci, hi-ho+1, wi-wo+1]
    g = w[:, :, dh_c[:, :, None, None], dw_c[None, None, :, :]]
    g = jnp.where(mask, g, 0.0)
    g = jnp.transpose(g, (1, 2, 4, 0, 3, 5))            # (Cin, Hi, Wi, Cout, Ho, Wo)
    return g.reshape(cin * H * W, cout * H * W)


def convT3x3_to_dense(w_t):
    """ConvTranspose2d weight (Cin, Cout, 3, 3), stride 1, pad 1
    -> (Cin*H*W, Cout*H*W), via the flip-kernel / swap-in-out equivalence."""
    w_eq = jnp.flip(w_t, axis=(2, 3)).transpose(1, 0, 2, 3)   # (Cout, Cin, 3, 3)
    return conv3x3_to_dense(w_eq)


# ----------------------------------------------------------------------------
# Fused forward kernel: everything is a 2-D matmul over (batch_tile, features)
# ----------------------------------------------------------------------------
def _vae_kernel(x_ref, eps_ref,
                wc1_ref, bc1_ref,
                w1_ref, b1_ref,
                w21_ref, b21_ref,
                w22_ref, b22_ref,
                w3_ref, b3_ref,
                w4_ref, b4_ref,
                wd_ref, bd_ref,
                out_ref, mu_ref, logvar_ref):
    def mm(a, w_ref, b_ref):
        # Matmul inputs may be bf16 (v6e/v7x); accumulate in f32 on the MXU and
        # keep the elementwise epilogue (bias/ReLU/exp/reparam) in f32 (v5e-safe).
        return jnp.dot(a.astype(w_ref.dtype), w_ref[...],
                       preferred_element_type=jnp.float32) + b_ref[...]

    x = x_ref[...]                                            # (Bt, 400)
    hx = jnp.maximum(mm(x, wc1_ref, bc1_ref), 0.0)            # conv1 + ReLU -> (Bt, 800)
    h1 = jnp.maximum(mm(hx, w1_ref, b1_ref), 0.0)             # fc1 + ReLU   -> (Bt, 200)
    mu = mm(h1, w21_ref, b21_ref)                             # fc21         -> (Bt, 30)
    logvar = mm(h1, w22_ref, b22_ref)                         # fc22         -> (Bt, 30)
    z = eps_ref[...] * jnp.exp(0.5 * logvar) + mu             # reparameterize
    h3 = jnp.maximum(mm(z, w3_ref, b3_ref), 0.0)              # fc3 + ReLU   -> (Bt, 200)
    h4 = jnp.maximum(mm(h3, w4_ref, b4_ref), 0.0)             # fc4 + ReLU   -> (Bt, 800)
    out = mm(h4, wd_ref, bd_ref)                              # dconv1       -> (Bt, 400)

    out_ref[...] = out.astype(out_ref.dtype)
    mu_ref[...] = mu.astype(mu_ref.dtype)
    logvar_ref[...] = logvar.astype(logvar_ref.dtype)


# ----------------------------------------------------------------------------
# Wrapper: batch tiling + weight densification; only free reshapes on x / out.
# ----------------------------------------------------------------------------
def _round_up(n, m):
    return ((n + m - 1) // m) * m


def _pick_batch_tile(B):
    if B <= 8:
        return B
    # Two batch tiles -> v7x's 2 TensorCores each take one ("parallel" axis);
    # on 1-TC chips (v5e/v6e) the single extra grid step is ~0.35 us, negligible.
    return max(8, _round_up(-(-B // 2), 8))


def vae_forward(params, x, eps, *, use_bf16=False):
    B = x.shape[0]
    f32 = jnp.float32
    mm_dtype = jnp.bfloat16 if use_bf16 else f32

    # --- fold convs into dense matrices; biases broadcast per output channel ---
    wc1 = conv3x3_to_dense(params["w_conv1"].astype(f32)).astype(mm_dtype)    # (400, 800)
    bc1 = jnp.repeat(params["b_conv1"].astype(f32), HW).reshape(1, MID_FLAT)
    wd = convT3x3_to_dense(params["w_dconv1"].astype(f32)).astype(mm_dtype)   # (800, 400)
    bd = jnp.repeat(params["b_dconv1"].astype(f32), HW).reshape(1, IN_FLAT)

    w1 = params["w_fc1"].astype(mm_dtype)
    b1 = params["b_fc1"].astype(f32).reshape(1, -1)
    w21 = params["w_fc21"].astype(mm_dtype)
    b21 = params["b_fc21"].astype(f32).reshape(1, -1)
    w22 = params["w_fc22"].astype(mm_dtype)
    b22 = params["b_fc22"].astype(f32).reshape(1, -1)
    w3 = params["w_fc3"].astype(mm_dtype)
    b3 = params["b_fc3"].astype(f32).reshape(1, -1)
    w4 = params["w_fc4"].astype(mm_dtype)
    b4 = params["b_fc4"].astype(f32).reshape(1, -1)

    # --- activations: free reshape into (c, h, w)-flat rows, no transposes ---
    x_flat = x.reshape(B, IN_FLAT).astype(mm_dtype)
    eps = eps.astype(f32)

    bt = _pick_batch_tile(B)
    Bp = _round_up(B, bt)
    if Bp != B:
        x_flat = jnp.pad(x_flat, ((0, Bp - B), (0, 0)))
        eps = jnp.pad(eps, ((0, Bp - B), (0, 0)))
    grid = (Bp // bt,)

    def row_spec(n):
        return pl.BlockSpec((bt, n), lambda i: (i, 0))

    def full_spec(a):
        s = a.shape
        return pl.BlockSpec(s, lambda i: (0,) * len(s))

    weights = [wc1, bc1, w1, b1, w21, b21, w22, b22, w3, b3, w4, b4, wd, bd]

    out_flat, mu, logvar = pl.pallas_call(
        _vae_kernel,
        grid=grid,
        in_specs=[row_spec(IN_FLAT), row_spec(Z_DIM)] + [full_spec(a) for a in weights],
        out_specs=[row_spec(IN_FLAT), row_spec(Z_DIM), row_spec(Z_DIM)],
        out_shape=(
            jax.ShapeDtypeStruct((Bp, IN_FLAT), f32),
            jax.ShapeDtypeStruct((Bp, Z_DIM), f32),
            jax.ShapeDtypeStruct((Bp, Z_DIM), f32),
        ),
        compiler_params=pltpu.CompilerParams(dimension_semantics=("parallel",)),
    )(x_flat, eps, *weights)

    out = out_flat[:B].reshape(B, C_IN, SLICE_D, SLICE_D)     # free reshape to NCHW
    return out, mu[:B], logvar[:B]


# ----------------------------------------------------------------------------
# Deterministic parameter init (PyTorch-style uniform(-1/sqrt(fan_in), +))
# ----------------------------------------------------------------------------
def init_params(key):
    ks = jax.random.split(key, 14)

    def u(k, shape, fan_in):
        bound = 1.0 / (fan_in ** 0.5)
        return jax.random.uniform(k, shape, jnp.float32, -bound, bound)

    return {
        "w_conv1": u(ks[0], (C_MID, C_IN, 3, 3), C_IN * 9),
        "b_conv1": u(ks[1], (C_MID,), C_IN * 9),
        "w_fc1":   u(ks[2], (MID_FLAT, H_DIM), MID_FLAT),
        "b_fc1":   u(ks[3], (H_DIM,), MID_FLAT),
        "w_fc21":  u(ks[4], (H_DIM, Z_DIM), H_DIM),
        "b_fc21":  u(ks[5], (Z_DIM,), H_DIM),
        "w_fc22":  u(ks[6], (H_DIM, Z_DIM), H_DIM),
        "b_fc22":  u(ks[7], (Z_DIM,), H_DIM),
        "w_fc3":   u(ks[8], (Z_DIM, H_DIM), Z_DIM),
        "b_fc3":   u(ks[9], (H_DIM,), Z_DIM),
        "w_fc4":   u(ks[10], (H_DIM, MID_FLAT), H_DIM),
        "b_fc4":   u(ks[11], (MID_FLAT,), H_DIM),
        "w_dconv1": u(ks[12], (C_MID, C_IN, 3, 3), C_IN * 9),  # ConvT weight: (Cin, Cout, kH, kW)
        "b_dconv1": u(ks[13], (C_IN,), C_IN * 9),
    }


if __name__ == "__main__":
    key = jax.random.PRNGKey(0)
    kp, kx, ke = jax.random.split(key, 3)
    params = init_params(kp)

    B = 8  # small batch for the synthetic test (module uses 100)
    x = jax.random.normal(kx, (B, C_IN, SLICE_D, SLICE_D), jnp.float32)
    eps = jax.random.normal(ke, (B, Z_DIM), jnp.float32)  # reparameterization noise

    fwd = jax.jit(vae_forward, static_argnames=("use_bf16",))
    out, mu, logvar = fwd(params, x, eps)
    jax.block_until_ready((out, mu, logvar))

    assert out.shape == (B, C_IN, SLICE_D, SLICE_D)
    assert mu.shape == (B, Z_DIM) and logvar.shape == (B, Z_DIM)
    assert bool(jnp.all(jnp.isfinite(out)))
    print("KERNEL_OK")
</pallas_src>

<mosaic_0001>
module attributes {stable_mosaic.version = 11 : i64} {
  func.func @_vae_kernel(%arg0: i32, %arg1: memref<8x400xf32, #tpu.memory_space<vmem>>, %arg2: memref<8x30xf32, #tpu.memory_space<vmem>>, %arg3: memref<400x800xf32, #tpu.memory_space<vmem>>, %arg4: memref<1x800xf32, #tpu.memory_space<vmem>>, %arg5: memref<800x200xf32, #tpu.memory_space<vmem>>, %arg6: memref<1x200xf32, #tpu.memory_space<vmem>>, %arg7: memref<200x30xf32, #tpu.memory_space<vmem>>, %arg8: memref<1x30xf32, #tpu.memory_space<vmem>>, %arg9: memref<200x30xf32, #tpu.memory_space<vmem>>, %arg10: memref<1x30xf32, #tpu.memory_space<vmem>>, %arg11: memref<30x200xf32, #tpu.memory_space<vmem>>, %arg12: memref<1x200xf32, #tpu.memory_space<vmem>>, %arg13: memref<200x800xf32, #tpu.memory_space<vmem>>, %arg14: memref<1x800xf32, #tpu.memory_space<vmem>>, %arg15: memref<800x400xf32, #tpu.memory_space<vmem>>, %arg16: memref<1x400xf32, #tpu.memory_space<vmem>>, %arg17: memref<8x400xf32, #tpu.memory_space<vmem>>, %arg18: memref<8x30xf32, #tpu.memory_space<vmem>>, %arg19: memref<8x30xf32, #tpu.memory_space<vmem>>) attributes {dimension_semantics = [#tpu.dimension_semantics<parallel>], iteration_bounds = array<i64: 1>, scalar_prefetch = 0 : i64, scratch_operands = 0 : i64, tpu.core_type = #tpu.core_type<tc>, window_params = [{transform_indices = @transform_0, window_bounds = array<i64: 8, 400>}, {transform_indices = @transform_1, window_bounds = array<i64: 8, 30>}, {pipeline_mode = #tpu.pipeline_mode<synchronous>, transform_indices = @transform_2, window_bounds = array<i64: 400, 800>}, {pipeline_mode = #tpu.pipeline_mode<synchronous>, transform_indices = @transform_3, window_bounds = array<i64: 1, 800>}, {pipeline_mode = #tpu.pipeline_mode<synchronous>, transform_indices = @transform_4, window_bounds = array<i64: 800, 200>}, {pipeline_mode = #tpu.pipeline_mode<synchronous>, transform_indices = @transform_5, window_bounds = array<i64: 1, 200>}, {pipeline_mode = #tpu.pipeline_mode<synchronous>, transform_indices = @transform_6, window_bounds = array<i64: 200, 30>}, {pipeline_mode = #tpu.pipeline_mode<synchronous>, transform_indices = @transform_7, window_bounds = array<i64: 1, 30>}, {pipeline_mode = #tpu.pipeline_mode<synchronous>, transform_indices = @transform_8, window_bounds = array<i64: 200, 30>}, {pipeline_mode = #tpu.pipeline_mode<synchronous>, transform_indices = @transform_9, window_bounds = array<i64: 1, 30>}, {pipeline_mode = #tpu.pipeline_mode<synchronous>, transform_indices = @transform_10, window_bounds = array<i64: 30, 200>}, {pipeline_mode = #tpu.pipeline_mode<synchronous>, transform_indices = @transform_11, window_bounds = array<i64: 1, 200>}, {pipeline_mode = #tpu.pipeline_mode<synchronous>, transform_indices = @transform_12, window_bounds = array<i64: 200, 800>}, {pipeline_mode = #tpu.pipeline_mode<synchronous>, transform_indices = @transform_13, window_bounds = array<i64: 1, 800>}, {pipeline_mode = #tpu.pipeline_mode<synchronous>, transform_indices = @transform_14, window_bounds = array<i64: 800, 400>}, {pipeline_mode = #tpu.pipeline_mode<synchronous>, transform_indices = @transform_15, window_bounds = array<i64: 1, 400>}, {transform_indices = @transform_16, window_bounds = array<i64: 8, 400>}, {transform_indices = @transform_17, window_bounds = array<i64: 8, 30>}, {transform_indices = @transform_18, window_bounds = array<i64: 8, 30>}]} {
    %c0 = arith.constant 0 : index
    %c0_0 = arith.constant 0 : index
    %0 = vector.load %arg1[%c0, %c0_0] : memref<8x400xf32, #tpu.memory_space<vmem>>, vector<8x400xf32>
    %c0_1 = arith.constant 0 : index
    %c0_2 = arith.constant 0 : index
    %1 = vector.load %arg3[%c0_1, %c0_2] : memref<400x800xf32, #tpu.memory_space<vmem>>, vector<400x800xf32>
    %cst = arith.constant dense<0.000000e+00> : vector<8x800xf32>
    %2 = tpu.matmul %0, %1, %cst {dimension_numbers = #tpu.dot_dimension_numbers<[1], [0], [0], [1], [0, 0, 1, 1], [], []>} : vector<8x400xf32>, vector<400x800xf32>, vector<8x800xf32> -> vector<8x800xf32>
    %c0_3 = arith.constant 0 : index
    %c0_4 = arith.constant 0 : index
    %3 = vector.load %arg4[%c0_3, %c0_4] : memref<1x800xf32, #tpu.memory_space<vmem>>, vector<1x800xf32>
    %4 = vector.broadcast %3 : vector<1x800xf32> to vector<8x800xf32>
    %5 = arith.addf %2, %4 : vector<8x800xf32>
    %cst_5 = arith.constant 0.000000e+00 : f32
    %6 = vector.broadcast %cst_5 : f32 to vector<8x800xf32>
    %7 = arith.maximumf %5, %6 : vector<8x800xf32>
    %c0_6 = arith.constant 0 : index
    %c0_7 = arith.constant 0 : index
    %8 = vector.load %arg5[%c0_6, %c0_7] : memref<800x200xf32, #tpu.memory_space<vmem>>, vector<800x200xf32>
    %cst_8 = arith.constant dense<0.000000e+00> : vector<8x200xf32>
    %9 = tpu.matmul %7, %8, %cst_8 {dimension_numbers = #tpu.dot_dimension_numbers<[1], [0], [0], [1], [0, 0, 1, 1], [], []>} : vector<8x800xf32>, vector<800x200xf32>, vector<8x200xf32> -> vector<8x200xf32>
    %c0_9 = arith.constant 0 : index
    %c0_10 = arith.constant 0 : index
    %10 = vector.load %arg6[%c0_9, %c0_10] : memref<1x200xf32, #tpu.memory_space<vmem>>, vector<1x200xf32>
    %11 = vector.broadcast %10 : vector<1x200xf32> to vector<8x200xf32>
    %12 = arith.addf %9, %11 : vector<8x200xf32>
    %cst_11 = arith.constant 0.000000e+00 : f32
    %13 = vector.broadcast %cst_11 : f32 to vector<8x200xf32>
    %14 = arith.maximumf %12, %13 : vector<8x200xf32>
    %c0_12 = arith.constant 0 : index
    %c0_13 = arith.constant 0 : index
    %15 = vector.load %arg7[%c0_12, %c0_13] : memref<200x30xf32, #tpu.memory_space<vmem>>, vector<200x30xf32>
    %cst_14 = arith.constant dense<0.000000e+00> : vector<8x30xf32>
    %16 = tpu.matmul %14, %15, %cst_14 {dimension_numbers = #tpu.dot_dimension_numbers<[1], [0], [0], [1], [0, 0, 1, 1], [], []>} : vector<8x200xf32>, vector<200x30xf32>, vector<8x30xf32> -> vector<8x30xf32>
    %c0_15 = arith.constant 0 : index
    %c0_16 = arith.constant 0 : index
    %17 = vector.load %arg8[%c0_15, %c0_16] : memref<1x30xf32, #tpu.memory_space<vmem>>, vector<1x30xf32>
    %18 = vector.broadcast %17 : vector<1x30xf32> to vector<8x30xf32>
    %19 = arith.addf %16, %18 : vector<8x30xf32>
    %c0_17 = arith.constant 0 : index
    %c0_18 = arith.constant 0 : index
    %20 = vector.load %arg9[%c0_17, %c0_18] : memref<200x30xf32, #tpu.memory_space<vmem>>, vector<200x30xf32>
    %cst_19 = arith.constant dense<0.000000e+00> : vector<8x30xf32>
    %21 = tpu.matmul %14, %20, %cst_19 {dimension_numbers = #tpu.dot_dimension_numbers<[1], [0], [0], [1], [0, 0, 1, 1], [], []>} : vector<8x200xf32>, vector<200x30xf32>, vector<8x30xf32> -> vector<8x30xf32>
    %c0_20 = arith.constant 0 : index
    %c0_21 = arith.constant 0 : index
    %22 = vector.load %arg10[%c0_20, %c0_21] : memref<1x30xf32, #tpu.memory_space<vmem>>, vector<1x30xf32>
    %23 = vector.broadcast %22 : vector<1x30xf32> to vector<8x30xf32>
    %24 = arith.addf %21, %23 : vector<8x30xf32>
    %c0_22 = arith.constant 0 : index
    %c0_23 = arith.constant 0 : index
    %25 = vector.load %arg2[%c0_22, %c0_23] : memref<8x30xf32, #tpu.memory_space<vmem>>, vector<8x30xf32>
    %cst_24 = arith.constant 5.000000e-01 : f32
    %26 = vector.broadcast %cst_24 : f32 to vector<8x30xf32>
    %27 = arith.mulf %26, %24 : vector<8x30xf32>
    %28 = math.exp %27 : vector<8x30xf32>
    %29 = arith.mulf %25, %28 : vector<8x30xf32>
    %30 = arith.addf %29, %19 : vector<8x30xf32>
    %c0_25 = arith.constant 0 : index
    %c0_26 = arith.constant 0 : index
    %31 = vector.load %arg11[%c0_25, %c0_26] : memref<30x200xf32, #tpu.memory_space<vmem>>, vector<30x200xf32>
    %cst_27 = arith.constant dense<0.000000e+00> : vector<8x200xf32>
    %32 = tpu.matmul %30, %31, %cst_27 {dimension_numbers = #tpu.dot_dimension_numbers<[1], [0], [0], [1], [0, 0, 1, 1], [], []>} : vector<8x30xf32>, vector<30x200xf32>, vector<8x200xf32> -> vector<8x200xf32>
    %c0_28 = arith.constant 0 : index
    %c0_29 = arith.constant 0 : index
    %33 = vector.load %arg12[%c0_28, %c0_29] : memref<1x200xf32, #tpu.memory_space<vmem>>, vector<1x200xf32>
    %34 = vector.broadcast %33 : vector<1x200xf32> to vector<8x200xf32>
    %35 = arith.addf %32, %34 : vector<8x200xf32>
    %cst_30 = arith.constant 0.000000e+00 : f32
    %36 = vector.broadcast %cst_30 : f32 to vector<8x200xf32>
    %37 = arith.maximumf %35, %36 : vector<8x200xf32>
    %c0_31 = arith.constant 0 : index
    %c0_32 = arith.constant 0 : index
    %38 = vector.load %arg13[%c0_31, %c0_32] : memref<200x800xf32, #tpu.memory_space<vmem>>, vector<200x800xf32>
    %cst_33 = arith.constant dense<0.000000e+00> : vector<8x800xf32>
    %39 = tpu.matmul %37, %38, %cst_33 {dimension_numbers = #tpu.dot_dimension_numbers<[1], [0], [0], [1], [0, 0, 1, 1], [], []>} : vector<8x200xf32>, vector<200x800xf32>, vector<8x800xf32> -> vector<8x800xf32>
    %c0_34 = arith.constant 0 : index
    %c0_35 = arith.constant 0 : index
    %40 = vector.load %arg14[%c0_34, %c0_35] : memref<1x800xf32, #tpu.memory_space<vmem>>, vector<1x800xf32>
    %41 = vector.broadcast %40 : vector<1x800xf32> to vector<8x800xf32>
    %42 = arith.addf %39, %41 : vector<8x800xf32>
    %cst_36 = arith.constant 0.000000e+00 : f32
    %43 = vector.broadcast %cst_36 : f32 to vector<8x800xf32>
    %44 = arith.maximumf %42, %43 : vector<8x800xf32>
    %c0_37 = arith.constant 0 : index
    %c0_38 = arith.constant 0 : index
    %45 = vector.load %arg15[%c0_37, %c0_38] : memref<800x400xf32, #tpu.memory_space<vmem>>, vector<800x400xf32>
    %cst_39 = arith.constant dense<0.000000e+00> : vector<8x400xf32>
    %46 = tpu.matmul %44, %45, %cst_39 {dimension_numbers = #tpu.dot_dimension_numbers<[1], [0], [0], [1], [0, 0, 1, 1], [], []>} : vector<8x800xf32>, vector<800x400xf32>, vector<8x400xf32> -> vector<8x400xf32>
    %c0_40 = arith.constant 0 : index
    %c0_41 = arith.constant 0 : index
    %47 = vector.load %arg16[%c0_40, %c0_41] : memref<1x400xf32, #tpu.memory_space<vmem>>, vector<1x400xf32>
    %48 = vector.broadcast %47 : vector<1x400xf32> to vector<8x400xf32>
    %49 = arith.addf %46, %48 : vector<8x400xf32>
    %c0_42 = arith.constant 0 : index
    %c0_43 = arith.constant 0 : index
    %50 = vector.load %arg17[%c0_42, %c0_43] : memref<8x400xf32, #tpu.memory_space<vmem>>, vector<8x400xf32>
    tpu.vector_store %arg17[%c0_42, %c0_43], %49 {strides = array<i32>} : memref<8x400xf32, #tpu.memory_space<vmem>>, vector<8x400xf32>,
    %c0_44 = arith.constant 0 : index
    %c0_45 = arith.constant 0 : index
    %51 = vector.load %arg18[%c0_44, %c0_45] : memref<8x30xf32, #tpu.memory_space<vmem>>, vector<8x30xf32>
    tpu.vector_store %arg18[%c0_44, %c0_45], %19 {strides = array<i32>} : memref<8x30xf32, #tpu.memory_space<vmem>>, vector<8x30xf32>,
    %c0_46 = arith.constant 0 : index
    %c0_47 = arith.constant 0 : index
    %52 = vector.load %arg19[%c0_46, %c0_47] : memref<8x30xf32, #tpu.memory_space<vmem>>, vector<8x30xf32>
    tpu.vector_store %arg19[%c0_46, %c0_47], %24 {strides = array<i32>} : memref<8x30xf32, #tpu.memory_space<vmem>>, vector<8x30xf32>,
    return
  }
  func.func @transform_0(%arg0: i32) -> (i32, i32) {
    %c0_i32 = arith.constant 0 : i32
    %c0_i32_0 = arith.constant 0 : i32
    return %arg0, %c0_i32 : i32, i32
  }
  func.func @transform_1(%arg0: i32) -> (i32, i32) {
    %c0_i32 = arith.constant 0 : i32
    %c0_i32_0 = arith.constant 0 : i32
    return %arg0, %c0_i32 : i32, i32
  }
  func.func @transform_2(%arg0: i32) -> (i32, i32) {
    %c0_i32 = arith.constant 0 : i32
    %c0_i32_0 = arith.constant 0 : i32
    %c0_i32_1 = arith.constant 0 : i32
    return %c0_i32, %c0_i32_0 : i32, i32
  }
  func.func @transform_3(%arg0: i32) -> (i32, i32) {
    %c0_i32 = arith.constant 0 : i32
    %c0_i32_0 = arith.constant 0 : i32
    %c0_i32_1 = arith.constant 0 : i32
    return %c0_i32, %c0_i32_0 : i32, i32
  }
  func.func @transform_4(%arg0: i32) -> (i32, i32) {
    %c0_i32 = arith.constant 0 : i32
    %c0_i32_0 = arith.constant 0 : i32
    %c0_i32_1 = arith.constant 0 : i32
    return %c0_i32, %c0_i32_0 : i32, i32
  }
  func.func @transform_5(%arg0: i32) -> (i32, i32) {
    %c0_i32 = arith.constant 0 : i32
    %c0_i32_0 = arith.constant 0 : i32
    %c0_i32_1 = arith.constant 0 : i32
    return %c0_i32, %c0_i32_0 : i32, i32
  }
  func.func @transform_6(%arg0: i32) -> (i32, i32) {
    %c0_i32 = arith.constant 0 : i32
    %c0_i32_0 = arith.constant 0 : i32
    %c0_i32_1 = arith.constant 0 : i32
    return %c0_i32, %c0_i32_0 : i32, i32
  }
  func.func @transform_7(%arg0: i32) -> (i32, i32) {
    %c0_i32 = arith.constant 0 : i32
    %c0_i32_0 = arith.constant 0 : i32
    %c0_i32_1 = arith.constant 0 : i32
    return %c0_i32, %c0_i32_0 : i32, i32
  }
  func.func @transform_8(%arg0: i32) -> (i32, i32) {
    %c0_i32 = arith.constant 0 : i32
    %c0_i32_0 = arith.constant 0 : i32
    %c0_i32_1 = arith.constant 0 : i32
    return %c0_i32, %c0_i32_0 : i32, i32
  }
  func.func @transform_9(%arg0: i32) -> (i32, i32) {
    %c0_i32 = arith.constant 0 : i32
    %c0_i32_0 = arith.constant 0 : i32
    %c0_i32_1 = arith.constant 0 : i32
    return %c0_i32, %c0_i32_0 : i32, i32
  }
  func.func @transform_10(%arg0: i32) -> (i32, i32) {
    %c0_i32 = arith.constant 0 : i32
    %c0_i32_0 = arith.constant 0 : i32
    %c0_i32_1 = arith.constant 0 : i32
    return %c0_i32, %c0_i32_0 : i32, i32
  }
  func.func @transform_11(%arg0: i32) -> (i32, i32) {
    %c0_i32 = arith.constant 0 : i32
    %c0_i32_0 = arith.constant 0 : i32
    %c0_i32_1 = arith.constant 0 : i32
    return %c0_i32, %c0_i32_0 : i32, i32
  }
  func.func @transform_12(%arg0: i32) -> (i32, i32) {
    %c0_i32 = arith.constant 0 : i32
    %c0_i32_0 = arith.constant 0 : i32
    %c0_i32_1 = arith.constant 0 : i32
    return %c0_i32, %c0_i32_0 : i32, i32
  }
  func.func @transform_13(%arg0: i32) -> (i32, i32) {
    %c0_i32 = arith.constant 0 : i32
    %c0_i32_0 = arith.constant 0 : i32
    %c0_i32_1 = arith.constant 0 : i32
    return %c0_i32, %c0_i32_0 : i32, i32
  }
  func.func @transform_14(%arg0: i32) -> (i32, i32) {
    %c0_i32 = arith.constant 0 : i32
    %c0_i32_0 = arith.constant 0 : i32
    %c0_i32_1 = arith.constant 0 : i32
    return %c0_i32, %c0_i32_0 : i32, i32
  }
  func.func @transform_15(%arg0: i32) -> (i32, i32) {
    %c0_i32 = arith.constant 0 : i32
    %c0_i32_0 = arith.constant 0 : i32
    %c0_i32_1 = arith.constant 0 : i32
    return %c0_i32, %c0_i32_0 : i32, i32
  }
  func.func @transform_16(%arg0: i32) -> (i32, i32) {
    %c0_i32 = arith.constant 0 : i32
    %c0_i32_0 = arith.constant 0 : i32
    return %arg0, %c0_i32 : i32, i32
  }
  func.func @transform_17(%arg0: i32) -> (i32, i32) {
    %c0_i32 = arith.constant 0 : i32
    %c0_i32_0 = arith.constant 0 : i32
    return %arg0, %c0_i32 : i32, i32
  }
  func.func @transform_18(%arg0: i32) -> (i32, i32) {
    %c0_i32 = arith.constant 0 : i32
    %c0_i32_0 = arith.constant 0 : i32
    return %arg0, %c0_i32 : i32, i32
  }
}

</mosaic_0001>

<bundles_post_ra>
// kernel: vae_forward.1
= control target key start
LH: loop header
LB: loop body
LE: loop exit
PB: predicated region body
PF: predicated region fallthrough
CT: control target
= control target key end

     0   :  { %s7446_s0 = inlined_call_operand.vmem [shape: f32[8,400], index: 0, kind: input, shape index: {}]   ;;  %s7447_s1 = inlined_call_operand.vmem [shape: f32[8,30], index: 1, kind: input, shape index: {}]   ;;  %s7448_s2 = inlined_call_operand.vmem [shape: f32[400,800], index: 2, kind: input, shape index: {}]   ;;  %s7449_s3 = inlined_call_operand.vmem [shape: f32[1,800], index: 3, kind: input, shape index: {}]   ;;  %s7450_s4 = inlined_call_operand.vmem [shape: f32[800,200], index: 4, kind: input, shape index: {}]   ;;  %s7451_s5 = inlined_call_operand.vmem [shape: f32[1,200], index: 5, kind: input, shape index: {}]   ;;  %s7452_s6 = inlined_call_operand.vmem [shape: f32[200,30], index: 6, kind: input, shape index: {}]   ;;  %s7453_s7 = inlined_call_operand.vmem [shape: f32[1,30], index: 7, kind: input, shape index: {}]   ;;  %s7454_s8 = inlined_call_operand.vmem [shape: f32[200,30], index: 8, kind: input, shape index: {}]   ;;  %s7455_s9 = inlined_call_operand.vmem [shape: f32[1,30], index: 9, kind: input, shape index: {}]   ;;  %s7456_s10 = inlined_call_operand.vmem [shape: f32[30,200], index: 10, kind: input, shape index: {}]   ;;  %s7457_s11 = inlined_call_operand.vmem [shape: f32[1,200], index: 11, kind: input, shape index: {}]   ;;  %s7458_s12 = inlined_call_operand.vmem [shape: f32[200,800], index: 12, kind: input, shape index: {}]   ;;  %s7459_s13 = inlined_call_operand.vmem [shape: f32[1,800], index: 13, kind: input, shape index: {}]   ;;  %s7460_s14 = inlined_call_operand.vmem [shape: f32[800,400], index: 14, kind: input, shape index: {}]   ;;  %s7461_s15 = inlined_call_operand.vmem [shape: f32[1,400], index: 15, kind: input, shape index: {}]   ;;  %s7462_s16 = inlined_call_operand.vmem [shape: f32[8,400], index: 16, kind: output, shape index: {0}]   ;;  %s7463_s17 = inlined_call_operand.hbm [shape: f32[8,30], index: 17, kind: output, shape index: {1}]   ;;  %s7464_s18 = inlined_call_operand.hbm [shape: f32[8,30], index: 18, kind: output, shape index: {2}]  }
   0x1   :  { %7467 = sst [smem:[#allocation8_spill]] %s7446_s0 }
   0x2   :  { %7468 = sst [smem:[#allocation9_spill]] %s7447_s1 }
   0x3   :  { %7469 = sst [smem:[#allocation10_spill]] %s7448_s2 }
   0x4   :  { %24 = vsyncpa [#allocation3], 0  ;;  %s7470_s29 = sld [smem:[#allocation10_spill]]  ;;  %vm449_vm0 = vcmask 130048  }
   0x5   :  { %s7471_s22 = sld [smem:[#allocation8_spill]] }
   0xa   :  { %v168_v0 = vld [vmem:[%s7470_s29 + $0x350] sm:$0xff]  ;;  %v167_v2 = vld [vmem:[%s7470_s29 + $0x348] sm:$0xff]  ;;  %v161_v4 = vld [vmem:[%s7470_s29 + $0x318] sm:$0xff] }
   0xb   :  { %v392_v1 = vld [vmem:[%s7470_s29 + $0xa50] sm:$0xff]  ;;  %453 = vmatprep.subr.mxu0 %v168_v0  ;;  %v391_v3 = vld [vmem:[%s7470_s29 + $0xa48] sm:$0xff]  ;;  %v385_v5 = vld [vmem:[%s7470_s29 + $0xa18] sm:$0xff] }
   0xc   :  { %524 = vmatprep.subr.mxu1 %v392_v1  ;;  %454 = vmatpush1.msra.mxu0 %v167_v2  ;;  %v160_v6 = vld [vmem:[%s7470_s29 + $0x310] sm:$0xff]  ;;  %v154_v8 = vld [vmem:[%s7470_s29 + $0x2e0] sm:$0xff]  ;;  %v153_v10 = vld [vmem:[%s7470_s29 + $0x2d8] sm:$0xff] }
   0xd   :  { %525 = vmatpush1.msra.mxu1 %v391_v3  ;;  %v384_v7 = vld [vmem:[%s7470_s29 + $0xa10] sm:$0xff]  ;;  %455 = vmatprep.subr.mxu0 %v161_v4  ;;  %v378_v9 = vld [vmem:[%s7470_s29 + $0x9e0] sm:$0xff]  ;;  %v377_v11 = vld [vmem:[%s7470_s29 + $0x9d8] sm:$0xff] }
   0xe   :  { %526 = vmatprep.subr.mxu1 %v385_v5  ;;  %456 = vmatpush1.msra.mxu0 %v160_v6  ;;  %v147_v12 = vld [vmem:[%s7470_s29 + $0x2a8] sm:$0xff]  ;;  %v146_v14 = vld [vmem:[%s7470_s29 + $0x2a0] sm:$0xff]  ;;  %v140_v16 = vld [vmem:[%s7470_s29 + $0x270] sm:$0xff] }
   0xf   :  { %527 = vmatpush1.msra.mxu1 %v384_v7  ;;  %v371_v13 = vld [vmem:[%s7470_s29 + $0x9a8] sm:$0xff]  ;;  %457 = vmatprep.subr.mxu0 %v154_v8  ;;  %v370_v15 = vld [vmem:[%s7470_s29 + $0x9a0] sm:$0xff]  ;;  %v364_v17 = vld [vmem:[%s7470_s29 + $0x970] sm:$0xff] }
  0x10   :  { %528 = vmatprep.subr.mxu1 %v378_v9  ;;  %458 = vmatpush1.msra.mxu0 %v153_v10  ;;  %v139_v18 = vld [vmem:[%s7470_s29 + $0x268] sm:$0xff]  ;;  %v133_v20 = vld [vmem:[%s7470_s29 + $0x238] sm:$0xff]  ;;  %v132_v22 = vld [vmem:[%s7470_s29 + $0x230] sm:$0xff] }
  0x11   :  { %529 = vmatpush1.msra.mxu1 %v377_v11  ;;  %459 = vmatprep.subr.mxu0 %v147_v12  ;;  %v363_v19 = vld [vmem:[%s7470_s29 + $0x968] sm:$0xff]  ;;  %v357_v21 = vld [vmem:[%s7470_s29 + $0x938] sm:$0xff]  ;;  %v356_v23 = vld [vmem:[%s7470_s29 + $0x930] sm:$0xff] }
  0x12   :  { %530 = vmatprep.subr.mxu1 %v371_v13  ;;  %460 = vmatpush1.msra.mxu0 %v146_v14  ;;  %v126_v24 = vld [vmem:[%s7470_s29 + $0x200] sm:$0xff]  ;;  %v125_v26 = vld [vmem:[%s7470_s29 + $0x1f8] sm:$0xff]  ;;  %v119_v28 = vld [vmem:[%s7470_s29 + $0x1c8] sm:$0xff] }
  0x13   :  { %531 = vmatpush1.msra.mxu1 %v370_v15  ;;  %461 = vmatprep.subr.mxu0 %v140_v16  ;;  %v350_v25 = vld [vmem:[%s7470_s29 + $0x900] sm:$0xff]  ;;  %v349_v27 = vld [vmem:[%s7470_s29 + $0x8f8] sm:$0xff]  ;;  %v343_v29 = vld [vmem:[%s7470_s29 + $0x8c8] sm:$0xff] }
  0x14   :  { %532 = vmatprep.subr.mxu1 %v364_v17  ;;  %462 = vmatpush1.msra.mxu0 %v139_v18  ;;  %v118_v30 = vld [vmem:[%s7470_s29 + $0x1c0] sm:$0xff]  ;;  %v112_v32 = vld [vmem:[%s7470_s29 + $0x190] sm:$0xff]  ;;  %v111_v34 = vld [vmem:[%s7470_s29 + $0x188] sm:$0xff] }
  0x15   :  { %533 = vmatpush1.msra.mxu1 %v363_v19  ;;  %463 = vmatprep.subr.mxu0 %v133_v20  ;;  %v342_v31 = vld [vmem:[%s7470_s29 + $0x8c0] sm:$0xff]  ;;  %v336_v33 = vld [vmem:[%s7470_s29 + $0x890] sm:$0xff]  ;;  %v335_v35 = vld [vmem:[%s7470_s29 + $0x888] sm:$0xff] }
  0x16   :  { %534 = vmatprep.subr.mxu1 %v357_v21  ;;  %464 = vmatpush1.msra.mxu0 %v132_v22  ;;  %v105_v36 = vld [vmem:[%s7470_s29 + $0x158] sm:$0xff]  ;;  %v104_v38 = vld [vmem:[%s7470_s29 + $0x150] sm:$0xff]  ;;  %v98_v40 = vld [vmem:[%s7470_s29 + $0x120] sm:$0xff] }
  0x17   :  { %535 = vmatpush1.msra.mxu1 %v356_v23  ;;  %465 = vmatprep.subr.mxu0 %v126_v24  ;;  %v329_v37 = vld [vmem:[%s7470_s29 + $0x858] sm:$0xff]  ;;  %v328_v39 = vld [vmem:[%s7470_s29 + $0x850] sm:$0xff]  ;;  %v322_v41 = vld [vmem:[%s7470_s29 + $0x820] sm:$0xff] }
  0x18   :  { %536 = vmatprep.subr.mxu1 %v350_v25  ;;  %466 = vmatpush1.msra.mxu0 %v125_v26  ;;  %v97_v42 = vld [vmem:[%s7470_s29 + $0x118] sm:$0xff]  ;;  %v91_v44 = vld [vmem:[%s7470_s29 + $0xe8] sm:$0xff]  ;;  %v90_v46 = vld [vmem:[%s7470_s29 + $0xe0] sm:$0xff] }
  0x19   :  { %537 = vmatpush1.msra.mxu1 %v349_v27  ;;  %467 = vmatprep.subr.mxu0 %v119_v28  ;;  %v321_v43 = vld [vmem:[%s7470_s29 + $0x818] sm:$0xff]  ;;  %v315_v45 = vld [vmem:[%s7470_s29 + $0x7e8] sm:$0xff]  ;;  %v314_v47 = vld [vmem:[%s7470_s29 + $0x7e0] sm:$0xff] }
  0x1a   :  { %538 = vmatprep.subr.mxu1 %v343_v29  ;;  %468 = vmatpush1.msra.mxu0 %v118_v30  ;;  %v84_v48 = vld [vmem:[%s7470_s29 + $0xb0] sm:$0xff]  ;;  %v83_v50 = vld [vmem:[%s7470_s29 + $0xa8] sm:$0xff]  ;;  %v77_v52 = vld [vmem:[%s7470_s29 + $0x78] sm:$0xff] }
  0x1b   :  { %539 = vmatpush1.msra.mxu1 %v342_v31  ;;  %469 = vmatprep.subr.mxu0 %v112_v32  ;;  %v308_v49 = vld [vmem:[%s7470_s29 + $0x7b0] sm:$0xff]  ;;  %v307_v51 = vld [vmem:[%s7470_s29 + $0x7a8] sm:$0xff]  ;;  %v301_v53 = vld [vmem:[%s7470_s29 + $0x778] sm:$0xff] }
  0x1c   :  { %540 = vmatprep.subr.mxu1 %v336_v33  ;;  %470 = vmatpush1.msra.mxu0 %v111_v34  ;;  %v76_v54 = vld [vmem:[%s7470_s29 + $0x70] sm:$0xff]  ;;  %v70_v56 = vld [vmem:[%s7470_s29 + $0x40] sm:$0xff]  ;;  %v69_v58 = vld [vmem:[%s7470_s29 + $0x38] sm:$0xff] }
  0x1d   :  { %541 = vmatpush1.msra.mxu1 %v335_v35  ;;  %471 = vmatprep.subr.mxu0 %v105_v36  ;;  %v300_v55 = vld [vmem:[%s7470_s29 + $0x770] sm:$0xff]  ;;  %v294_v57 = vld [vmem:[%s7470_s29 + $0x740] sm:$0xff]  ;;  %v293_v59 = vld [vmem:[%s7470_s29 + $0x738] sm:$0xff] }
  0x1e   :  { %542 = vmatprep.subr.mxu1 %v329_v37  ;;  %472 = vmatpush1.msra.mxu0 %v104_v38  ;;  %v63_v60 = vld [vmem:[%s7470_s29 + $0x8] sm:$0xff]  ;;  %v62_v62 = vld [vmem:[%s7470_s29] sm:$0xff]  ;;  %v280_v0 = vld [vmem:[%s7470_s29 + $0x6d0] sm:$0xff] }
  0x1f   :  { %543 = vmatpush1.msra.mxu1 %v328_v39  ;;  %473 = vmatprep.subr.mxu0 %v98_v40  ;;  %v287_v61 = vld [vmem:[%s7470_s29 + $0x708] sm:$0xff]  ;;  %v286_v63 = vld [vmem:[%s7470_s29 + $0x700] sm:$0xff]  ;;  %v405_v3 = vld [vmem:[%s7470_s29 + $0xab8] sm:$0xff] }
  0x20   :  { %544 = vmatprep.subr.mxu1 %v322_v41  ;;  %474 = vmatpush1.msra.mxu0 %v97_v42  ;;  %v406_v1 = vld [vmem:[%s7470_s29 + $0xac0] sm:$0xff]  ;;  %v279_v2 = vld [vmem:[%s7470_s29 + $0x6c8] sm:$0xff]  ;;  %v273_v4 = vld [vmem:[%s7470_s29 + $0x698] sm:$0xff] }
  0x21   :  { %545 = vmatpush1.msra.mxu1 %v321_v43  ;;  %475 = vmatprep.subr.mxu0 %v91_v44  ;;  %v399_v5 = vld [vmem:[%s7470_s29 + $0xa88] sm:$0xff]  ;;  %v272_v6 = vld [vmem:[%s7470_s29 + $0x690] sm:$0xff]  ;;  %v398_v7 = vld [vmem:[%s7470_s29 + $0xa80] sm:$0xff] }
  0x22   :  { %546 = vmatprep.subr.mxu1 %v315_v45  ;;  %476 = vmatpush1.msra.mxu0 %v90_v46  ;;  %v266_v8 = vld [vmem:[%s7470_s29 + $0x660] sm:$0xff]  ;;  %v3806_v9 = vld [vmem:[%s7471_s22 + $0x18] sm:$0xff]  ;;  %v3817_v12 = vld [vmem:[%s7471_s22 + $0x10] sm:$0xff] }
  0x23   :  { %547 = vmatpush1.msra.mxu1 %v314_v47  ;;  %477 = vmatprep.subr.mxu0 %v84_v48  ;;  %v170_v10 = vld [vmem:[%s7470_s29 + $0x360] sm:$0xff]  ;;  %v265_v11 = vld [vmem:[%s7470_s29 + $0x658] sm:$0xff]  ;;  %v259_v13 = vld [vmem:[%s7470_s29 + $0x628] sm:$0xff] }
  0x24   :  { %548 = vmatprep.subr.mxu1 %v308_v49  ;;  %478 = vmatpush1.msra.mxu0 %v83_v50  ;;  %v169_v14 = vld [vmem:[%s7470_s29 + $0x358] sm:$0xff]  ;;  %v258_v15 = vld [vmem:[%s7470_s29 + $0x620] sm:$0xff]  ;;  %v163_v16 = vld [vmem:[%s7470_s29 + $0x328] sm:$0xff] }
  0x25   :  { %549 = vmatpush1.msra.mxu1 %v307_v51  ;;  %479 = vmatprep.subr.mxu0 %v77_v52  ;;  %v252_v17 = vld [vmem:[%s7470_s29 + $0x5f0] sm:$0xff]  ;;  %v162_v18 = vld [vmem:[%s7470_s29 + $0x320] sm:$0xff]  ;;  %v251_v19 = vld [vmem:[%s7470_s29 + $0x5e8] sm:$0xff] }
  0x26   :  { %550 = vmatprep.subr.mxu1 %v301_v53  ;;  %480 = vmatpush1.msra.mxu0 %v76_v54  ;;  %v156_v20 = vld [vmem:[%s7470_s29 + $0x2f0] sm:$0xff]  ;;  %v245_v21 = vld [vmem:[%s7470_s29 + $0x5b8] sm:$0xff]  ;;  %v155_v22 = vld [vmem:[%s7470_s29 + $0x2e8] sm:$0xff] }
  0x27   :  { %551 = vmatpush1.msra.mxu1 %v300_v55  ;;  %481 = vmatprep.subr.mxu0 %v70_v56  ;;  %v244_v23 = vld [vmem:[%s7470_s29 + $0x5b0] sm:$0xff]  ;;  %v149_v24 = vld [vmem:[%s7470_s29 + $0x2b8] sm:$0xff]  ;;  %v238_v25 = vld [vmem:[%s7470_s29 + $0x580] sm:$0xff] }
  0x28   :  { %552 = vmatprep.subr.mxu1 %v294_v57  ;;  %482 = vmatpush1.msra.mxu0 %v69_v58  ;;  %v148_v26 = vld [vmem:[%s7470_s29 + $0x2b0] sm:$0xff]  ;;  %v237_v27 = vld [vmem:[%s7470_s29 + $0x578] sm:$0xff]  ;;  %v142_v28 = vld [vmem:[%s7470_s29 + $0x280] sm:$0xff] }
  0x29   :  { %553 = vmatpush1.msra.mxu1 %v293_v59  ;;  %483 = vmatprep.subr.mxu0 %v63_v60  ;;  %v231_v29 = vld [vmem:[%s7470_s29 + $0x548] sm:$0xff]  ;;  %v141_v30 = vld [vmem:[%s7470_s29 + $0x278] sm:$0xff]  ;;  %v230_v31 = vld [vmem:[%s7470_s29 + $0x540] sm:$0xff] }
  0x2a   :  { %554 = vmatprep.subr.mxu1 %v287_v61  ;;  %484 = vmatpush1.msra.mxu0 %v62_v62  ;;  %v135_v32 = vld [vmem:[%s7470_s29 + $0x248] sm:$0xff]  ;;  %v224_v33 = vld [vmem:[%s7470_s29 + $0x510] sm:$0xff]  ;;  %v134_v34 = vld [vmem:[%s7470_s29 + $0x240] sm:$0xff] }
  0x2b   :  { %555 = vmatpush1.msra.mxu1 %v286_v63  ;;  %485 = vmatprep.subr.mxu0 %v280_v0  ;;  %v223_v35 = vld [vmem:[%s7470_s29 + $0x508] sm:$0xff]  ;;  %v128_v36 = vld [vmem:[%s7470_s29 + $0x210] sm:$0xff]  ;;  %v217_v37 = vld [vmem:[%s7470_s29 + $0x4d8] sm:$0xff] }
  0x2c   :  { %584 = vmatprep.subr.mxu1 %v406_v1  ;;  %486 = vmatpush2.msra.mxu0 %v279_v2  ;;  %v127_v38 = vld [vmem:[%s7470_s29 + $0x208] sm:$0xff]  ;;  %v216_v39 = vld [vmem:[%s7470_s29 + $0x4d0] sm:$0xff]  ;;  %v121_v40 = vld [vmem:[%s7470_s29 + $0x1d8] sm:$0xff] }
  0x2d   :  { %585 = vmatpush2.msra.mxu1 %v405_v3  ;;  %487 = vmatprep.subr.mxu0 %v273_v4  ;;  %v210_v41 = vld [vmem:[%s7470_s29 + $0x4a0] sm:$0xff]  ;;  %v120_v42 = vld [vmem:[%s7470_s29 + $0x1d0] sm:$0xff]  ;;  %v209_v43 = vld [vmem:[%s7470_s29 + $0x498] sm:$0xff] }
  0x2e   :  { %586 = vmatprep.subr.mxu1 %v399_v5  ;;  %488 = vmatpush2.msra.mxu0 %v272_v6  ;;  %v114_v44 = vld [vmem:[%s7470_s29 + $0x1a0] sm:$0xff]  ;;  %v203_v45 = vld [vmem:[%s7470_s29 + $0x468] sm:$0xff]  ;;  %v113_v46 = vld [vmem:[%s7470_s29 + $0x198] sm:$0xff] }
  0x2f   :  { %587 = vmatpush2.msra.mxu1 %v398_v7  ;;  %489 = vmatprep.subr.mxu0 %v266_v8  ;;  %v202_v47 = vld [vmem:[%s7470_s29 + $0x460] sm:$0xff]  ;;  %v107_v48 = vld [vmem:[%s7470_s29 + $0x168] sm:$0xff]  ;;  %v196_v49 = vld [vmem:[%s7470_s29 + $0x430] sm:$0xff] }
  0x30   :  { %3382 = vmatprep.mubr.msk.f32.mxu1 %vm449_vm0, %v3806_v9  ;;  %595 = vmatprep.subr.mxu1 %v170_v10  ;;  %v106_v50 = vld [vmem:[%s7470_s29 + $0x160] sm:$0xff]  ;;  %v195_v51 = vld [vmem:[%s7470_s29 + $0x428] sm:$0xff]  ;;  %v100_v52 = vld [vmem:[%s7470_s29 + $0x130] sm:$0xff] }
  0x31   :  { %490 = vmatpush2.msra.mxu0 %v265_v11  ;;  %589 = vmatmul.mubr.f32.vlgmr.msra.gmra.mxu1 %v3817_v12  ;;  %v189_v53 = vld [vmem:[%s7470_s29 + $0x3f8] sm:$0xff]  ;;  %v99_v54 = vld [vmem:[%s7470_s29 + $0x128] sm:$0xff]  ;;  %v188_v55 = vld [vmem:[%s7470_s29 + $0x3f0] sm:$0xff] }
  0x32   :  { %491 = vmatprep.subr.mxu0 %v259_v13  ;;  %596 = vmatpush1.msra.mxu1 %v169_v14  ;;  %v93_v56 = vld [vmem:[%s7470_s29 + $0xf8] sm:$0xff]  ;;  %v182_v57 = vld [vmem:[%s7470_s29 + $0x3c0] sm:$0xff]  ;;  %v92_v58 = vld [vmem:[%s7470_s29 + $0xf0] sm:$0xff] }
  0x33   :  { %492 = vmatpush2.msra.mxu0 %v258_v15  ;;  %597 = vmatprep.subr.mxu1 %v163_v16  ;;  %v181_v59 = vld [vmem:[%s7470_s29 + $0x3b8] sm:$0xff]  ;;  %v86_v60 = vld [vmem:[%s7470_s29 + $0xc0] sm:$0xff]  ;;  %v175_v61 = vld [vmem:[%s7470_s29 + $0x388] sm:$0xff] }
  0x34   :  { %493 = vmatprep.subr.mxu0 %v252_v17  ;;  %598 = vmatpush1.msra.mxu1 %v162_v18  ;;  %v85_v62 = vld [vmem:[%s7470_s29 + $0xb8] sm:$0xff]  ;;  %v174_v63 = vld [vmem:[%s7470_s29 + $0x380] sm:$0xff]  ;;  %v79_v0 = vld [vmem:[%s7470_s29 + $0x88] sm:$0xff] }
  0x35   :  { %494 = vmatpush2.msra.mxu0 %v251_v19  ;;  %599 = vmatprep.subr.mxu1 %v156_v20  ;;  %v3981_v1 = vld [vmem:[%s7471_s22 + $0x8] sm:$0xff]  ;;  %v78_v2 = vld [vmem:[%s7470_s29 + $0x80] sm:$0xff]  ;;  %v72_v4 = vld [vmem:[%s7470_s29 + $0x50] sm:$0xff] }
  0x36   :  { %495 = vmatprep.subr.mxu0 %v245_v21  ;;  %600 = vmatpush1.msra.mxu1 %v155_v22  ;;  %v3989_v3 = vld [vmem:[%s7471_s22] sm:$0xff]  ;;  %v71_v6 = vld [vmem:[%s7470_s29 + $0x48] sm:$0xff]  ;;  %v393_v7 = vld [vmem:[%s7470_s29 + $0xa58] sm:$0xff] }
  0x37   :  { %496 = vmatpush2.msra.mxu0 %v244_v23  ;;  %601 = vmatprep.subr.mxu1 %v149_v24  ;;  %v394_v5 = vld [vmem:[%s7470_s29 + $0xa60] sm:$0xff]  ;;  %v65_v8 = vld [vmem:[%s7470_s29 + $0x18] sm:$0xff]  ;;  %v387_v10 = vld [vmem:[%s7470_s29 + $0xa28] sm:$0xff] }
  0x38   :  { %497 = vmatprep.subr.mxu0 %v238_v25  ;;  %602 = vmatpush1.msra.mxu1 %v148_v26  ;;  %v64_v11 = vld [vmem:[%s7470_s29 + $0x10] sm:$0xff]  ;;  %v386_v13 = vld [vmem:[%s7470_s29 + $0xa20] sm:$0xff]  ;;  %v281_v16 = vld [vmem:[%s7470_s29 + $0x6d8] sm:$0xff] }
  0x39   :  { %498 = vmatpush2.msra.mxu0 %v237_v27  ;;  %603 = vmatprep.subr.mxu1 %v142_v28  ;;  %v282_v14 = vld [vmem:[%s7470_s29 + $0x6e0] sm:$0xff]  ;;  %v380_v15 = vld [vmem:[%s7470_s29 + $0x9f0] sm:$0xff]  ;;  %v379_v17 = vld [vmem:[%s7470_s29 + $0x9e8] sm:$0xff] }
  0x3a   :  { %499 = vmatprep.subr.mxu0 %v231_v29  ;;  %604 = vmatpush1.msra.mxu1 %v141_v30  ;;  %v275_v18 = vld [vmem:[%s7470_s29 + $0x6a8] sm:$0xff]  ;;  %v373_v19 = vld [vmem:[%s7470_s29 + $0x9b8] sm:$0xff]  ;;  %v274_v20 = vld [vmem:[%s7470_s29 + $0x6a0] sm:$0xff] }
  0x3b   :  { %500 = vmatpush2.msra.mxu0 %v230_v31  ;;  %605 = vmatprep.subr.mxu1 %v135_v32  ;;  %v372_v21 = vld [vmem:[%s7470_s29 + $0x9b0] sm:$0xff]  ;;  %v366_v23 = vld [vmem:[%s7470_s29 + $0x980] sm:$0xff]  ;;  %v267_v24 = vld [vmem:[%s7470_s29 + $0x668] sm:$0xff] }
  0x3c   :  { %501 = vmatprep.subr.mxu0 %v224_v33  ;;  %606 = vmatpush1.msra.mxu1 %v134_v34  ;;  %v268_v22 = vld [vmem:[%s7470_s29 + $0x670] sm:$0xff]  ;;  %v365_v25 = vld [vmem:[%s7470_s29 + $0x978] sm:$0xff]  ;;  %v359_v27 = vld [vmem:[%s7470_s29 + $0x948] sm:$0xff] }
  0x3d   :  { %502 = vmatpush2.msra.mxu0 %v223_v35  ;;  %607 = vmatprep.subr.mxu1 %v128_v36  ;;  %v261_v26 = vld [vmem:[%s7470_s29 + $0x638] sm:$0xff]  ;;  %v260_v28 = vld [vmem:[%s7470_s29 + $0x630] sm:$0xff]  ;;  %v358_v29 = vld [vmem:[%s7470_s29 + $0x940] sm:$0xff] }
  0x3e   :  { %503 = vmatprep.subr.mxu0 %v217_v37  ;;  %608 = vmatpush1.msra.mxu1 %v127_v38  ;;  %v254_v30 = vld [vmem:[%s7470_s29 + $0x600] sm:$0xff]  ;;  %v352_v31 = vld [vmem:[%s7470_s29 + $0x910] sm:$0xff]  ;;  %v253_v32 = vld [vmem:[%s7470_s29 + $0x5f8] sm:$0xff] }
  0x3f   :  { %504 = vmatpush2.msra.mxu0 %v216_v39  ;;  %609 = vmatprep.subr.mxu1 %v121_v40  ;;  %v351_v33 = vld [vmem:[%s7470_s29 + $0x908] sm:$0xff]  ;;  %v345_v35 = vld [vmem:[%s7470_s29 + $0x8d8] sm:$0xff]  ;;  %v246_v36 = vld [vmem:[%s7470_s29 + $0x5c0] sm:$0xff] }
  0x40   :  { %505 = vmatprep.subr.mxu0 %v210_v41  ;;  %610 = vmatpush1.msra.mxu1 %v120_v42  ;;  %v247_v34 = vld [vmem:[%s7470_s29 + $0x5c8] sm:$0xff]  ;;  %v344_v37 = vld [vmem:[%s7470_s29 + $0x8d0] sm:$0xff]  ;;  %v338_v39 = vld [vmem:[%s7470_s29 + $0x8a0] sm:$0xff] }
  0x41   :  { %506 = vmatpush2.msra.mxu0 %v209_v43  ;;  %611 = vmatprep.subr.mxu1 %v114_v44  ;;  %v240_v38 = vld [vmem:[%s7470_s29 + $0x590] sm:$0xff]  ;;  %v239_v40 = vld [vmem:[%s7470_s29 + $0x588] sm:$0xff]  ;;  %v337_v41 = vld [vmem:[%s7470_s29 + $0x898] sm:$0xff] }
  0x42   :  { %507 = vmatprep.subr.mxu0 %v203_v45  ;;  %612 = vmatpush1.msra.mxu1 %v113_v46  ;;  %v233_v42 = vld [vmem:[%s7470_s29 + $0x558] sm:$0xff]  ;;  %v331_v43 = vld [vmem:[%s7470_s29 + $0x868] sm:$0xff]  ;;  %v232_v44 = vld [vmem:[%s7470_s29 + $0x550] sm:$0xff] }
  0x43   :  { %508 = vmatpush2.msra.mxu0 %v202_v47  ;;  %613 = vmatprep.subr.mxu1 %v107_v48  ;;  %v330_v45 = vld [vmem:[%s7470_s29 + $0x860] sm:$0xff]  ;;  %v324_v47 = vld [vmem:[%s7470_s29 + $0x830] sm:$0xff]  ;;  %v225_v48 = vld [vmem:[%s7470_s29 + $0x518] sm:$0xff] }
  0x44   :  { %509 = vmatprep.subr.mxu0 %v196_v49  ;;  %614 = vmatpush1.msra.mxu1 %v106_v50  ;;  %v226_v46 = vld [vmem:[%s7470_s29 + $0x520] sm:$0xff]  ;;  %v323_v49 = vld [vmem:[%s7470_s29 + $0x828] sm:$0xff] }
  0x45   :  { %510 = vmatpush2.msra.mxu0 %v195_v51  ;;  %615 = vmatprep.subr.mxu1 %v100_v52  ;;  %v219_v50 = vld [vmem:[%s7470_s29 + $0x4e8] sm:$0xff]  ;;  %v317_v51 = vld [vmem:[%s7470_s29 + $0x7f8] sm:$0xff]  ;;  %v218_v52 = vld [vmem:[%s7470_s29 + $0x4e0] sm:$0xff] }
  0x46   :  { %511 = vmatprep.subr.mxu0 %v189_v53  ;;  %616 = vmatpush1.msra.mxu1 %v99_v54  ;;  %v316_v53 = vld [vmem:[%s7470_s29 + $0x7f0] sm:$0xff] }
  0x47   :  { %512 = vmatpush2.msra.mxu0 %v188_v55  ;;  %617 = vmatprep.subr.mxu1 %v93_v56  ;;  %v212_v54 = vld [vmem:[%s7470_s29 + $0x4b0] sm:$0xff]  ;;  %v310_v55 = vld [vmem:[%s7470_s29 + $0x7c0] sm:$0xff]  ;;  %v211_v56 = vld [vmem:[%s7470_s29 + $0x4a8] sm:$0xff] }
  0x48   :  { %513 = vmatprep.subr.mxu0 %v182_v57  ;;  %618 = vmatpush1.msra.mxu1 %v92_v58  ;;  %v309_v57 = vld [vmem:[%s7470_s29 + $0x7b8] sm:$0xff] }
  0x49   :  { %514 = vmatpush2.msra.mxu0 %v181_v59  ;;  %619 = vmatprep.subr.mxu1 %v86_v60  ;;  %v205_v58 = vld [vmem:[%s7470_s29 + $0x478] sm:$0xff]  ;;  %v303_v59 = vld [vmem:[%s7470_s29 + $0x788] sm:$0xff]  ;;  %v204_v60 = vld [vmem:[%s7470_s29 + $0x470] sm:$0xff] }
  0x4a   :  { %515 = vmatprep.subr.mxu0 %v175_v61  ;;  %620 = vmatpush1.msra.mxu1 %v85_v62  ;;  %v302_v61 = vld [vmem:[%s7470_s29 + $0x780] sm:$0xff] }
  0x4b   :  { %516 = vmatpush2.msra.mxu0 %v174_v63  ;;  %621 = vmatprep.subr.mxu1 %v79_v0  ;;  %v198_v62 = vld [vmem:[%s7470_s29 + $0x440] sm:$0xff]  ;;  %v296_v63 = vld [vmem:[%s7470_s29 + $0x750] sm:$0xff]  ;;  %v197_v0 = vld [vmem:[%s7470_s29 + $0x438] sm:$0xff] }
  0x4c   :  { %517 = vmatprep.mubr.f32.mxu0 %v3981_v1  ;;  %622 = vmatpush1.msra.mxu1 %v78_v2  ;;  %v295_v2 = vld [vmem:[%s7470_s29 + $0x748] sm:$0xff] }
  0x4d   :  { %518 = vmatmul.mubr.f32.vlgmr.msra.gmra.mxu0 %v3989_v3  ;;  %623 = vmatprep.subr.mxu1 %v72_v4  ;;  %v191_v4 = vld [vmem:[%s7470_s29 + $0x408] sm:$0xff] }
  0x4e   :  { %666 = vmatprep.subr.mxu0 %v394_v5  ;;  %624 = vmatpush1.msra.mxu1 %v71_v6  ;;  %v289_v5 = vld [vmem:[%s7470_s29 + $0x718] sm:$0xff]  ;;  %v190_v6 = vld [vmem:[%s7470_s29 + $0x400] sm:$0xff] }
  0x4f   :  { %667 = vmatpush1.msra.mxu0 %v393_v7  ;;  %625 = vmatprep.subr.mxu1 %v65_v8  ;;  %v288_v7 = vld [vmem:[%s7470_s29 + $0x710] sm:$0xff] }
  0x50   :  { %668 = vmatprep.subr.mxu0 %v387_v10  ;;  %626 = vmatpush1.msra.mxu1 %v64_v11  ;;  %v184_v8 = vld [vmem:[%s7470_s29 + $0x3d0] sm:$0xff]  ;;  %v183_v11 = vld [vmem:[%s7470_s29 + $0x3c8] sm:$0xff] }
  0x51   :  { %669 = vmatpush1.msra.mxu0 %v386_v13  ;;  %627 = vmatprep.subr.mxu1 %v282_v14  ;;  %v408_v10 = vld [vmem:[%s7470_s29 + $0xad0] sm:$0xff]  ;;  %v407_v13 = vld [vmem:[%s7470_s29 + $0xac8] sm:$0xff]  ;;  %v177_v14 = vld [vmem:[%s7470_s29 + $0x398] sm:$0xff] }
  0x52   :  { %670 = vmatprep.subr.mxu0 %v380_v15  ;;  %628 = vmatpush2.msra.mxu1 %v281_v16  ;;  %v401_v15 = vld [vmem:[%s7470_s29 + $0xa98] sm:$0xff]  ;;  %v176_v16 = vld [vmem:[%s7470_s29 + $0x390] sm:$0xff] }
  0x53   :  { %671 = vmatpush1.msra.mxu0 %v379_v17  ;;  %629 = vmatprep.subr.mxu1 %v275_v18  ;;  %v400_v17 = vld [vmem:[%s7470_s29 + $0xa90] sm:$0xff] }
  0x54   :  { %672 = vmatprep.subr.mxu0 %v373_v19  ;;  %630 = vmatpush2.msra.mxu1 %v274_v20  ;;  %v172_v18 = vld [vmem:[%s7470_s29 + $0x370] sm:$0xff]  ;;  %v171_v20 = vld [vmem:[%s7470_s29 + $0x368] sm:$0xff] }
  0x55   :  { %673 = vmatpush1.msra.mxu0 %v372_v21  ;;  %631 = vmatprep.subr.mxu1 %v268_v22  ;;  %v396_v19 = vld [vmem:[%s7470_s29 + $0xa70] sm:$0xff]  ;;  %v395_v21 = vld [vmem:[%s7470_s29 + $0xa68] sm:$0xff]  ;;  %v165_v22 = vld [vmem:[%s7470_s29 + $0x338] sm:$0xff] }
  0x56   :  { %674 = vmatprep.subr.mxu0 %v366_v23  ;;  %632 = vmatpush2.msra.mxu1 %v267_v24  ;;  %v389_v23 = vld [vmem:[%s7470_s29 + $0xa38] sm:$0xff]  ;;  %v164_v24 = vld [vmem:[%s7470_s29 + $0x330] sm:$0xff] }
  0x57   :  { %675 = vmatpush1.msra.mxu0 %v365_v25  ;;  %633 = vmatprep.subr.mxu1 %v261_v26  ;;  %v388_v25 = vld [vmem:[%s7470_s29 + $0xa30] sm:$0xff]  ;;  %v158_v26 = vld [vmem:[%s7470_s29 + $0x300] sm:$0xff] }
  0x58   :  { %676 = vmatprep.subr.mxu0 %v359_v27  ;;  %634 = vmatpush2.msra.mxu1 %v260_v28  ;;  %v382_v27 = vld [vmem:[%s7470_s29 + $0xa00] sm:$0xff]  ;;  %v157_v28 = vld [vmem:[%s7470_s29 + $0x2f8] sm:$0xff] }
  0x59   :  { %677 = vmatpush1.msra.mxu0 %v358_v29  ;;  %635 = vmatprep.subr.mxu1 %v254_v30  ;;  %v381_v29 = vld [vmem:[%s7470_s29 + $0x9f8] sm:$0xff]  ;;  %v151_v30 = vld [vmem:[%s7470_s29 + $0x2c8] sm:$0xff] }
  0x5a   :  { %678 = vmatprep.subr.mxu0 %v352_v31  ;;  %636 = vmatpush2.msra.mxu1 %v253_v32  ;;  %v375_v31 = vld [vmem:[%s7470_s29 + $0x9c8] sm:$0xff]  ;;  %v150_v32 = vld [vmem:[%s7470_s29 + $0x2c0] sm:$0xff] }
  0x5b   :  { %679 = vmatpush1.msra.mxu0 %v351_v33  ;;  %637 = vmatprep.subr.mxu1 %v247_v34  ;;  %v374_v33 = vld [vmem:[%s7470_s29 + $0x9c0] sm:$0xff]  ;;  %v144_v34 = vld [vmem:[%s7470_s29 + $0x290] sm:$0xff] }
  0x5c   :  { %680 = vmatprep.subr.mxu0 %v345_v35  ;;  %638 = vmatpush2.msra.mxu1 %v246_v36  ;;  %v368_v35 = vld [vmem:[%s7470_s29 + $0x990] sm:$0xff]  ;;  %v143_v36 = vld [vmem:[%s7470_s29 + $0x288] sm:$0xff] }
  0x5d   :  { %681 = vmatpush1.msra.mxu0 %v344_v37  ;;  %639 = vmatprep.subr.mxu1 %v240_v38  ;;  %v367_v37 = vld [vmem:[%s7470_s29 + $0x988] sm:$0xff]  ;;  %v137_v38 = vld [vmem:[%s7470_s29 + $0x258] sm:$0xff] }
  0x5e   :  { %682 = vmatprep.subr.mxu0 %v338_v39  ;;  %640 = vmatpush2.msra.mxu1 %v239_v40  ;;  %v361_v39 = vld [vmem:[%s7470_s29 + $0x958] sm:$0xff]  ;;  %v136_v40 = vld [vmem:[%s7470_s29 + $0x250] sm:$0xff] }
  0x5f   :  { %683 = vmatpush1.msra.mxu0 %v337_v41  ;;  %641 = vmatprep.subr.mxu1 %v233_v42  ;;  %v360_v41 = vld [vmem:[%s7470_s29 + $0x950] sm:$0xff]  ;;  %v130_v42 = vld [vmem:[%s7470_s29 + $0x220] sm:$0xff] }
  0x60   :  { %684 = vmatprep.subr.mxu0 %v331_v43  ;;  %642 = vmatpush2.msra.mxu1 %v232_v44  ;;  %v354_v43 = vld [vmem:[%s7470_s29 + $0x920] sm:$0xff]  ;;  %v129_v44 = vld [vmem:[%s7470_s29 + $0x218] sm:$0xff] }
  0x61   :  { %685 = vmatpush1.msra.mxu0 %v330_v45  ;;  %643 = vmatprep.subr.mxu1 %v226_v46  ;;  %v353_v45 = vld [vmem:[%s7470_s29 + $0x918] sm:$0xff]  ;;  %v123_v46 = vld [vmem:[%s7470_s29 + $0x1e8] sm:$0xff] }
  0x62   :  { %686 = vmatprep.subr.mxu0 %v324_v47  ;;  %644 = vmatpush2.msra.mxu1 %v225_v48  ;;  %v347_v47 = vld [vmem:[%s7470_s29 + $0x8e8] sm:$0xff]  ;;  %v122_v48 = vld [vmem:[%s7470_s29 + $0x1e0] sm:$0xff] }
  0x63   :  { %687 = vmatpush1.msra.mxu0 %v323_v49  ;;  %645 = vmatprep.subr.mxu1 %v219_v50  ;;  %v346_v49 = vld [vmem:[%s7470_s29 + $0x8e0] sm:$0xff]  ;;  %v116_v50 = vld [vmem:[%s7470_s29 + $0x1b0] sm:$0xff] }
  0x64   :  { %688 = vmatprep.subr.mxu0 %v317_v51  ;;  %646 = vmatpush2.msra.mxu1 %v218_v52  ;;  %v340_v51 = vld [vmem:[%s7470_s29 + $0x8b0] sm:$0xff]  ;;  %v115_v52 = vld [vmem:[%s7470_s29 + $0x1a8] sm:$0xff] }
  0x65   :  { %689 = vmatpush1.msra.mxu0 %v316_v53  ;;  %647 = vmatprep.subr.mxu1 %v212_v54  ;;  %v339_v53 = vld [vmem:[%s7470_s29 + $0x8a8] sm:$0xff]  ;;  %v109_v54 = vld [vmem:[%s7470_s29 + $0x178] sm:$0xff] }
  0x66   :  { %690 = vmatprep.subr.mxu0 %v310_v55  ;;  %648 = vmatpush2.msra.mxu1 %v211_v56  ;;  %v333_v55 = vld [vmem:[%s7470_s29 + $0x878] sm:$0xff]  ;;  %v108_v56 = vld [vmem:[%s7470_s29 + $0x170] sm:$0xff] }
  0x67   :  { %691 = vmatpush1.msra.mxu0 %v309_v57  ;;  %649 = vmatprep.subr.mxu1 %v205_v58  ;;  %v332_v57 = vld [vmem:[%s7470_s29 + $0x870] sm:$0xff]  ;;  %v102_v58 = vld [vmem:[%s7470_s29 + $0x140] sm:$0xff] }
  0x68   :  { %692 = vmatprep.subr.mxu0 %v303_v59  ;;  %650 = vmatpush2.msra.mxu1 %v204_v60  ;;  %v326_v59 = vld [vmem:[%s7470_s29 + $0x840] sm:$0xff]  ;;  %v101_v60 = vld [vmem:[%s7470_s29 + $0x138] sm:$0xff] }
  0x69   :  { %693 = vmatpush1.msra.mxu0 %v302_v61  ;;  %651 = vmatprep.subr.mxu1 %v198_v62  ;;  %v325_v61 = vld [vmem:[%s7470_s29 + $0x838] sm:$0xff]  ;;  %v95_v62 = vld [vmem:[%s7470_s29 + $0x108] sm:$0xff] }
  0x6a   :  { %694 = vmatprep.subr.mxu0 %v296_v63  ;;  %652 = vmatpush2.msra.mxu1 %v197_v0  ;;  %v319_v63 = vld [vmem:[%s7470_s29 + $0x808] sm:$0xff]  ;;  %v94_v0 = vld [vmem:[%s7470_s29 + $0x100] sm:$0xff] }
  0x6b   :  { %695 = vmatpush1.msra.mxu0 %v295_v2  ;;  %653 = vmatprep.subr.mxu1 %v191_v4  ;;  %v318_v2 = vld [vmem:[%s7470_s29 + $0x800] sm:$0xff]  ;;  %v88_v4 = vld [vmem:[%s7470_s29 + $0xd0] sm:$0xff] }
  0x6c   :  { %696 = vmatprep.subr.mxu0 %v289_v5  ;;  %654 = vmatpush2.msra.mxu1 %v190_v6  ;;  %v312_v5 = vld [vmem:[%s7470_s29 + $0x7d0] sm:$0xff]  ;;  %v87_v6 = vld [vmem:[%s7470_s29 + $0xc8] sm:$0xff] }
  0x6d   :  { %697 = vmatpush1.msra.mxu0 %v288_v7  ;;  %655 = vmatprep.subr.mxu1 %v184_v8  ;;  %v311_v7 = vld [vmem:[%s7470_s29 + $0x7c8] sm:$0xff]  ;;  %v81_v8 = vld [vmem:[%s7470_s29 + $0x98] sm:$0xff] }
  0x6e   :  { %726 = vmatprep.subr.mxu0 %v408_v10  ;;  %656 = vmatpush2.msra.mxu1 %v183_v11  ;;  %v305_v10 = vld [vmem:[%s7470_s29 + $0x798] sm:$0xff]  ;;  %v80_v11 = vld [vmem:[%s7470_s29 + $0x90] sm:$0xff] }
  0x6f   :  { %727 = vmatpush2.msra.mxu0 %v407_v13  ;;  %657 = vmatprep.subr.mxu1 %v177_v14  ;;  %v304_v13 = vld [vmem:[%s7470_s29 + $0x790] sm:$0xff]  ;;  %v74_v14 = vld [vmem:[%s7470_s29 + $0x60] sm:$0xff] }
  0x70   :  { %728 = vmatprep.subr.mxu0 %v401_v15  ;;  %658 = vmatpush2.msra.mxu1 %v176_v16  ;;  %v298_v15 = vld [vmem:[%s7470_s29 + $0x760] sm:$0xff]  ;;  %v73_v16 = vld [vmem:[%s7470_s29 + $0x58] sm:$0xff] }
  0x71   :  { %659 = vmatprep.mubr.f32.mxu1 %v3981_v1  ;;  %729 = vmatpush2.msra.mxu0 %v400_v17  ;;  %v297_v17 = vld [vmem:[%s7470_s29 + $0x758] sm:$0xff] }
  0x72   :  { %3383 = vmatprep.mubr.msk.f32.mxu0 %vm449_vm0, %v3806_v9  ;;  %660 = vmatmul.mubr.f32.vlgmr.msra.gmra.mxu1 %v3989_v3 }
  0x73   :  { %731 = vmatmul.mubr.f32.vlgmr.msra.gmra.mxu0 %v3817_v12  ;;  %737 = vmatprep.subr.mxu0 %v172_v18  ;;  %v67_v18 = vld [vmem:[%s7470_s29 + $0x28] sm:$0xff] }
  0x74   :  { %808 = vmatprep.subr.mxu1 %v396_v19  ;;  %738 = vmatpush1.msra.mxu0 %v171_v20  ;;  %v291_v19 = vld [vmem:[%s7470_s29 + $0x728] sm:$0xff]  ;;  %v66_v20 = vld [vmem:[%s7470_s29 + $0x20] sm:$0xff] }
  0x75   :  { %809 = vmatpush1.msra.mxu1 %v395_v21  ;;  %739 = vmatprep.subr.mxu0 %v165_v22  ;;  %v290_v21 = vld [vmem:[%s7470_s29 + $0x720] sm:$0xff]  ;;  %v284_v22 = vld [vmem:[%s7470_s29 + $0x6f0] sm:$0xff] }
  0x76   :  { %810 = vmatprep.subr.mxu1 %v389_v23  ;;  %740 = vmatpush1.msra.mxu0 %v164_v24  ;;  %v410_v23 = vld [vmem:[%s7470_s29 + $0xae0] sm:$0xff]  ;;  %v283_v24 = vld [vmem:[%s7470_s29 + $0x6e8] sm:$0xff] }
  0x77   :  { %811 = vmatpush1.msra.mxu1 %v388_v25  ;;  %741 = vmatprep.subr.mxu0 %v158_v26  ;;  %v409_v25 = vld [vmem:[%s7470_s29 + $0xad8] sm:$0xff] }
  0x78   :  { %812 = vmatprep.subr.mxu1 %v382_v27  ;;  %742 = vmatpush1.msra.mxu0 %v157_v28  ;;  %v277_v26 = vld [vmem:[%s7470_s29 + $0x6b8] sm:$0xff]  ;;  %v403_v27 = vld [vmem:[%s7470_s29 + $0xaa8] sm:$0xff]  ;;  %v276_v28 = vld [vmem:[%s7470_s29 + $0x6b0] sm:$0xff] }
  0x79   :  { %813 = vmatpush1.msra.mxu1 %v381_v29  ;;  %743 = vmatprep.subr.mxu0 %v151_v30  ;;  %v402_v29 = vld [vmem:[%s7470_s29 + $0xaa0] sm:$0xff] }
  0x7a   :  { %814 = vmatprep.subr.mxu1 %v375_v31  ;;  %744 = vmatpush1.msra.mxu0 %v150_v32  ;;  %v270_v30 = vld [vmem:[%s7470_s29 + $0x680] sm:$0xff]  ;;  %v269_v31 = vld [vmem:[%s7470_s29 + $0x678] sm:$0xff] }
  0x7b   :  { %815 = vmatpush1.msra.mxu1 %v374_v33  ;;  %745 = vmatprep.subr.mxu0 %v144_v34  ;;  %v285_v32 = vld [vmem:[%s7470_s29 + $0x6f8] sm:$0xff]  ;;  %v263_v33 = vld [vmem:[%s7470_s29 + $0x648] sm:$0xff]  ;;  %v262_v34 = vld [vmem:[%s7470_s29 + $0x640] sm:$0xff] }
  0x7c   :  { %816 = vmatprep.subr.mxu1 %v368_v35  ;;  %746 = vmatpush1.msra.mxu0 %v143_v36  ;;  %v173_v35 = vld [vmem:[%s7470_s29 + $0x378] sm:$0xff]  ;;  %v256_v36 = vld [vmem:[%s7470_s29 + $0x610] sm:$0xff] }
  0x7d   :  { %817 = vmatpush1.msra.mxu1 %v367_v37  ;;  %747 = vmatprep.subr.mxu0 %v137_v38  ;;  %v278_v37 = vld [vmem:[%s7470_s29 + $0x6c0] sm:$0xff]  ;;  %v255_v38 = vld [vmem:[%s7470_s29 + $0x608] sm:$0xff] }
  0x7e   :  { %818 = vmatprep.subr.mxu1 %v361_v39  ;;  %748 = vmatpush1.msra.mxu0 %v136_v40  ;;  %v166_v39 = vld [vmem:[%s7470_s29 + $0x340] sm:$0xff]  ;;  %v248_v40 = vld [vmem:[%s7470_s29 + $0x5d0] sm:$0xff] }
  0x7f   :  { %819 = vmatpush1.msra.mxu1 %v360_v41  ;;  %749 = vmatprep.subr.mxu0 %v130_v42  ;;  %v242_v41 = vld [vmem:[%s7470_s29 + $0x5a0] sm:$0xff]  ;;  %v159_v42 = vld [vmem:[%s7470_s29 + $0x308] sm:$0xff] }
  0x80   :  { %820 = vmatprep.subr.mxu1 %v354_v43  ;;  %750 = vmatpush1.msra.mxu0 %v129_v44  ;;  %v241_v43 = vld [vmem:[%s7470_s29 + $0x598] sm:$0xff]  ;;  %v264_v44 = vld [vmem:[%s7470_s29 + $0x650] sm:$0xff] }
  0x81   :  { %821 = vmatpush1.msra.mxu1 %v353_v45  ;;  %751 = vmatprep.subr.mxu0 %v123_v46  ;;  %v235_v45 = vld [vmem:[%s7470_s29 + $0x568] sm:$0xff]  ;;  %v152_v46 = vld [vmem:[%s7470_s29 + $0x2d0] sm:$0xff] }
  0x82   :  { %822 = vmatprep.subr.mxu1 %v347_v47  ;;  %752 = vmatpush1.msra.mxu0 %v122_v48  ;;  %v234_v47 = vld [vmem:[%s7470_s29 + $0x560] sm:$0xff]  ;;  %v257_v48 = vld [vmem:[%s7470_s29 + $0x618] sm:$0xff] }
  0x83   :  { %823 = vmatpush1.msra.mxu1 %v346_v49  ;;  %753 = vmatprep.subr.mxu0 %v116_v50  ;;  %v228_v49 = vld [vmem:[%s7470_s29 + $0x530] sm:$0xff]  ;;  %v145_v50 = vld [vmem:[%s7470_s29 + $0x298] sm:$0xff] }
  0x84   :  { %824 = vmatprep.subr.mxu1 %v340_v51  ;;  %754 = vmatpush1.msra.mxu0 %v115_v52  ;;  %v227_v51 = vld [vmem:[%s7470_s29 + $0x528] sm:$0xff]  ;;  %v250_v52 = vld [vmem:[%s7470_s29 + $0x5e0] sm:$0xff] }
  0x85   :  { %825 = vmatpush1.msra.mxu1 %v339_v53  ;;  %755 = vmatprep.subr.mxu0 %v109_v54  ;;  %v221_v53 = vld [vmem:[%s7470_s29 + $0x4f8] sm:$0xff]  ;;  %v138_v54 = vld [vmem:[%s7470_s29 + $0x260] sm:$0xff] }
  0x86   :  { %826 = vmatprep.subr.mxu1 %v333_v55  ;;  %756 = vmatpush1.msra.mxu0 %v108_v56  ;;  %v220_v55 = vld [vmem:[%s7470_s29 + $0x4f0] sm:$0xff]  ;;  %v243_v56 = vld [vmem:[%s7470_s29 + $0x5a8] sm:$0xff] }
  0x87   :  { %827 = vmatpush1.msra.mxu1 %v332_v57  ;;  %757 = vmatprep.subr.mxu0 %v102_v58  ;;  %v214_v57 = vld [vmem:[%s7470_s29 + $0x4c0] sm:$0xff]  ;;  %v131_v58 = vld [vmem:[%s7470_s29 + $0x228] sm:$0xff] }
  0x88   :  { %828 = vmatprep.subr.mxu1 %v326_v59  ;;  %758 = vmatpush1.msra.mxu0 %v101_v60  ;;  %v213_v59 = vld [vmem:[%s7470_s29 + $0x4b8] sm:$0xff]  ;;  %v236_v60 = vld [vmem:[%s7470_s29 + $0x570] sm:$0xff] }
  0x89   :  { %829 = vmatpush1.msra.mxu1 %v325_v61  ;;  %759 = vmatprep.subr.mxu0 %v95_v62  ;;  %v207_v61 = vld [vmem:[%s7470_s29 + $0x488] sm:$0xff]  ;;  %v124_v62 = vld [vmem:[%s7470_s29 + $0x1f0] sm:$0xff] }
  0x8a   :  { %830 = vmatprep.subr.mxu1 %v319_v63  ;;  %760 = vmatpush1.msra.mxu0 %v94_v0  ;;  %v206_v63 = vld [vmem:[%s7470_s29 + $0x480] sm:$0xff]  ;;  %v229_v0 = vld [vmem:[%s7470_s29 + $0x538] sm:$0xff] }
  0x8b   :  { %831 = vmatpush1.msra.mxu1 %v318_v2  ;;  %761 = vmatprep.subr.mxu0 %v88_v4 }
  0x8c   :  { %832 = vmatprep.subr.mxu1 %v312_v5  ;;  %762 = vmatpush1.msra.mxu0 %v87_v6 }
  0x8d   :  { %833 = vmatpush1.msra.mxu1 %v311_v7  ;;  %763 = vmatprep.subr.mxu0 %v81_v8 }
  0x8e   :  { %834 = vmatprep.subr.mxu1 %v305_v10  ;;  %764 = vmatpush1.msra.mxu0 %v80_v11 }
  0x8f   :  { %835 = vmatpush1.msra.mxu1 %v304_v13  ;;  %765 = vmatprep.subr.mxu0 %v74_v14 }
  0x90   :  { %836 = vmatprep.subr.mxu1 %v298_v15  ;;  %766 = vmatpush1.msra.mxu0 %v73_v16 }
  0x91   :  { %837 = vmatpush1.msra.mxu1 %v297_v17  ;;  %767 = vmatprep.subr.mxu0 %v67_v18 }
  0x92   :  { %838 = vmatprep.subr.mxu1 %v291_v19  ;;  %768 = vmatpush1.msra.mxu0 %v66_v20 }
  0x93   :  { %839 = vmatpush1.msra.mxu1 %v290_v21  ;;  %769 = vmatprep.subr.mxu0 %v284_v22 }
  0x94   :  { %868 = vmatprep.subr.mxu1 %v410_v23  ;;  %770 = vmatpush2.msra.mxu0 %v283_v24 }
  0x95   :  { %869 = vmatpush2.msra.mxu1 %v409_v25  ;;  %771 = vmatprep.subr.mxu0 %v277_v26 }
  0x96   :  { %870 = vmatprep.subr.mxu1 %v403_v27  ;;  %772 = vmatpush2.msra.mxu0 %v276_v28 }
  0x97   :  { %871 = vmatpush2.msra.mxu1 %v402_v29  ;;  %773 = vmatprep.subr.mxu0 %v270_v30 }
  0x98   :  { %3384 = vmatprep.mubr.msk.f32.mxu1 %vm449_vm0, %v3806_v9  ;;  %774 = vmatpush2.msra.mxu0 %v269_v31  ;;  %v249_v9 = vld [vmem:[%s7470_s29 + $0x5d8] sm:$0xff] }
  0x99   :  { %3400 = vmatprep.subr.mxu1 %v285_v32  ;;  %775 = vmatprep.subr.mxu0 %v263_v33 }
  0x9a   :  { %873 = vmatmul.mubr.f32.vlgmr.msra.gmra.mxu1 %v3817_v12  ;;  %776 = vmatpush2.msra.mxu0 %v262_v34  ;;  %v271_v12 = vld [vmem:[%s7470_s29 + $0x688] sm:$0xff] }
  0x9b   :  { %3401 = vmatpush3.msra.mxu1 %v173_v35  ;;  %777 = vmatprep.subr.mxu0 %v256_v36 }
  0x9c   :  { %3402 = vmatprep.subr.mxu1 %v278_v37  ;;  %778 = vmatpush2.msra.mxu0 %v255_v38 }
  0x9d   :  { %801 = vmatprep.mubr.f32.mxu0 %v3981_v1  ;;  %779 = vmatprep.subr.mxu0 %v249_v9 }
  0x9e   :  { %3403 = vmatpush3.msra.mxu1 %v166_v39  ;;  %780 = vmatpush2.msra.mxu0 %v248_v40 }
  0x9f   :  { %3404 = vmatprep.subr.mxu1 %v271_v12  ;;  %781 = vmatprep.subr.mxu0 %v242_v41 }
  0xa0   :  { %3405 = vmatpush3.msra.mxu1 %v159_v42  ;;  %782 = vmatpush2.msra.mxu0 %v241_v43 }
  0xa1   :  { %3406 = vmatprep.subr.mxu1 %v264_v44  ;;  %783 = vmatprep.subr.mxu0 %v235_v45 }
  0xa2   :  { %3407 = vmatpush3.msra.mxu1 %v152_v46  ;;  %784 = vmatpush2.msra.mxu0 %v234_v47 }
  0xa3   :  { %3408 = vmatprep.subr.mxu1 %v257_v48  ;;  %785 = vmatprep.subr.mxu0 %v228_v49 }
  0xa4   :  { %3409 = vmatpush3.msra.mxu1 %v145_v50  ;;  %786 = vmatpush2.msra.mxu0 %v227_v51 }
  0xa5   :  { %3410 = vmatprep.subr.mxu1 %v250_v52  ;;  %787 = vmatprep.subr.mxu0 %v221_v53 }
  0xa6   :  { %3411 = vmatpush3.msra.mxu1 %v138_v54  ;;  %788 = vmatpush2.msra.mxu0 %v220_v55 }
  0xa7   :  { %3412 = vmatprep.subr.mxu1 %v243_v56  ;;  %789 = vmatprep.subr.mxu0 %v214_v57 }
  0xa8   :  { %3413 = vmatpush3.msra.mxu1 %v131_v58 }
  0xa9   :  { %25 = vsyncpa [#allocation5], 0  ;;  %790 = vmatpush2.msra.mxu0 %v213_v59  ;;  %v200_v2 = vld [vmem:[%s7470_s29 + $0x450] sm:$0xff]  ;;  %3414 = vmatprep.subr.mxu1 %v236_v60  ;;  %v117_v4 = vld [vmem:[%s7470_s29 + $0x1b8] sm:$0xff]  ;;  %v3486_v24 = vmov 0.0   ;;  %vm1238_vm1 = vcmask 261120  }
  0xaa   :  { %791 = vmatprep.subr.mxu0 %v207_v61  ;;  %v199_v5 = vld [vmem:[%s7470_s29 + $0x448] sm:$0xff]  ;;  %3415 = vmatpush3.msra.mxu1 %v124_v62  ;;  %v222_v6 = vld [vmem:[%s7470_s29 + $0x500] sm:$0xff]  ;;  %v193_v7 = vld [vmem:[%s7470_s29 + $0x418] sm:$0xff]  ;;  %vm1560_vm2 = vcmask 588800   ;;  %vm1766_vm3 = vcmask 1045504   ;;  %vm1762_vm4 = vcmask 244736  }
  0xab   :  { %792 = vmatpush2.msra.mxu0 %v206_v63  ;;  %3416 = vmatprep.subr.mxu1 %v229_v0  ;;  %v110_v8 = vld [vmem:[%s7470_s29 + $0x180] sm:$0xff]  ;;  %v192_v10 = vld [vmem:[%s7470_s29 + $0x410] sm:$0xff]  ;;  %v215_v11 = vld [vmem:[%s7470_s29 + $0x4c8] sm:$0xff]  ;;  %s7472_s2 = sld [smem:[#allocation9_spill]]  ;;  %s3488_s0 = smov [#allocation4]  }
  0xac   :  { %793 = vmatprep.subr.mxu0 %v200_v2  ;;  %3417 = vmatpush3.msra.mxu1 %v117_v4  ;;  %v186_v13 = vld [vmem:[%s7470_s29 + $0x3e0] sm:$0xff]  ;;  %v103_v14 = vld [vmem:[%s7470_s29 + $0x148] sm:$0xff]  ;;  %v185_v15 = vld [vmem:[%s7470_s29 + $0x3d8] sm:$0xff]  ;;  %s3368_s19 = sshll.u32 %s3488_s0, 4  ;;  %s3369_s19 = int_to_ptr.vmem [resolvable:$true] %s3368_s19 }
  0xad   :  { %794 = vmatpush2.msra.mxu0 %v199_v5  ;;  %3418 = vmatprep.subr.mxu1 %v222_v6  ;;  %v208_v16 = vld [vmem:[%s7470_s29 + $0x490] sm:$0xff]  ;;  %v179_v17 = vld [vmem:[%s7470_s29 + $0x3a8] sm:$0xff]  ;;  %v178_v19 = vld [vmem:[%s7470_s29 + $0x3a0] sm:$0xff] }
  0xae   :  { %795 = vmatprep.subr.mxu0 %v193_v7  ;;  %3419 = vmatpush3.msra.mxu1 %v110_v8  ;;  %v96_v18 = vld [vmem:[%s7470_s29 + $0x110] sm:$0xff]  ;;  %v201_v20 = vld [vmem:[%s7470_s29 + $0x458] sm:$0xff]  ;;  %v194_v23 = vld [vmem:[%s7470_s29 + $0x420] sm:$0xff] }
  0xaf   :  { %796 = vmatpush2.msra.mxu0 %v192_v10  ;;  %3420 = vmatprep.subr.mxu1 %v215_v11  ;;  %v397_v21 = vld [vmem:[%s7470_s29 + $0xa78] sm:$0xff]  ;;  %v390_v25 = vld [vmem:[%s7470_s29 + $0xa40] sm:$0xff]  ;;  %v187_v27 = vld [vmem:[%s7470_s29 + $0x3e8] sm:$0xff] }
  0xb0   :  { %797 = vmatprep.subr.mxu0 %v186_v13  ;;  %3421 = vmatpush3.msra.mxu1 %v103_v14  ;;  %v89_v22 = vld [vmem:[%s7470_s29 + $0xd8] sm:$0xff]  ;;  %v82_v26 = vld [vmem:[%s7470_s29 + $0xa0] sm:$0xff]  ;;  %v383_v28 = vld [vmem:[%s7470_s29 + $0xa08] sm:$0xff] }
  0xb1   :  { %798 = vmatpush2.msra.mxu0 %v185_v15  ;;  %3422 = vmatprep.subr.mxu1 %v208_v16  ;;  %v75_v29 = vld [vmem:[%s7470_s29 + $0x68] sm:$0xff]  ;;  %v180_v30 = vld [vmem:[%s7470_s29 + $0x3b0] sm:$0xff]  ;;  %v369_v33 = vld [vmem:[%s7470_s29 + $0x998] sm:$0xff] }
  0xb2   :  { %799 = vmatprep.subr.mxu0 %v179_v17  ;;  %3423 = vmatpush3.msra.mxu1 %v96_v18  ;;  %v376_v31 = vld [vmem:[%s7470_s29 + $0x9d0] sm:$0xff]  ;;  %v362_v34 = vld [vmem:[%s7470_s29 + $0x960] sm:$0xff]  ;;  %v1057_v35 = vld [vmem:[%s7450_s4 + $0xf8] sm:$0xff] }
  0xb3   :  { %800 = vmatpush2.msra.mxu0 %v178_v19  ;;  %3424 = vmatprep.subr.mxu1 %v201_v20  ;;  %v68_v32 = vld [vmem:[%s7470_s29 + $0x30] sm:$0xff]  ;;  %v355_v37 = vld [vmem:[%s7470_s29 + $0x928] sm:$0xff]  ;;  %v1054_v38 = vld [vmem:[%s7450_s4 + $0xe0] sm:$0xff] }
  0xb4   :  { %802 = vmatmul.mubr.f32.vlgmr.msra.gmra.mxu0 %v3989_v3  ;;  %949 = vmatprep.subr.mxu0 %v3486_v24  ;;  %v1056_v36 = vld [vmem:[%s7450_s4 + $0xf0] sm:$0xff]  ;;  %v1053_v39 = vld [vmem:[%s7450_s4 + $0xd8] sm:$0xff]  ;;  %v1051_v41 = vld [vmem:[%s7450_s4 + $0xc8] sm:$0xff] }
  0xb5   :  { %950 = vmatpush1.msra.mxu0 %v397_v21  ;;  %3425 = vmatpush3.msra.mxu1 %v89_v22  ;;  %v348_v9 = vld [vmem:[%s7470_s29 + $0x8f0] sm:$0xff]  ;;  %v341_v12 = vld [vmem:[%s7470_s29 + $0x8b8] sm:$0xff]  ;;  %v1050_v42 = vld [vmem:[%s7450_s4 + $0xc0] sm:$0xff] }
  0xb6   :  { %951 = vmatprep.subr.mxu0 %v3486_v24  ;;  %3426 = vmatprep.subr.mxu1 %v194_v23  ;;  %v1052_v40 = vld [vmem:[%s7450_s4 + $0xd0] sm:$0xff]  ;;  %v334_v43 = vld [vmem:[%s7470_s29 + $0x880] sm:$0xff]  ;;  %v1049_v44 = vld [vmem:[%s7450_s4 + $0xb8] sm:$0xff] }
  0xb7   :  { %952 = vmatpush1.msra.mxu0 %v390_v25  ;;  %3427 = vmatpush3.msra.mxu1 %v82_v26  ;;  %v1048_v45 = vld [vmem:[%s7450_s4 + $0xb0] sm:$0xff]  ;;  %v327_v46 = vld [vmem:[%s7470_s29 + $0x848] sm:$0xff]  ;;  %v1046_v48 = vld [vmem:[%s7450_s4 + $0xa0] sm:$0xff] }
  0xb8   :  { %953 = vmatprep.subr.mxu0 %v3486_v24  ;;  %3428 = vmatprep.subr.mxu1 %v187_v27  ;;  %v1047_v47 = vld [vmem:[%s7450_s4 + $0xa8] sm:$0xff]  ;;  %v320_v49 = vld [vmem:[%s7470_s29 + $0x810] sm:$0xff]  ;;  %v1045_v50 = vld [vmem:[%s7450_s4 + $0x98] sm:$0xff] }
  0xb9   :  { %954 = vmatpush1.msra.mxu0 %v383_v28  ;;  %3429 = vmatpush3.msra.mxu1 %v75_v29  ;;  %v1044_v51 = vld [vmem:[%s7450_s4 + $0x90] sm:$0xff]  ;;  %v313_v52 = vld [vmem:[%s7470_s29 + $0x7d8] sm:$0xff]  ;;  %v1043_v53 = vld [vmem:[%s7450_s4 + $0x88] sm:$0xff] }
  0xba   :  { %955 = vmatprep.subr.mxu0 %v3486_v24  ;;  %3430 = vmatprep.subr.mxu1 %v180_v30  ;;  %v1042_v54 = vld [vmem:[%s7450_s4 + $0x80] sm:$0xff]  ;;  %v1041_v56 = vld [vmem:[%s7450_s4 + $0x78] sm:$0xff]  ;;  %v1040_v57 = vld [vmem:[%s7450_s4 + $0x70] sm:$0xff] }
  0xbb   :  { %956 = vmatpush1.msra.mxu0 %v376_v31  ;;  %3431 = vmatpush3.msra.mxu1 %v68_v32  ;;  %v306_v55 = vld [vmem:[%s7470_s29 + $0x7a0] sm:$0xff]  ;;  %v299_v58 = vld [vmem:[%s7470_s29 + $0x768] sm:$0xff]  ;;  %v292_v61 = vld [vmem:[%s7470_s29 + $0x730] sm:$0xff] }
  0xbc   :  { %957 = vmatprep.subr.mxu0 %v3486_v24  ;;  %943 = vmatprep.mubr.f32.mxu1 %v3981_v1  ;;  %v3440_v1 = vld [vmem:[%s7471_s22 + $0x18] sm:$0xff]  ;;  %v1039_v59 = vld [vmem:[%s7450_s4 + $0x68] sm:$0xff]  ;;  %v1038_v60 = vld [vmem:[%s7450_s4 + $0x60] sm:$0xff] }
  0xbd   :  { %958 = vmatpush1.msra.mxu0 %v369_v33  ;;  %944 = vmatmul.mubr.f32.vlgmr.msra.gmra.mxu1 %v3989_v3  ;;  %v1055_v3 = vld [vmem:[%s7450_s4 + $0xe8] sm:$0xff]  ;;  %v1037_v62 = vld [vmem:[%s7450_s4 + $0x58] sm:$0xff]  ;;  %v1036_v63 = vld [vmem:[%s7450_s4 + $0x50] sm:$0xff] }
  0xbe   :  { %959 = vmatprep.subr.mxu0 %v3486_v24  ;;  %3385 = vmatprep.mubr.msk.f32.mxu0 %vm449_vm0, %v3440_v1  ;;  %v411_v0 = vld [vmem:[%s7470_s29 + $0xae8] sm:$0xff]  ;;  %v1034_v4 = vld [vmem:[%s7450_s4 + $0x40] sm:$0xff]  ;;  %v404_v5 = vld [vmem:[%s7470_s29 + $0xab0] sm:$0xff] }
  0xbf   :  { %960 = vmatpush1.msra.mxu0 %v362_v34  ;;  %1242 = vmatprep.subr.mxu1 %v1057_v35  ;;  %v1035_v2 = vld [vmem:[%s7450_s4 + $0x48] sm:$0xff]  ;;  %v1033_v6 = vld [vmem:[%s7450_s4 + $0x38] sm:$0xff]  ;;  %v1032_v7 = vld [vmem:[%s7450_s4 + $0x30] sm:$0xff] }
  0xc0   :  { %961 = vmatprep.subr.mxu0 %v3486_v24  ;;  %1243 = vmatpush1.msra.mxu1 %v1056_v36  ;;  %v1031_v8 = vld [vmem:[%s7450_s4 + $0x28] sm:$0xff]  ;;  %v1121_v10 = vld [vmem:[%s7450_s4 + $0x2f8] sm:$0xff]  ;;  %v1030_v11 = vld [vmem:[%s7450_s4 + $0x20] sm:$0xff] }
  0xc1   :  { %962 = vmatpush1.msra.mxu0 %v355_v37  ;;  %1244 = vmatprep.subr.mxu1 %v1055_v3  ;;  %v1120_v13 = vld [vmem:[%s7450_s4 + $0x2f0] sm:$0xff]  ;;  %v1029_v15 = vld [vmem:[%s7450_s4 + $0x18] sm:$0xff]  ;;  %v1119_v16 = vld [vmem:[%s7450_s4 + $0x2e8] sm:$0xff] }
  0xc2   :  { %963 = vmatprep.subr.mxu0 %v3486_v24  ;;  %1245 = vmatpush1.msra.mxu1 %v1054_v38  ;;  %v3441_v14 = vld [vmem:[%s7471_s22 + $0x10] sm:$0xff]  ;;  %v1118_v18 = vld [vmem:[%s7450_s4 + $0x2e0] sm:$0xff]  ;;  %v1027_v19 = vld [vmem:[%s7450_s4 + $0x8] sm:$0xff] }
  0xc3   :  { %964 = vmatpush1.msra.mxu0 %v348_v9  ;;  %1246 = vmatprep.subr.mxu1 %v1053_v39  ;;  %v1028_v17 = vld [vmem:[%s7450_s4 + $0x10] sm:$0xff]  ;;  %v1117_v20 = vld [vmem:[%s7450_s4 + $0x2d8] sm:$0xff]  ;;  %v1026_v21 = vld [vmem:[%s7450_s4] sm:$0xff] }
  0xc4   :  { %965 = vmatprep.subr.mxu0 %v3486_v24  ;;  %1247 = vmatpush1.msra.mxu1 %v1052_v40  ;;  %v1116_v22 = vld [vmem:[%s7450_s4 + $0x2d0] sm:$0xff]  ;;  %v1089_v23 = vld [vmem:[%s7450_s4 + $0x1f8] sm:$0xff]  ;;  %v1115_v25 = vld [vmem:[%s7450_s4 + $0x2c8] sm:$0xff] }
  0xc5   :  { %966 = vmatpush1.msra.mxu0 %v341_v12  ;;  %1248 = vmatprep.subr.mxu1 %v1051_v41  ;;  %v1088_v26 = vld [vmem:[%s7450_s4 + $0x1f0] sm:$0xff]  ;;  %v1114_v27 = vld [vmem:[%s7450_s4 + $0x2c0] sm:$0xff]  ;;  %v1087_v28 = vld [vmem:[%s7450_s4 + $0x1e8] sm:$0xff] }
  0xc6   :  { %967 = vmatprep.subr.mxu0 %v3486_v24  ;;  %1249 = vmatpush1.msra.mxu1 %v1050_v42  ;;  %v1113_v29 = vld [vmem:[%s7450_s4 + $0x2b8] sm:$0xff]  ;;  %v1086_v30 = vld [vmem:[%s7450_s4 + $0x1e0] sm:$0xff]  ;;  %v1112_v31 = vld [vmem:[%s7450_s4 + $0x2b0] sm:$0xff] }
  0xc7   :  { %968 = vmatpush1.msra.mxu0 %v334_v43  ;;  %1250 = vmatprep.subr.mxu1 %v1049_v44  ;;  %v1085_v32 = vld [vmem:[%s7450_s4 + $0x1d8] sm:$0xff]  ;;  %v1111_v33 = vld [vmem:[%s7450_s4 + $0x2a8] sm:$0xff]  ;;  %v1084_v34 = vld [vmem:[%s7450_s4 + $0x1d0] sm:$0xff] }
  0xc8   :  { %969 = vmatprep.subr.mxu0 %v3486_v24  ;;  %1251 = vmatpush1.msra.mxu1 %v1048_v45  ;;  %v1110_v35 = vld [vmem:[%s7450_s4 + $0x2a0] sm:$0xff]  ;;  %v1083_v36 = vld [vmem:[%s7450_s4 + $0x1c8] sm:$0xff]  ;;  %v1109_v37 = vld [vmem:[%s7450_s4 + $0x298] sm:$0xff] }
  0xc9   :  { %970 = vmatpush1.msra.mxu0 %v327_v46  ;;  %1252 = vmatprep.subr.mxu1 %v1047_v47  ;;  %v1082_v1 = vld [vmem:[%s7450_s4 + $0x1c0] sm:$0xff]  ;;  %v1108_v3 = vld [vmem:[%s7450_s4 + $0x290] sm:$0xff]  ;;  %v1081_v38 = vld [vmem:[%s7450_s4 + $0x1b8] sm:$0xff] }
  0xca   :  { %971 = vmatprep.subr.mxu0 %v3486_v24  ;;  %1253 = vmatpush1.msra.mxu1 %v1046_v48  ;;  %v1107_v9 = vld [vmem:[%s7450_s4 + $0x288] sm:$0xff]  ;;  %v1080_v39 = vld [vmem:[%s7450_s4 + $0x1b0] sm:$0xff]  ;;  %v1106_v40 = vld [vmem:[%s7450_s4 + $0x280] sm:$0xff] }
  0xcb   :  { %972 = vmatpush1.msra.mxu0 %v320_v49  ;;  %1254 = vmatprep.subr.mxu1 %v1045_v50  ;;  %v1079_v12 = vld [vmem:[%s7450_s4 + $0x1a8] sm:$0xff]  ;;  %v1105_v41 = vld [vmem:[%s7450_s4 + $0x278] sm:$0xff]  ;;  %v1078_v42 = vld [vmem:[%s7450_s4 + $0x1a0] sm:$0xff] }
  0xcc   :  { %973 = vmatprep.subr.mxu0 %v3486_v24  ;;  %1255 = vmatpush1.msra.mxu1 %v1044_v51  ;;  %v1104_v43 = vld [vmem:[%s7450_s4 + $0x270] sm:$0xff]  ;;  %v1077_v44 = vld [vmem:[%s7450_s4 + $0x198] sm:$0xff]  ;;  %v1103_v45 = vld [vmem:[%s7450_s4 + $0x268] sm:$0xff] }
  0xcd   :  { %974 = vmatpush1.msra.mxu0 %v313_v52  ;;  %1256 = vmatprep.subr.mxu1 %v1043_v53  ;;  %v1076_v46 = vld [vmem:[%s7450_s4 + $0x190] sm:$0xff]  ;;  %v1102_v47 = vld [vmem:[%s7450_s4 + $0x260] sm:$0xff]  ;;  %v1075_v48 = vld [vmem:[%s7450_s4 + $0x188] sm:$0xff] }
  0xce   :  { %975 = vmatprep.subr.mxu0 %v3486_v24  ;;  %1257 = vmatpush1.msra.mxu1 %v1042_v54  ;;  %v1101_v49 = vld [vmem:[%s7450_s4 + $0x258] sm:$0xff]  ;;  %v1074_v50 = vld [vmem:[%s7450_s4 + $0x180] sm:$0xff]  ;;  %v1100_v51 = vld [vmem:[%s7450_s4 + $0x250] sm:$0xff] }
  0xcf   :  { %976 = vmatpush1.msra.mxu0 %v306_v55  ;;  %1258 = vmatprep.subr.mxu1 %v1041_v56  ;;  %v1073_v52 = vld [vmem:[%s7450_s4 + $0x178] sm:$0xff]  ;;  %v1099_v53 = vld [vmem:[%s7450_s4 + $0x248] sm:$0xff]  ;;  %v1072_v54 = vld [vmem:[%s7450_s4 + $0x170] sm:$0xff] }
  0xd0   :  { %977 = vmatprep.subr.mxu0 %v3486_v24  ;;  %1259 = vmatpush1.msra.mxu1 %v1040_v57  ;;  %v1098_v55 = vld [vmem:[%s7450_s4 + $0x240] sm:$0xff]  ;;  %v1071_v56 = vld [vmem:[%s7450_s4 + $0x168] sm:$0xff]  ;;  %v1097_v57 = vld [vmem:[%s7450_s4 + $0x238] sm:$0xff] }
  0xd1   :  { %978 = vmatpush1.msra.mxu0 %v299_v58  ;;  %1260 = vmatprep.subr.mxu1 %v1039_v59  ;;  %v1070_v58 = vld [vmem:[%s7450_s4 + $0x160] sm:$0xff]  ;;  %v1096_v59 = vld [vmem:[%s7450_s4 + $0x230] sm:$0xff] }
  0xd2   :  { %979 = vmatprep.subr.mxu0 %v3486_v24  ;;  %1261 = vmatpush1.msra.mxu1 %v1038_v60  ;;  %v1069_v60 = vld [vmem:[%s7450_s4 + $0x158] sm:$0xff] }
  0xd3   :  { %980 = vmatpush1.msra.mxu0 %v292_v61  ;;  %1262 = vmatprep.subr.mxu1 %v1037_v62  ;;  %v1095_v61 = vld [vmem:[%s7450_s4 + $0x228] sm:$0xff]  ;;  %v1068_v62 = vld [vmem:[%s7450_s4 + $0x150] sm:$0xff] }
  0xd4   :  { %1009 = vmatprep.subr.mxu0 %v3486_v24  ;;  %1263 = vmatpush1.msra.mxu1 %v1036_v63  ;;  %v1094_v63 = vld [vmem:[%s7450_s4 + $0x220] sm:$0xff] }
  0xd5   :  { %1010 = vmatpush2.msra.mxu0 %v411_v0  ;;  %1264 = vmatprep.subr.mxu1 %v1035_v2  ;;  %v1067_v0 = vld [vmem:[%s7450_s4 + $0x148] sm:$0xff]  ;;  %v1093_v2 = vld [vmem:[%s7450_s4 + $0x218] sm:$0xff] }
  0xd6   :  { %1011 = vmatprep.subr.mxu0 %v3486_v24  ;;  %1265 = vmatpush1.msra.mxu1 %v1034_v4  ;;  %v1066_v4 = vld [vmem:[%s7450_s4 + $0x140] sm:$0xff] }
  0xd7   :  { %1012 = vmatpush2.msra.mxu0 %v404_v5  ;;  %1266 = vmatprep.subr.mxu1 %v1033_v6  ;;  %v1092_v5 = vld [vmem:[%s7450_s4 + $0x210] sm:$0xff]  ;;  %v1065_v6 = vld [vmem:[%s7450_s4 + $0x138] sm:$0xff] }
  0xd8   :  { %1014 = vmatmul.mubr.f32.vlgmr.msra.gmra.mxu0 %v3441_v14  ;;  %1267 = vmatpush1.msra.mxu1 %v1032_v7  ;;  %v1091_v7 = vld [vmem:[%s7450_s4 + $0x208] sm:$0xff]  ;;  %v1062_v14 = vld [vmem:[%s7450_s4 + $0x120] sm:$0xff] }
  0xd9   :  { %1268 = vmatprep.subr.mxu1 %v1031_v8  ;;  %1313 = vmatprep.subr.mxu0 %v1121_v10  ;;  %v1064_v8 = vld [vmem:[%s7450_s4 + $0x130] sm:$0xff]  ;;  %v1090_v10 = vld [vmem:[%s7450_s4 + $0x200] sm:$0xff] }
  0xda   :  { %1269 = vmatpush1.msra.mxu1 %v1030_v11  ;;  %1314 = vmatpush1.msra.mxu0 %v1120_v13  ;;  %v1063_v11 = vld [vmem:[%s7450_s4 + $0x128] sm:$0xff]  ;;  %v1153_v13 = vld [vmem:[%s7450_s4 + $0x3f8] sm:$0xff] }
  0xdb   :  { %1270 = vmatprep.subr.mxu1 %v1029_v15  ;;  %1315 = vmatprep.subr.mxu0 %v1119_v16  ;;  %v1152_v15 = vld [vmem:[%s7450_s4 + $0x3f0] sm:$0xff]  ;;  %v1061_v16 = vld [vmem:[%s7450_s4 + $0x118] sm:$0xff] }
  0xdc   :  { %1271 = vmatpush1.msra.mxu1 %v1028_v17  ;;  %1316 = vmatpush1.msra.mxu0 %v1118_v18  ;;  %v1151_v17 = vld [vmem:[%s7450_s4 + $0x3e8] sm:$0xff]  ;;  %v1060_v18 = vld [vmem:[%s7450_s4 + $0x110] sm:$0xff] }
  0xdd   :  { %1272 = vmatprep.subr.mxu1 %v1027_v19  ;;  %1317 = vmatprep.subr.mxu0 %v1117_v20  ;;  %v1150_v19 = vld [vmem:[%s7450_s4 + $0x3e0] sm:$0xff]  ;;  %v1059_v20 = vld [vmem:[%s7450_s4 + $0x108] sm:$0xff] }
  0xde   :  { %1273 = vmatpush1.msra.mxu1 %v1026_v21  ;;  %1318 = vmatpush1.msra.mxu0 %v1116_v22  ;;  %v1149_v21 = vld [vmem:[%s7450_s4 + $0x3d8] sm:$0xff]  ;;  %v1058_v22 = vld [vmem:[%s7450_s4 + $0x100] sm:$0xff] }
  0xdf   :  { %1274 = vmatprep.subr.mxu1 %v1089_v23  ;;  %1319 = vmatprep.subr.mxu0 %v1115_v25  ;;  %v1148_v23 = vld [vmem:[%s7450_s4 + $0x3d0] sm:$0xff]  ;;  %v1147_v25 = vld [vmem:[%s7450_s4 + $0x3c8] sm:$0xff] }
  0xe0   :  { %1275 = vmatpush2.msra.mxu1 %v1088_v26  ;;  %1320 = vmatpush1.msra.mxu0 %v1114_v27  ;;  %v1185_v26 = vld [vmem:[%s7450_s4 + $0x4f8] sm:$0xff]  ;;  %v1146_v27 = vld [vmem:[%s7450_s4 + $0x3c0] sm:$0xff] }
  0xe1   :  { %1276 = vmatprep.subr.mxu1 %v1087_v28  ;;  %1321 = vmatprep.subr.mxu0 %v1113_v29  ;;  %v414_v28 = vlaneseq  ;;  %v1145_v29 = vld [vmem:[%s7450_s4 + $0x3b8] sm:$0xff] }
  0xe2   :  { %1277 = vmatpush2.msra.mxu1 %v1086_v30  ;;  %1322 = vmatpush1.msra.mxu0 %v1112_v31  ;;  %v1144_v30 = vld [vmem:[%s7450_s4 + $0x3b0] sm:$0xff]  ;;  %v1143_v31 = vld [vmem:[%s7450_s4 + $0x3a8] sm:$0xff] }
  0xe3   :  { %1278 = vmatprep.subr.mxu1 %v1085_v32  ;;  %1323 = vmatprep.subr.mxu0 %v1111_v33  ;;  %v1142_v32 = vld [vmem:[%s7450_s4 + $0x3a0] sm:$0xff]  ;;  %v5023_v33 = vshrl.u32 %v414_v28, 7  ;;  %v1163_v28 = vld [vmem:[%s7450_s4 + $0x448] sm:$0xff] }
  0xe4   :  { %1279 = vmatpush2.msra.mxu1 %v1084_v34  ;;  %1324 = vmatpush1.msra.mxu0 %v1110_v35  ;;  %v1141_v34 = vld [vmem:[%s7450_s4 + $0x398] sm:$0xff]  ;;  %v1140_v35 = vld [vmem:[%s7450_s4 + $0x390] sm:$0xff] }
  0xe5   :  { %1280 = vmatprep.subr.mxu1 %v1083_v36  ;;  %1325 = vmatprep.subr.mxu0 %v1109_v37  ;;  %v1139_v36 = vld [vmem:[%s7450_s4 + $0x388] sm:$0xff]  ;;  %v1138_v37 = vld [vmem:[%s7450_s4 + $0x380] sm:$0xff] }
  0xe6   :  { %1281 = vmatpush2.msra.mxu1 %v1082_v1  ;;  %1326 = vmatpush1.msra.mxu0 %v1108_v3  ;;  %v5038_v1 = vsub.s32 0, %v5023_v33  ;;  %v1137_v3 = vld [vmem:[%s7450_s4 + $0x378] sm:$0xff] }
  0xe7   :  { %1282 = vmatprep.subr.mxu1 %v1081_v38  ;;  %1327 = vmatprep.subr.mxu0 %v1107_v9  ;;  %v5046_v38 = vld [vmem:[%s7449_s3] sm:$0x7f]  ;;  %v1136_v9 = vld [vmem:[%s7450_s4 + $0x370] sm:$0xff] }
  0xe8   :  { %1283 = vmatpush2.msra.mxu1 %v1080_v39  ;;  %1328 = vmatpush1.msra.mxu0 %v1106_v40  ;;  %v5052_v39 = vsub.s32 1, %v5023_v33  ;;  %v1135_v40 = vld [vmem:[%s7450_s4 + $0x368] sm:$0xff] }
  0xe9   :  { %1284 = vmatprep.subr.mxu1 %v1079_v12  ;;  %1329 = vmatprep.subr.mxu0 %v1105_v41  ;;  %v1134_v12 = vld [vmem:[%s7450_s4 + $0x360] sm:$0xff]  ;;  %v417_v41 = vrot.slane %v5046_v38, %v5038_v1 }
  0xea   :  { %1285 = vmatpush2.msra.mxu1 %v1078_v42  ;;  %1330 = vmatpush1.msra.mxu0 %v1104_v43  ;;  %v1133_v42 = vld [vmem:[%s7450_s4 + $0x358] sm:$0xff]  ;;  %v1132_v43 = vld [vmem:[%s7450_s4 + $0x350] sm:$0xff] }
  0xeb   :  { %1286 = vmatprep.subr.mxu1 %v1077_v44  ;;  %1331 = vmatprep.subr.mxu0 %v1103_v45  ;;  %v421_v44 = vrot.slane %v5046_v38, %v5052_v39  ;;  %v1131_v45 = vld [vmem:[%s7450_s4 + $0x348] sm:$0xff] }
  0xec   :  { %1287 = vmatpush2.msra.mxu1 %v1076_v46  ;;  %1332 = vmatpush1.msra.mxu0 %v1102_v47 }
  0xed   :  { %1288 = vmatprep.subr.mxu1 %v1075_v48  ;;  %1333 = vmatprep.subr.mxu0 %v1101_v49  ;;  %v1130_v48 = vld [vmem:[%s7450_s4 + $0x340] sm:$0xff] }
  0xee   :  { %1289 = vmatpush2.msra.mxu1 %v1074_v50  ;;  %1334 = vmatpush1.msra.mxu0 %v1100_v51  ;;  %v1129_v50 = vld [vmem:[%s7450_s4 + $0x338] sm:$0xff] }
  0xef   :  { %1290 = vmatprep.subr.mxu1 %v1073_v52  ;;  %1335 = vmatprep.subr.mxu0 %v1099_v53  ;;  %v1128_v52 = vld [vmem:[%s7450_s4 + $0x330] sm:$0xff] }
  0xf0   :  { %1291 = vmatpush2.msra.mxu1 %v1072_v54  ;;  %1336 = vmatpush1.msra.mxu0 %v1098_v55  ;;  %v1127_v54 = vld [vmem:[%s7450_s4 + $0x328] sm:$0xff] }
  0xf1   :  { %1292 = vmatprep.subr.mxu1 %v1071_v56  ;;  %1337 = vmatprep.subr.mxu0 %v1097_v57  ;;  %v590_v46 = vpop.f32.mrf.mxu1  ;;  %v1126_v57 = vld [vmem:[%s7450_s4 + $0x320] sm:$0xff] }
  0xf2   :  { %1293 = vmatpush2.msra.mxu1 %v1070_v58  ;;  %1338 = vmatpush1.msra.mxu0 %v1096_v59  ;;  %v1125_v59 = vld [vmem:[%s7450_s4 + $0x318] sm:$0xff] }
  0xf3   :  { %1294 = vmatprep.subr.mxu1 %v1069_v60  ;;  %1339 = vmatprep.subr.mxu0 %v1095_v61  ;;  %v592_v55 = vpop.f32.mrf.mxu1  ;;  %v1124_v60 = vld [vmem:[%s7450_s4 + $0x310] sm:$0xff] }
  0xf4   :  { %1295 = vmatpush2.msra.mxu1 %v1068_v62  ;;  %1340 = vmatpush1.msra.mxu0 %v1094_v63  ;;  %v1123_v62 = vld [vmem:[%s7450_s4 + $0x308] sm:$0xff] }
  0xf5   :  { %1296 = vmatprep.subr.mxu1 %v1067_v0  ;;  %1341 = vmatprep.subr.mxu0 %v1093_v2  ;;  %v1122_v0 = vld [vmem:[%s7450_s4 + $0x300] sm:$0xff]  ;;  %v1184_v2 = vld [vmem:[%s7450_s4 + $0x4f0] sm:$0xff] }
  0xf6   :  { %1297 = vmatpush2.msra.mxu1 %v1066_v4  ;;  %1342 = vmatpush1.msra.mxu0 %v1092_v5  ;;  %v1183_v4 = vld [vmem:[%s7450_s4 + $0x4e8] sm:$0xff]  ;;  %v1225_v5 = vld [vmem:[%s7450_s4 + $0x638] sm:$0xff] }
  0xf7   :  { %1298 = vmatprep.subr.mxu1 %v1065_v6  ;;  %1343 = vmatprep.subr.mxu0 %v1091_v7  ;;  %v1182_v6 = vld [vmem:[%s7450_s4 + $0x4e0] sm:$0xff]  ;;  %v1181_v7 = vld [vmem:[%s7450_s4 + $0x4d8] sm:$0xff] }
  0xf8   :  { %1299 = vmatpush2.msra.mxu1 %v1064_v8  ;;  %1344 = vmatpush1.msra.mxu0 %v1090_v10  ;;  %v1180_v8 = vld [vmem:[%s7450_s4 + $0x4d0] sm:$0xff]  ;;  %v1179_v10 = vld [vmem:[%s7450_s4 + $0x4c8] sm:$0xff] }
  0xf9   :  { %1300 = vmatprep.subr.mxu1 %v1063_v11  ;;  %1345 = vmatprep.subr.mxu0 %v1153_v13  ;;  %v1178_v11 = vld [vmem:[%s7450_s4 + $0x4c0] sm:$0xff]  ;;  %v1177_v13 = vld [vmem:[%s7450_s4 + $0x4b8] sm:$0xff] }
  0xfa   :  { %1301 = vmatpush2.msra.mxu1 %v1062_v14  ;;  %1346 = vmatpush2.msra.mxu0 %v1152_v15  ;;  %v1176_v14 = vld [vmem:[%s7450_s4 + $0x4b0] sm:$0xff]  ;;  %v1175_v15 = vld [vmem:[%s7450_s4 + $0x4a8] sm:$0xff] }
  0xfb   :  { %1302 = vmatprep.subr.mxu1 %v1061_v16  ;;  %1347 = vmatprep.subr.mxu0 %v1151_v17  ;;  %v1174_v16 = vld [vmem:[%s7450_s4 + $0x4a0] sm:$0xff]  ;;  %v1173_v17 = vld [vmem:[%s7450_s4 + $0x498] sm:$0xff] }
  0xfc   :  { %1303 = vmatpush2.msra.mxu1 %v1060_v18  ;;  %1348 = vmatpush2.msra.mxu0 %v1150_v19  ;;  %v1172_v18 = vld [vmem:[%s7450_s4 + $0x490] sm:$0xff]  ;;  %v1171_v19 = vld [vmem:[%s7450_s4 + $0x488] sm:$0xff] }
  0xfd   :  { %1304 = vmatprep.subr.mxu1 %v1059_v20  ;;  %1349 = vmatprep.subr.mxu0 %v1149_v21  ;;  %v1170_v20 = vld [vmem:[%s7450_s4 + $0x480] sm:$0xff]  ;;  %v1169_v21 = vld [vmem:[%s7450_s4 + $0x478] sm:$0xff] }
  0xfe   :  { %1305 = vmatpush2.msra.mxu1 %v1058_v22  ;;  %1350 = vmatpush2.msra.mxu0 %v1148_v23  ;;  %v1168_v22 = vld [vmem:[%s7450_s4 + $0x470] sm:$0xff]  ;;  %v1167_v23 = vld [vmem:[%s7450_s4 + $0x468] sm:$0xff] }
  0xff   :  { %1351 = vmatprep.subr.mxu0 %v1147_v25  ;;  %1384 = vmatprep.subr.mxu1 %v1185_v26  ;;  %v1166_v25 = vld [vmem:[%s7450_s4 + $0x460] sm:$0xff]  ;;  %v1165_v26 = vld [vmem:[%s7450_s4 + $0x458] sm:$0xff] }
 0x100   :  { %1352 = vmatpush2.msra.mxu0 %v1146_v27  ;;  %v1164_v27 = vld [vmem:[%s7450_s4 + $0x450] sm:$0xff] }
 0x101   :  { %1353 = vmatprep.subr.mxu0 %v1145_v29  ;;  %v1162_v29 = vld [vmem:[%s7450_s4 + $0x440] sm:$0xff] }
 0x102   :  { %1354 = vmatpush2.msra.mxu0 %v1144_v30  ;;  %v5173_v30 = vsub.s32 2, %v5023_v33 }
 0x103   :  { %1355 = vmatprep.subr.mxu0 %v1143_v31  ;;  %v1161_v31 = vld [vmem:[%s7450_s4 + $0x438] sm:$0xff] }
 0x104   :  { %1356 = vmatpush2.msra.mxu0 %v1142_v32  ;;  %v1160_v32 = vld [vmem:[%s7450_s4 + $0x430] sm:$0xff] }
 0x105   :  { %1357 = vmatprep.subr.mxu0 %v1141_v34  ;;  %v5182_v34 = vsub.s32 3, %v5023_v33 }
 0x106   :  { %1358 = vmatpush2.msra.mxu0 %v1140_v35  ;;  %v1159_v35 = vld [vmem:[%s7450_s4 + $0x428] sm:$0xff] }
 0x107   :  { %1359 = vmatprep.subr.mxu0 %v1139_v36  ;;  %v1158_v36 = vld [vmem:[%s7450_s4 + $0x420] sm:$0xff] }
 0x108   :  { %1360 = vmatpush2.msra.mxu0 %v1138_v37  ;;  %v425_v37 = vrot.slane %v5046_v38, %v5173_v30 }
 0x109   :  { %1361 = vmatprep.subr.mxu0 %v1137_v3  ;;  %v1157_v3 = vld [vmem:[%s7450_s4 + $0x418] sm:$0xff] }
 0x10a   :  { %1362 = vmatpush2.msra.mxu0 %v1136_v9  ;;  %v1156_v9 = vld [vmem:[%s7450_s4 + $0x410] sm:$0xff] }
 0x10b   :  { %1363 = vmatprep.subr.mxu0 %v1135_v40  ;;  %v429_v40 = vrot.slane %v5046_v38, %v5182_v34 }
 0x10c   :  { %1364 = vmatpush2.msra.mxu0 %v1134_v12  ;;  %v1155_v12 = vld [vmem:[%s7450_s4 + $0x408] sm:$0xff] }
 0x10d   :  { %v519_v47 = vpop.f32.mrf.mxu0  ;;  %1365 = vmatprep.subr.mxu0 %v1133_v42 }
 0x10e   :  { %v520_v49 = vadd.f32 %v519_v47, %v417_v41  ;;  %1366 = vmatpush2.msra.mxu0 %v1132_v43  ;;  %v1154_v43 = vld [vmem:[%s7450_s4 + $0x400] sm:$0xff]  ;;  %v1216_v47 = vld [vmem:[%s7450_s4 + $0x5f0] sm:$0xff] }
 0x10f   :  { %v521_v51 = vpop.f32.mrf.mxu0  ;;  %1367 = vmatprep.subr.mxu0 %v1131_v45  ;;  %v1217_v45 = vld [vmem:[%s7450_s4 + $0x5f8] sm:$0xff] }
 0x110   :  { %v522_v53 = vadd.f32 %v521_v51, %v421_v44  ;;  %1368 = vmatpush2.msra.mxu0 %v1130_v48  ;;  %v591_v56 = vadd.f32 %v590_v46, %v520_v49  ;;  %v1215_v49 = vld [vmem:[%s7450_s4 + $0x5e8] sm:$0xff] }
 0x111   :  { %1369 = vmatprep.subr.mxu0 %v1129_v50 }
 0x112   :  { %v593_v58 = vadd.f32 %v592_v55, %v522_v53  ;;  %1370 = vmatpush2.msra.mxu0 %v1128_v52  ;;  %v1019_v63 = vmax.f32 %v591_v56, 0.0  ;;  %v1214_v52 = vld [vmem:[%s7450_s4 + $0x5e0] sm:$0xff]  ;;  %v1212_v55 = vld [vmem:[%s7450_s4 + $0x5d0] sm:$0xff] }
 0x113   :  { %1371 = vmatprep.subr.mxu0 %v1127_v54  ;;  %v1213_v54 = vld [vmem:[%s7450_s4 + $0x5d8] sm:$0xff] }
 0x114   :  { %v1020_v61 = vmax.f32 %v593_v58, 0.0  ;;  %1372 = vmatpush2.msra.mxu0 %v1126_v57  ;;  %v1211_v57 = vld [vmem:[%s7450_s4 + $0x5c8] sm:$0xff] }
 0x115   :  { %1373 = vmatprep.subr.mxu0 %v1125_v59  ;;  %v1210_v59 = vld [vmem:[%s7450_s4 + $0x5c0] sm:$0xff] }
 0x116   :  { %1306 = vmatprep.mubr.f32.mxu1 %v1020_v61  ;;  %1374 = vmatpush2.msra.mxu0 %v1124_v60  ;;  %v1224_v60 = vld [vmem:[%s7450_s4 + $0x630] sm:$0xff]  ;;  %v1209_v61 = vld [vmem:[%s7450_s4 + $0x5b8] sm:$0xff] }
 0x117   :  { %1307 = vmatmul.mubr.f32.vlgmr.msra.gmra.mxu1 %v1019_v63  ;;  %1375 = vmatprep.subr.mxu0 %v1123_v62  ;;  %v1223_v62 = vld [vmem:[%s7450_s4 + $0x628] sm:$0xff]  ;;  %v1208_v63 = vld [vmem:[%s7450_s4 + $0x5b0] sm:$0xff] }
 0x118   :  { %1376 = vmatpush2.msra.mxu0 %v1122_v0  ;;  %1385 = vmatpush1.msra.mxu1 %v1184_v2  ;;  %v1222_v0 = vld [vmem:[%s7450_s4 + $0x620] sm:$0xff]  ;;  %v1207_v2 = vld [vmem:[%s7450_s4 + $0x5a8] sm:$0xff] }
 0x119   :  { %1386 = vmatprep.subr.mxu1 %v1183_v4  ;;  %1479 = vmatprep.subr.mxu0 %v1225_v5  ;;  %v1221_v4 = vld [vmem:[%s7450_s4 + $0x618] sm:$0xff]  ;;  %v1206_v5 = vld [vmem:[%s7450_s4 + $0x5a0] sm:$0xff] }
 0x11a   :  { %1387 = vmatpush1.msra.mxu1 %v1182_v6  ;;  %v1220_v6 = vld [vmem:[%s7450_s4 + $0x610] sm:$0xff] }
 0x11b   :  { %1388 = vmatprep.subr.mxu1 %v1181_v7  ;;  %v1205_v7 = vld [vmem:[%s7450_s4 + $0x598] sm:$0xff] }
 0x11c   :  { %1389 = vmatpush1.msra.mxu1 %v1180_v8  ;;  %v1219_v8 = vld [vmem:[%s7450_s4 + $0x608] sm:$0xff] }
 0x11d   :  { %1390 = vmatprep.subr.mxu1 %v1179_v10  ;;  %v1204_v10 = vld [vmem:[%s7450_s4 + $0x590] sm:$0xff] }
 0x11e   :  { %1391 = vmatpush1.msra.mxu1 %v1178_v11  ;;  %v1218_v11 = vld [vmem:[%s7450_s4 + $0x600] sm:$0xff] }
 0x11f   :  { %1392 = vmatprep.subr.mxu1 %v1177_v13  ;;  %v1203_v13 = vld [vmem:[%s7450_s4 + $0x588] sm:$0xff] }
 0x120   :  { %1393 = vmatpush1.msra.mxu1 %v1176_v14  ;;  %v1202_v14 = vld [vmem:[%s7450_s4 + $0x580] sm:$0xff] }
 0x121   :  { %1394 = vmatprep.subr.mxu1 %v1175_v15  ;;  %v1201_v15 = vld [vmem:[%s7450_s4 + $0x578] sm:$0xff] }
 0x122   :  { %1395 = vmatpush1.msra.mxu1 %v1174_v16  ;;  %v1200_v16 = vld [vmem:[%s7450_s4 + $0x570] sm:$0xff] }
 0x123   :  { %1396 = vmatprep.subr.mxu1 %v1173_v17  ;;  %v1199_v17 = vld [vmem:[%s7450_s4 + $0x568] sm:$0xff] }
 0x124   :  { %1397 = vmatpush1.msra.mxu1 %v1172_v18  ;;  %v1198_v18 = vld [vmem:[%s7450_s4 + $0x560] sm:$0xff] }
 0x125   :  { %1398 = vmatprep.subr.mxu1 %v1171_v19  ;;  %v1197_v19 = vld [vmem:[%s7450_s4 + $0x558] sm:$0xff] }
 0x126   :  { %1399 = vmatpush1.msra.mxu1 %v1170_v20  ;;  %v1196_v20 = vld [vmem:[%s7450_s4 + $0x550] sm:$0xff] }
 0x127   :  { %1400 = vmatprep.subr.mxu1 %v1169_v21  ;;  %v1195_v21 = vld [vmem:[%s7450_s4 + $0x548] sm:$0xff] }
 0x128   :  { %1401 = vmatpush1.msra.mxu1 %v1168_v22  ;;  %v1194_v22 = vld [vmem:[%s7450_s4 + $0x540] sm:$0xff] }
 0x129   :  { %1402 = vmatprep.subr.mxu1 %v1167_v23  ;;  %v1193_v23 = vld [vmem:[%s7450_s4 + $0x538] sm:$0xff] }
 0x12a   :  { %1403 = vmatpush1.msra.mxu1 %v1166_v25  ;;  %v1192_v25 = vld [vmem:[%s7450_s4 + $0x530] sm:$0xff] }
 0x12b   :  { %1404 = vmatprep.subr.mxu1 %v1165_v26  ;;  %v1191_v26 = vld [vmem:[%s7450_s4 + $0x528] sm:$0xff] }
 0x12c   :  { %1405 = vmatpush1.msra.mxu1 %v1164_v27  ;;  %v1190_v27 = vld [vmem:[%s7450_s4 + $0x520] sm:$0xff] }
 0x12d   :  { %1406 = vmatprep.subr.mxu1 %v1163_v28  ;;  %v1189_v28 = vld [vmem:[%s7450_s4 + $0x518] sm:$0xff] }
 0x12e   :  { %1407 = vmatpush1.msra.mxu1 %v1162_v29  ;;  %v1188_v29 = vld [vmem:[%s7450_s4 + $0x510] sm:$0xff] }
 0x12f   :  { %1408 = vmatprep.subr.mxu1 %v1161_v31  ;;  %v1187_v31 = vld [vmem:[%s7450_s4 + $0x508] sm:$0xff] }
 0x130   :  { %1409 = vmatpush1.msra.mxu1 %v1160_v32  ;;  %v1186_v32 = vld [vmem:[%s7450_s4 + $0x500] sm:$0xff] }
 0x131   :  { %1410 = vmatprep.subr.mxu1 %v1159_v35  ;;  %v432_v35 = vsub.s32 4, %v5023_v33 }
 0x132   :  { %1411 = vmatpush1.msra.mxu1 %v1158_v36  ;;  %v661_v41 = vpop.f32.mrf.mxu1  ;;  %v436_v36 = vsub.s32 5, %v5023_v33 }
 0x133   :  { %v732_v42 = vpop.f32.mrf.mxu0  ;;  %1412 = vmatprep.subr.mxu1 %v1157_v3  ;;  %v662_v44 = vadd.f32 %v661_v41, %v425_v37  ;;  %v433_v37 = vrot.slane %v5046_v38, %v432_v35 }
 0x134   :  { %1413 = vmatpush1.msra.mxu1 %v1156_v9  ;;  %v663_v46 = vpop.f32.mrf.mxu1  ;;  %v437_v3 = vrot.slane %v5046_v38, %v436_v36 }
 0x135   :  { %1414 = vmatprep.subr.mxu1 %v1155_v12  ;;  %v664_v48 = vadd.f32 %v663_v46, %v429_v40  ;;  %v733_v50 = vadd.f32 %v732_v42, %v662_v44  ;;  %v734_v51 = vpop.f32.mrf.mxu0 }
 0x136   :  { %1415 = vmatpush1.msra.mxu1 %v1154_v43 }
 0x137   :  { %1416 = vmatprep.subr.mxu1 %v1217_v45  ;;  %v735_v53 = vadd.f32 %v734_v51, %v664_v48  ;;  %v1021_v58 = vmax.f32 %v733_v50, 0.0  ;;  %v1649_v48 = vld [vmem:[%s7454_s8 + $0x78] sm:$0xff]  ;;  %v1647_v50 = vld [vmem:[%s7454_s8 + $0x68] sm:$0xff]  ;;  %v1646_v51 = vld [vmem:[%s7454_s8 + $0x60] sm:$0xff] }
 0x138   :  { %1417 = vmatpush2.msra.mxu1 %v1216_v47 }
 0x139   :  { %1418 = vmatprep.subr.mxu1 %v1215_v49  ;;  %v1022_v56 = vmax.f32 %v735_v53, 0.0  ;;  %v1648_v49 = vld [vmem:[%s7454_s8 + $0x70] sm:$0xff] }
 0x13a   :  { %1419 = vmatpush2.msra.mxu1 %v1214_v52  ;;  %v1645_v52 = vld [vmem:[%s7454_s8 + $0x58] sm:$0xff] }
 0x13b   :  { %1420 = vmatprep.subr.mxu1 %v1213_v54  ;;  %1377 = vmatprep.mubr.f32.mxu0 %v1022_v56  ;;  %v440_v54 = vsub.s32 6, %v5023_v33  ;;  %v2743_v33 = vld [vmem:[%s7460_s14 + $0xc40] sm:$0xff] }
 0x13c   :  { %1421 = vmatpush2.msra.mxu1 %v1212_v55  ;;  %1378 = vmatmul.mubr.f32.vlgmr.msra.gmra.mxu0 %v1021_v58 }
 0x13d   :  { %1422 = vmatprep.subr.mxu1 %v1211_v57  ;;  %1480 = vmatpush1.msra.mxu0 %v1224_v60  ;;  %v441_v57 = vrot.slane %v5046_v38, %v440_v54  ;;  %v1541_v38 = vld [vmem:[%s7452_s6 + $0x68] sm:$0xff] }
 0x13e   :  { %1423 = vmatpush2.msra.mxu1 %v1210_v59  ;;  %1481 = vmatprep.subr.mxu0 %v1223_v62 }
 0x13f   :  { %1424 = vmatprep.subr.mxu1 %v1209_v61  ;;  %1482 = vmatpush1.msra.mxu0 %v1222_v0  ;;  %v1542_v0 = vld [vmem:[%s7452_s6 + $0x70] sm:$0xff] }
 0x140   :  { %1425 = vmatpush2.msra.mxu1 %v1208_v63  ;;  %1483 = vmatprep.subr.mxu0 %v1221_v4  ;;  %v1543_v63 = vld [vmem:[%s7452_s6 + $0x78] sm:$0xff] }
 0x141   :  { %1426 = vmatprep.subr.mxu1 %v1207_v2  ;;  %1484 = vmatpush1.msra.mxu0 %v1220_v6  ;;  %v1540_v2 = vld [vmem:[%s7452_s6 + $0x60] sm:$0xff]  ;;  %v1539_v4 = vld [vmem:[%s7452_s6 + $0x58] sm:$0xff]  ;;  %v1644_v6 = vld [vmem:[%s7454_s8 + $0x50] sm:$0xff] }
 0x142   :  { %1427 = vmatpush2.msra.mxu1 %v1206_v5  ;;  %1485 = vmatprep.subr.mxu0 %v1219_v8  ;;  %v1538_v5 = vld [vmem:[%s7452_s6 + $0x50] sm:$0xff]  ;;  %v1643_v8 = vld [vmem:[%s7454_s8 + $0x48] sm:$0xff] }
 0x143   :  { %1428 = vmatprep.subr.mxu1 %v1205_v7  ;;  %1486 = vmatpush1.msra.mxu0 %v1218_v11  ;;  %v1537_v7 = vld [vmem:[%s7452_s6 + $0x48] sm:$0xff]  ;;  %v1642_v11 = vld [vmem:[%s7454_s8 + $0x40] sm:$0xff] }
 0x144   :  { %1429 = vmatpush2.msra.mxu1 %v1204_v10  ;;  %1519 = vmatprep.mubr.f32.mxu0 %v3486_v24  ;;  %v1536_v10 = vld [vmem:[%s7452_s6 + $0x40] sm:$0xff] }
 0x145   :  { %1430 = vmatprep.subr.mxu1 %v1203_v13  ;;  %1564 = vmatprep.subr.mxu0 %v3486_v24  ;;  %v1535_v13 = vld [vmem:[%s7452_s6 + $0x38] sm:$0xff] }
 0x146   :  { %1431 = vmatpush2.msra.mxu1 %v1202_v14  ;;  %v1641_v14 = vld [vmem:[%s7454_s8 + $0x38] sm:$0xff] }
 0x147   :  { %1432 = vmatprep.subr.mxu1 %v1201_v15  ;;  %v1534_v15 = vld [vmem:[%s7452_s6 + $0x30] sm:$0xff] }
 0x148   :  { %1433 = vmatpush2.msra.mxu1 %v1200_v16  ;;  %v1640_v16 = vld [vmem:[%s7454_s8 + $0x30] sm:$0xff] }
 0x149   :  { %1434 = vmatprep.subr.mxu1 %v1199_v17  ;;  %v1533_v17 = vld [vmem:[%s7452_s6 + $0x28] sm:$0xff] }
 0x14a   :  { %1435 = vmatpush2.msra.mxu1 %v1198_v18  ;;  %v1639_v18 = vld [vmem:[%s7454_s8 + $0x28] sm:$0xff] }
 0x14b   :  { %1436 = vmatprep.subr.mxu1 %v1197_v19  ;;  %v1532_v19 = vld [vmem:[%s7452_s6 + $0x20] sm:$0xff] }
 0x14c   :  { %1437 = vmatpush2.msra.mxu1 %v1196_v20  ;;  %v1638_v20 = vld [vmem:[%s7454_s8 + $0x20] sm:$0xff] }
 0x14d   :  { %1438 = vmatprep.subr.mxu1 %v1195_v21  ;;  %v1531_v21 = vld [vmem:[%s7452_s6 + $0x18] sm:$0xff] }
 0x14e   :  { %1439 = vmatpush2.msra.mxu1 %v1194_v22  ;;  %v1637_v22 = vld [vmem:[%s7454_s8 + $0x18] sm:$0xff] }
 0x14f   :  { %1440 = vmatprep.subr.mxu1 %v1193_v23  ;;  %v1530_v23 = vld [vmem:[%s7452_s6 + $0x10] sm:$0xff] }
 0x150   :  { %1441 = vmatpush2.msra.mxu1 %v1192_v25  ;;  %v1636_v25 = vld [vmem:[%s7454_s8 + $0x10] sm:$0xff] }
 0x151   :  { %1442 = vmatprep.subr.mxu1 %v1191_v26  ;;  %v1529_v26 = vld [vmem:[%s7452_s6 + $0x8] sm:$0xff] }
 0x152   :  { %1443 = vmatpush2.msra.mxu1 %v1190_v27  ;;  %v1635_v27 = vld [vmem:[%s7454_s8 + $0x8] sm:$0xff] }
 0x153   :  { %1444 = vmatprep.subr.mxu1 %v1189_v28  ;;  %v1528_v28 = vld [vmem:[%s7452_s6] sm:$0xff] }
 0x154   :  { %1445 = vmatpush2.msra.mxu1 %v1188_v29  ;;  %v1634_v29 = vld [vmem:[%s7454_s8] sm:$0xff] }
 0x155   :  { %1446 = vmatprep.subr.mxu1 %v1187_v31  ;;  %v1552_v31 = vld [vmem:[%s7452_s6 + $0xc0] sm:$0xff] }
 0x156   :  { %1447 = vmatpush2.msra.mxu1 %v1186_v32  ;;  %v1658_v32 = vld [vmem:[%s7454_s8 + $0xc0] sm:$0xff] }
 0x157   :  { %1666 = vmatprep.subr.mxu1 %v3486_v24 }
 0x15a   :  { %v874_v9 = vpop.f32.mrf.mxu1 }
 0x15c   :  { %v876_v43 = vpop.f32.mrf.mxu1 }
 0x174   :  { %v803_v40 = vpop.f32.mrf.mxu0 }
 0x175   :  { %v804_v12 = vadd.f32 %v803_v40, %v433_v37  ;;  %v1551_v37 = vld [vmem:[%s7452_s6 + $0xb8] sm:$0xff]  ;;  %v1656_v40 = vld [vmem:[%s7454_s8 + $0xb0] sm:$0xff] }
 0x176   :  { %v805_v41 = vpop.f32.mrf.mxu0 }
 0x177   :  { %v806_v42 = vadd.f32 %v805_v41, %v437_v3  ;;  %v875_v44 = vadd.f32 %v874_v9, %v804_v12  ;;  %v1657_v3 = vld [vmem:[%s7454_s8 + $0xb8] sm:$0xff]  ;;  %v1550_v9 = vld [vmem:[%s7452_s6 + $0xb0] sm:$0xff]  ;;  %v1549_v12 = vld [vmem:[%s7452_s6 + $0xa8] sm:$0xff] }
 0x178   :  { %v1655_v41 = vld [vmem:[%s7454_s8 + $0xa8] sm:$0xff] }
 0x179   :  { %v877_v45 = vadd.f32 %v876_v43, %v806_v42  ;;  %v1023_v47 = vmax.f32 %v875_v44, 0.0  ;;  %v1548_v42 = vld [vmem:[%s7452_s6 + $0xa0] sm:$0xff]  ;;  %v1547_v44 = vld [vmem:[%s7452_s6 + $0x98] sm:$0xff] }
 0x17a   :  { %v1654_v43 = vld [vmem:[%s7454_s8 + $0xa0] sm:$0xff] }
 0x17b   :  { %v1024_v46 = vmax.f32 %v877_v45, 0.0  ;;  %v1653_v45 = vld [vmem:[%s7454_s8 + $0x98] sm:$0xff] }
 0x17d   :  { %1448 = vmatprep.mubr.f32.mxu1 %v1024_v46  ;;  %v3432_v53 = vpop.f32.mrf.mxu1  ;;  %v1546_v46 = vld [vmem:[%s7452_s6 + $0x90] sm:$0xff] }
 0x17e   :  { %1449 = vmatmul.mubr.f32.vlgmr.msra.gmra.mxu1 %v1023_v47  ;;  %v1652_v47 = vld [vmem:[%s7454_s8 + $0x90] sm:$0xff] }
 0x17f   :  { %1667 = vmatpush1.msra.mxu1 %v1649_v48  ;;  %v3433_v55 = vpop.f32.mrf.mxu1  ;;  %v1545_v48 = vld [vmem:[%s7452_s6 + $0x88] sm:$0xff] }
 0x180   :  { %1668 = vmatprep.subr.mxu1 %v3486_v24  ;;  %v3434_v56 = vadd.f32 %v3433_v55, %v3432_v53  ;;  %v1226_v53 = vld [vmem:[%s7451_s5] sm:$0x3] }
 0x181   :  { %1669 = vmatpush1.msra.mxu1 %v1648_v49  ;;  %v1651_v49 = vld [vmem:[%s7454_s8 + $0x88] sm:$0xff]  ;;  %v1231_v55 = vrot.slane %v1226_v53, %v5038_v1 }
 0x182   :  { %1670 = vmatprep.subr.mxu1 %v3486_v24  ;;  %v946_v58 = vadd.f32 %v3434_v56, %v441_v57 }
 0x183   :  { %1671 = vmatpush1.msra.mxu1 %v1647_v50  ;;  %v1544_v50 = vld [vmem:[%s7452_s6 + $0x80] sm:$0xff] }
 0x184   :  { %1672 = vmatprep.subr.mxu1 %v3486_v24 }
 0x185   :  { %1673 = vmatpush1.msra.mxu1 %v1646_v51  ;;  %v1650_v51 = vld [vmem:[%s7454_s8 + $0x80] sm:$0xff] }
 0x186   :  { %1674 = vmatprep.subr.mxu1 %v3486_v24 }
 0x187   :  { %1675 = vmatpush1.msra.mxu1 %v1645_v52 }
 0x188   :  { %1676 = vmatprep.subr.mxu1 %v3486_v24 }
 0x189   :  { %1677 = vmatpush1.msra.mxu1 %v1644_v6 }
 0x18a   :  { %1678 = vmatprep.subr.mxu1 %v3486_v24 }
 0x18b   :  { %1679 = vmatpush1.msra.mxu1 %v1643_v8 }
 0x18c   :  { %1680 = vmatprep.subr.mxu1 %v3486_v24 }
 0x18d   :  { %1681 = vmatpush1.msra.mxu1 %v1642_v11 }
 0x18e   :  { %1682 = vmatprep.subr.mxu1 %v3486_v24 }
 0x18f   :  { %1683 = vmatpush1.msra.mxu1 %v1641_v14  ;;  %v1748_v14 = vld [vmem:[%s7456_s10 + $0x30] sm:$0x3f] }
 0x190   :  { %1684 = vmatprep.subr.mxu1 %v3486_v24 }
 0x191   :  { %1685 = vmatpush1.msra.mxu1 %v1640_v16  ;;  %v1746_v16 = vld [vmem:[%s7456_s10 + $0x20] sm:$0xff] }
 0x192   :  { %1686 = vmatprep.subr.mxu1 %v3486_v24 }
 0x193   :  { %1687 = vmatpush1.msra.mxu1 %v1639_v18  ;;  %v1744_v18 = vld [vmem:[%s7456_s10 + $0x10] sm:$0xff] }
 0x194   :  { %1688 = vmatprep.subr.mxu1 %v3486_v24 }
 0x195   :  { %1689 = vmatpush1.msra.mxu1 %v1638_v20  ;;  %v1742_v20 = vld [vmem:[%s7456_s10] sm:$0xff] }
 0x196   :  { %1690 = vmatprep.subr.mxu1 %v3486_v24 }
 0x197   :  { %1691 = vmatpush1.msra.mxu1 %v1637_v22  ;;  %v1954_v22 = vld [vmem:[%s7458_s12 + $0x360] sm:$0xff] }
 0x198   :  { %v1015_v59 = vpop.f32.mrf.mxu0  ;;  %1692 = vmatprep.subr.mxu1 %v3486_v24 }
 0x199   :  { %v1016_v60 = vadd.f32 %v1015_v59, %v946_v58  ;;  %1693 = vmatpush1.msra.mxu1 %v1636_v25  ;;  %v1235_v58 = vrot.slane %v1226_v53, %v5052_v39  ;;  %v1947_v25 = vld [vmem:[%s7458_s12 + $0x328] sm:$0xff] }
 0x19a   :  { %v1017_v61 = vpop.f32.mrf.mxu0  ;;  %1694 = vmatprep.subr.mxu1 %v3486_v24  ;;  %v1863_v53 = vld [vmem:[%s7458_s12 + $0x88] sm:$0xff] }
 0x19b   :  { %v1025_v62 = vmax.f32 %v1016_v60, 0.0  ;;  %1695 = vmatpush1.msra.mxu1 %v1635_v27  ;;  %v1940_v27 = vld [vmem:[%s7458_s12 + $0x2f0] sm:$0xff] }
 0x19c   :  { %1696 = vmatprep.subr.mxu1 %v3486_v24 }
 0x19d   :  { %3386 = vmatmul.mubr.msk.f32.vlgmr.msra.gmra.mxu0 %vm1238_vm1, %v1025_v62  ;;  %1697 = vmatpush1.msra.mxu1 %v1634_v29  ;;  %v1933_v29 = vld [vmem:[%s7458_s12 + $0x2b8] sm:$0xff] }
 0x19e   :  { %1565 = vmatpush1.msra.mxu0 %v1543_v63  ;;  %1712 = vmatprep.subr.mxu1 %v3486_v24 }
 0x19f   :  { %1566 = vmatprep.subr.mxu0 %v3486_v24  ;;  %1713 = vmatpush2.msra.mxu1 %v1658_v32  ;;  %v1926_v32 = vld [vmem:[%s7458_s12 + $0x280] sm:$0xff] }
 0x1a0   :  { %1567 = vmatpush1.msra.mxu0 %v1542_v0  ;;  %1714 = vmatprep.subr.mxu1 %v3486_v24 }
 0x1a1   :  { %1568 = vmatprep.subr.mxu0 %v3486_v24  ;;  %1715 = vmatpush2.msra.mxu1 %v1657_v3  ;;  %v1919_v3 = vld [vmem:[%s7458_s12 + $0x248] sm:$0xff] }
 0x1a2   :  { %1569 = vmatpush1.msra.mxu0 %v1541_v38  ;;  %1716 = vmatprep.subr.mxu1 %v3486_v24 }
 0x1a3   :  { %1570 = vmatprep.subr.mxu0 %v3486_v24  ;;  %1717 = vmatpush2.msra.mxu1 %v1656_v40  ;;  %v1912_v40 = vld [vmem:[%s7458_s12 + $0x210] sm:$0xff] }
 0x1a4   :  { %1571 = vmatpush1.msra.mxu0 %v1540_v2  ;;  %1718 = vmatprep.subr.mxu1 %v3486_v24 }
 0x1a5   :  { %1572 = vmatprep.subr.mxu0 %v3486_v24  ;;  %1719 = vmatpush2.msra.mxu1 %v1655_v41  ;;  %v1905_v41 = vld [vmem:[%s7458_s12 + $0x1d8] sm:$0xff] }
 0x1a6   :  { %1573 = vmatpush1.msra.mxu0 %v1539_v4  ;;  %1720 = vmatprep.subr.mxu1 %v3486_v24 }
 0x1a7   :  { %1574 = vmatprep.subr.mxu0 %v3486_v24  ;;  %1721 = vmatpush2.msra.mxu1 %v1654_v43  ;;  %v1898_v43 = vld [vmem:[%s7458_s12 + $0x1a0] sm:$0xff] }
 0x1a8   :  { %1575 = vmatpush1.msra.mxu0 %v1538_v5  ;;  %1722 = vmatprep.subr.mxu1 %v3486_v24 }
 0x1a9   :  { %1576 = vmatprep.subr.mxu0 %v3486_v24  ;;  %1723 = vmatpush2.msra.mxu1 %v1653_v45  ;;  %v1891_v45 = vld [vmem:[%s7458_s12 + $0x168] sm:$0xff] }
 0x1aa   :  { %1577 = vmatpush1.msra.mxu0 %v1537_v7  ;;  %1724 = vmatprep.subr.mxu1 %v3486_v24 }
 0x1ab   :  { %1578 = vmatprep.subr.mxu0 %v3486_v24  ;;  %1725 = vmatpush2.msra.mxu1 %v1652_v47  ;;  %v1884_v47 = vld [vmem:[%s7458_s12 + $0x130] sm:$0xff] }
 0x1ac   :  { %1579 = vmatpush1.msra.mxu0 %v1536_v10  ;;  %1726 = vmatprep.subr.mxu1 %v3486_v24 }
 0x1ad   :  { %1580 = vmatprep.subr.mxu0 %v3486_v24  ;;  %1727 = vmatpush2.msra.mxu1 %v1651_v49  ;;  %v1877_v49 = vld [vmem:[%s7458_s12 + $0xf8] sm:$0xff] }
 0x1ae   :  { %1581 = vmatpush1.msra.mxu0 %v1535_v13  ;;  %1728 = vmatprep.subr.mxu1 %v3486_v24  ;;  %v1749_v13 = vld [vmem:[%s7456_s10 + $0x38] sm:$0x3f] }
 0x1af   :  { %1582 = vmatprep.subr.mxu0 %v3486_v24  ;;  %1729 = vmatpush2.msra.mxu1 %v1650_v51  ;;  %v1870_v51 = vld [vmem:[%s7458_s12 + $0xc0] sm:$0xff] }
 0x1b0   :  { %1583 = vmatpush1.msra.mxu0 %v1534_v15  ;;  %v1747_v15 = vld [vmem:[%s7456_s10 + $0x28] sm:$0xff]  ;;  %2132 = vmatprep.subr.mxu1 %v1954_v22 }
 0x1b1   :  { %1584 = vmatprep.subr.mxu0 %v3486_v24 }
 0x1b2   :  { %1585 = vmatpush1.msra.mxu0 %v1533_v17  ;;  %v1745_v17 = vld [vmem:[%s7456_s10 + $0x18] sm:$0xff] }
 0x1b3   :  { %1586 = vmatprep.subr.mxu0 %v3486_v24 }
 0x1b4   :  { %1587 = vmatpush1.msra.mxu0 %v1532_v19  ;;  %v1743_v19 = vld [vmem:[%s7456_s10 + $0x8] sm:$0xff] }
 0x1b5   :  { %1588 = vmatprep.subr.mxu0 %v3486_v24 }
 0x1b6   :  { %1589 = vmatpush1.msra.mxu0 %v1531_v21  ;;  %v1952_v21 = vld [vmem:[%s7458_s12 + $0x350] sm:$0xff] }
 0x1b7   :  { %1590 = vmatprep.subr.mxu0 %v3486_v24 }
 0x1b8   :  { %1591 = vmatpush1.msra.mxu0 %v1530_v23  ;;  %v1953_v23 = vld [vmem:[%s7458_s12 + $0x358] sm:$0xff] }
 0x1b9   :  { %1592 = vmatprep.subr.mxu0 %v3486_v24 }
 0x1ba   :  { %1593 = vmatpush1.msra.mxu0 %v1529_v26  ;;  %v1946_v26 = vld [vmem:[%s7458_s12 + $0x320] sm:$0xff] }
 0x1bb   :  { %1594 = vmatprep.subr.mxu0 %v3486_v24 }
 0x1bc   :  { %1595 = vmatpush1.msra.mxu0 %v1528_v28  ;;  %v1939_v28 = vld [vmem:[%s7458_s12 + $0x2e8] sm:$0xff] }
 0x1bd   :  { %1610 = vmatprep.subr.mxu0 %v3486_v24 }
 0x1be   :  { %1611 = vmatpush2.msra.mxu0 %v1552_v31  ;;  %v1932_v31 = vld [vmem:[%s7458_s12 + $0x2b0] sm:$0xff] }
 0x1bf   :  { %1612 = vmatprep.subr.mxu0 %v3486_v24 }
 0x1c0   :  { %1613 = vmatpush2.msra.mxu0 %v1551_v37  ;;  %v1925_v37 = vld [vmem:[%s7458_s12 + $0x278] sm:$0xff] }
 0x1c1   :  { %1614 = vmatprep.subr.mxu0 %v3486_v24 }
 0x1c2   :  { %1615 = vmatpush2.msra.mxu0 %v1550_v9  ;;  %v1918_v9 = vld [vmem:[%s7458_s12 + $0x240] sm:$0xff] }
 0x1c3   :  { %1616 = vmatprep.subr.mxu0 %v3486_v24 }
 0x1c4   :  { %1617 = vmatpush2.msra.mxu0 %v1549_v12  ;;  %v1911_v12 = vld [vmem:[%s7458_s12 + $0x208] sm:$0xff] }
 0x1c5   :  { %1618 = vmatprep.subr.mxu0 %v3486_v24 }
 0x1c6   :  { %1619 = vmatpush2.msra.mxu0 %v1548_v42  ;;  %v1904_v42 = vld [vmem:[%s7458_s12 + $0x1d0] sm:$0xff] }
 0x1c7   :  { %1620 = vmatprep.subr.mxu0 %v3486_v24 }
 0x1c8   :  { %1621 = vmatpush2.msra.mxu0 %v1547_v44  ;;  %v1897_v44 = vld [vmem:[%s7458_s12 + $0x198] sm:$0xff] }
 0x1c9   :  { %1622 = vmatprep.subr.mxu0 %v3486_v24 }
 0x1ca   :  { %1623 = vmatpush2.msra.mxu0 %v1546_v46  ;;  %v1890_v46 = vld [vmem:[%s7458_s12 + $0x160] sm:$0xff] }
 0x1cb   :  { %1624 = vmatprep.subr.mxu0 %v3486_v24 }
 0x1cc   :  { %1625 = vmatpush2.msra.mxu0 %v1545_v48  ;;  %v1883_v48 = vld [vmem:[%s7458_s12 + $0x128] sm:$0xff] }
 0x1cd   :  { %1626 = vmatprep.subr.mxu0 %v3486_v24 }
 0x1ce   :  { %1627 = vmatpush2.msra.mxu0 %v1544_v50  ;;  %v1876_v50 = vld [vmem:[%s7458_s12 + $0xf0] sm:$0xff] }
 0x1cf   :  { %3391 = vmatprep.subr.msk.mxu0 %vm1766_vm3, %v1749_v13 }
 0x1d7   :  { %v1308_v52 = vpop.f32.mrf.mxu1 }
 0x1d8   :  { %v1309_v60 = vadd.f32 %v1308_v52, %v1231_v55  ;;  %v1869_v52 = vld [vmem:[%s7458_s12 + $0xb8] sm:$0xff]  ;;  %v1862_v55 = vld [vmem:[%s7458_s12 + $0x80] sm:$0xff] }
 0x1d9   :  { %v1310_v56 = vpop.f32.mrf.mxu1 }
 0x1da   :  { %v1311_v62 = vadd.f32 %v1310_v56, %v1235_v58  ;;  %v1856_v56 = vld [vmem:[%s7458_s12 + $0x50] sm:$0xff]  ;;  %v1849_v58 = vld [vmem:[%s7458_s12 + $0x18] sm:$0xff] }
 0x1fc   :  { %v1379_v57 = vpop.f32.mrf.mxu0 }
 0x1fd   :  { %v1380_v63 = vadd.f32 %v1379_v57, %v1309_v60  ;;  %v1855_v57 = vld [vmem:[%s7458_s12 + $0x48] sm:$0xff]  ;;  %v2017_v60 = vld [vmem:[%s7458_s12 + $0x558] sm:$0xff] }
 0x1fe   :  { %v1381_v61 = vpop.f32.mrf.mxu0 }
 0x1ff   :  { %v1382_v38 = vadd.f32 %v1381_v61, %v1311_v62  ;;  %v2016_v61 = vld [vmem:[%s7458_s12 + $0x550] sm:$0xff]  ;;  %v2010_v62 = vld [vmem:[%s7458_s12 + $0x520] sm:$0xff] }
 0x23e   :  { %v1450_v59 = vpop.f32.mrf.mxu1 }
 0x23f   :  { %v1451_v2 = vadd.f32 %v1450_v59, %v1380_v63  ;;  %v1848_v59 = vld [vmem:[%s7458_s12 + $0x10] sm:$0xff]  ;;  %v2009_v63 = vld [vmem:[%s7458_s12 + $0x518] sm:$0xff] }
 0x240   :  { %v1452_v0 = vpop.f32.mrf.mxu1 }
 0x241   :  { %v1453_v5 = vadd.f32 %v1452_v0, %v1382_v38  ;;  %v2003_v0 = vld [vmem:[%s7458_s12 + $0x4e8] sm:$0xff]  ;;  %v2002_v38 = vld [vmem:[%s7458_s12 + $0x4e0] sm:$0xff] }
 0x25d   :  { %v1521_v4 = vpop.f32.mrf.mxu0 }
 0x25e   :  { %v1522_v6 = vadd.f32 %v1521_v4, %v1451_v2  ;;  %v1996_v2 = vld [vmem:[%s7458_s12 + $0x4b0] sm:$0xff]  ;;  %v1995_v4 = vld [vmem:[%s7458_s12 + $0x4a8] sm:$0xff] }
 0x25f   :  { %v1523_v7 = vpop.f32.mrf.mxu0 }
 0x260   :  { %v1524_v8 = vadd.f32 %v1523_v7, %v1453_v5  ;;  %v1526_v11 = vmax.f32 %v1522_v6, 0.0  ;;  %v1989_v5 = vld [vmem:[%s7458_s12 + $0x478] sm:$0xff]  ;;  %v1988_v6 = vld [vmem:[%s7458_s12 + $0x470] sm:$0xff]  ;;  %v1982_v7 = vld [vmem:[%s7458_s12 + $0x440] sm:$0xff] }
 0x262   :  { %v1527_v10 = vmax.f32 %v1524_v8, 0.0  ;;  %v3387_v8 = vld [vmem:[%s7453_s7] ss:$0 sm:$0xff] }
 0x264   :  { %3388 = vmatprep.mubr.msk.f32.mxu0 %vm1560_vm2, %v1527_v10  ;;  %3390 = vmatprep.mubr.msk.f32.mxu1 %vm1560_vm2, %v1527_v10  ;;  %v3389_v10 = vld [vmem:[%s7455_s9] ss:$0 sm:$0xff] }
 0x265   :  { %1629 = vmatmul.mubr.f32.vlgmr.msra.gmra.mxu0 %v1526_v11  ;;  %1731 = vmatmul.mubr.f32.vlgmr.msra.gmra.mxu1 %v1526_v11 }
 0x266   :  { %1837 = vmatprep.mubr.f32.mxu0 %v3486_v24  ;;  %3392 = vmatpush1.msk.msra.mxu0 %vm1766_vm3, %v1748_v14 }
 0x267   :  { %1799 = vmatprep.subr.mxu0 %v1747_v15  ;;  %2133 = vmatpush1.msra.mxu1 %v1953_v23 }
 0x268   :  { %1800 = vmatpush1.msra.mxu0 %v1746_v16  ;;  %2134 = vmatprep.subr.mxu1 %v1947_v25  ;;  %v1951_v25 = vld [vmem:[%s7458_s12 + $0x348] sm:$0xff] }
 0x269   :  { %1801 = vmatprep.subr.mxu0 %v1745_v17  ;;  %2135 = vmatpush1.msra.mxu1 %v1946_v26  ;;  %v1945_v26 = vld [vmem:[%s7458_s12 + $0x318] sm:$0xff] }
 0x26a   :  { %1802 = vmatpush1.msra.mxu0 %v1744_v18  ;;  %2136 = vmatprep.subr.mxu1 %v1940_v27  ;;  %v1944_v27 = vld [vmem:[%s7458_s12 + $0x310] sm:$0xff] }
 0x26b   :  { %1803 = vmatprep.subr.mxu0 %v1743_v19  ;;  %2137 = vmatpush1.msra.mxu1 %v1939_v28  ;;  %v1938_v28 = vld [vmem:[%s7458_s12 + $0x2e0] sm:$0xff] }
 0x26c   :  { %1804 = vmatpush1.msra.mxu0 %v1742_v20  ;;  %2138 = vmatprep.subr.mxu1 %v1933_v29  ;;  %v1736_v20 = vld [vmem:[%s7472_s2] sm:$0xff]  ;;  %v1937_v29 = vld [vmem:[%s7458_s12 + $0x2d8] sm:$0xff] }
 0x26d   :  { %2061 = vmatprep.subr.mxu0 %v1952_v21  ;;  %2139 = vmatpush1.msra.mxu1 %v1932_v31  ;;  %v1931_v31 = vld [vmem:[%s7458_s12 + $0x2a8] sm:$0xff] }
 0x26e   :  { %2140 = vmatprep.subr.mxu1 %v1926_v32  ;;  %v1930_v32 = vld [vmem:[%s7458_s12 + $0x2a0] sm:$0xff] }
 0x26f   :  { %2141 = vmatpush1.msra.mxu1 %v1925_v37  ;;  %v1924_v37 = vld [vmem:[%s7458_s12 + $0x270] sm:$0xff] }
 0x270   :  { %2142 = vmatprep.subr.mxu1 %v1919_v3  ;;  %v1923_v3 = vld [vmem:[%s7458_s12 + $0x268] sm:$0xff] }
 0x271   :  { %2143 = vmatpush1.msra.mxu1 %v1918_v9  ;;  %v1917_v9 = vld [vmem:[%s7458_s12 + $0x238] sm:$0xff] }
 0x272   :  { %2144 = vmatprep.subr.mxu1 %v1912_v40  ;;  %v1916_v40 = vld [vmem:[%s7458_s12 + $0x230] sm:$0xff] }
 0x273   :  { %2145 = vmatpush1.msra.mxu1 %v1911_v12  ;;  %v1910_v12 = vld [vmem:[%s7458_s12 + $0x200] sm:$0xff] }
 0x274   :  { %2146 = vmatprep.subr.mxu1 %v1905_v41  ;;  %v1909_v41 = vld [vmem:[%s7458_s12 + $0x1f8] sm:$0xff] }
 0x275   :  { %2147 = vmatpush1.msra.mxu1 %v1904_v42  ;;  %v1903_v42 = vld [vmem:[%s7458_s12 + $0x1c8] sm:$0xff] }
 0x276   :  { %2148 = vmatprep.subr.mxu1 %v1898_v43  ;;  %v1902_v43 = vld [vmem:[%s7458_s12 + $0x1c0] sm:$0xff] }
 0x277   :  { %2149 = vmatpush1.msra.mxu1 %v1897_v44  ;;  %v1896_v44 = vld [vmem:[%s7458_s12 + $0x190] sm:$0xff] }
 0x278   :  { %2150 = vmatprep.subr.mxu1 %v1891_v45  ;;  %v1895_v45 = vld [vmem:[%s7458_s12 + $0x188] sm:$0xff] }
 0x279   :  { %2151 = vmatpush1.msra.mxu1 %v1890_v46  ;;  %v1889_v46 = vld [vmem:[%s7458_s12 + $0x158] sm:$0xff] }
 0x27a   :  { %2152 = vmatprep.subr.mxu1 %v1884_v47  ;;  %v1888_v47 = vld [vmem:[%s7458_s12 + $0x150] sm:$0xff] }
 0x27b   :  { %2153 = vmatpush1.msra.mxu1 %v1883_v48  ;;  %v1882_v48 = vld [vmem:[%s7458_s12 + $0x120] sm:$0xff] }
 0x27c   :  { %2154 = vmatprep.subr.mxu1 %v1877_v49  ;;  %v1881_v49 = vld [vmem:[%s7458_s12 + $0x118] sm:$0xff] }
 0x27d   :  { %2155 = vmatpush1.msra.mxu1 %v1876_v50  ;;  %v1875_v50 = vld [vmem:[%s7458_s12 + $0xe8] sm:$0xff] }
 0x27e   :  { %2156 = vmatprep.subr.mxu1 %v1870_v51  ;;  %v1874_v51 = vld [vmem:[%s7458_s12 + $0xe0] sm:$0xff] }
 0x27f   :  { %2157 = vmatpush1.msra.mxu1 %v1869_v52  ;;  %v1868_v52 = vld [vmem:[%s7458_s12 + $0xb0] sm:$0xff] }
 0x280   :  { %2158 = vmatprep.subr.mxu1 %v1863_v53  ;;  %v1867_v53 = vld [vmem:[%s7458_s12 + $0xa8] sm:$0xff] }
 0x281   :  { %2159 = vmatpush1.msra.mxu1 %v1862_v55  ;;  %v1861_v55 = vld [vmem:[%s7458_s12 + $0x78] sm:$0xff] }
 0x282   :  { %2160 = vmatprep.subr.mxu1 %v1856_v56  ;;  %v1860_v56 = vld [vmem:[%s7458_s12 + $0x70] sm:$0xff] }
 0x283   :  { %2161 = vmatpush1.msra.mxu1 %v1855_v57  ;;  %v1854_v57 = vld [vmem:[%s7458_s12 + $0x40] sm:$0xff] }
 0x284   :  { %2162 = vmatprep.subr.mxu1 %v1849_v58  ;;  %v1853_v58 = vld [vmem:[%s7458_s12 + $0x38] sm:$0xff] }
 0x285   :  { %2163 = vmatpush1.msra.mxu1 %v1848_v59  ;;  %v1847_v59 = vld [vmem:[%s7458_s12 + $0x8] sm:$0xff] }
 0x286   :  { %2178 = vmatprep.subr.mxu1 %v2017_v60  ;;  %v1846_v60 = vld [vmem:[%s7458_s12] sm:$0xff] }
 0x287   :  { %2179 = vmatpush2.msra.mxu1 %v2016_v61  ;;  %v2015_v61 = vld [vmem:[%s7458_s12 + $0x548] sm:$0xff] }
 0x288   :  { %2180 = vmatprep.subr.mxu1 %v2010_v62  ;;  %v2014_v62 = vld [vmem:[%s7458_s12 + $0x540] sm:$0xff] }
 0x289   :  { %2181 = vmatpush2.msra.mxu1 %v2009_v63  ;;  %v2008_v63 = vld [vmem:[%s7458_s12 + $0x510] sm:$0xff] }
 0x28a   :  { %2182 = vmatprep.subr.mxu1 %v2003_v0  ;;  %v2007_v0 = vld [vmem:[%s7458_s12 + $0x508] sm:$0xff] }
 0x28b   :  { %2183 = vmatpush2.msra.mxu1 %v2002_v38  ;;  %v2001_v38 = vld [vmem:[%s7458_s12 + $0x4d8] sm:$0xff] }
 0x28c   :  { %2184 = vmatprep.subr.mxu1 %v1996_v2  ;;  %v2000_v2 = vld [vmem:[%s7458_s12 + $0x4d0] sm:$0xff] }
 0x28d   :  { %2185 = vmatpush2.msra.mxu1 %v1995_v4  ;;  %v1994_v4 = vld [vmem:[%s7458_s12 + $0x4a0] sm:$0xff] }
 0x28e   :  { %2186 = vmatprep.subr.mxu1 %v1989_v5  ;;  %v1993_v5 = vld [vmem:[%s7458_s12 + $0x498] sm:$0xff] }
 0x28f   :  { %2187 = vmatpush2.msra.mxu1 %v1988_v6  ;;  %v1987_v6 = vld [vmem:[%s7458_s12 + $0x468] sm:$0xff] }
 0x290   :  { %2188 = vmatprep.subr.mxu1 %v1982_v7  ;;  %v1986_v7 = vld [vmem:[%s7458_s12 + $0x460] sm:$0xff] }
 0x325   :  { %v1630_v11 = vpop.f32.mrf.mxu0  ;;  %v1732_v13 = vpop.f32.mrf.mxu1 }
 0x326   :  { %v1631_v14 = vadd.f32 %v3387_v8, %v1630_v11  ;;  %v1733_v15 = vadd.f32 %v3389_v10, %v1732_v13  ;;  %v1980_v8 = vld [vmem:[%s7458_s12 + $0x430] sm:$0xff]  ;;  %v1979_v10 = vld [vmem:[%s7458_s12 + $0x428] sm:$0xff]  ;;  %v1981_v11 = vld [vmem:[%s7458_s12 + $0x438] sm:$0xff] }
 0x327   :  { %v1632_v16 = vpop.f32.mrf.mxu0  ;;  %v1734_v17 = vpop.f32.mrf.mxu1  ;;  %2189 = vmatpush2.msra.mxu1 %v1981_v11  ;;  %v1973_v13 = vld [vmem:[%s7458_s12 + $0x3f8] sm:$0xff]  ;;  %v1879_v11 = vld [vmem:[%s7458_s12 + $0x108] sm:$0xff] }
 0x328   :  { %v1737_v18 = vmul.f32 0.5, %v1733_v15  ;;  %3348 = vst.msk [vmem:[#allocation2] sm:$0xff] %vm1762_vm4, %v1631_v14  ;;  %3349 = vst.msk [vmem:[#allocation4] sm:$0xff] %vm1762_vm4, %v1733_v15  ;;  %v1972_v15 = vld [vmem:[%s7458_s12 + $0x3f0] sm:$0xff]  ;;  %v1974_v16 = vld [vmem:[%s7458_s12 + $0x400] sm:$0xff] }
 0x329   :  { %v1966_v17 = vld [vmem:[%s7458_s12 + $0x3c0] sm:$0xff] }
 0x32a   :  { %v1738_v19 = vmul.f32 1.442695, %v1737_v18  ;;  %v1968_v18 = vld [vmem:[%s7458_s12 + $0x3d0] sm:$0xff] }
 0x32c   :  { %3438 = vpow2.f32 %v1738_v19  ;;  %v1965_v19 = vld [vmem:[%s7458_s12 + $0x3b8] sm:$0xff] }
 0x339   :  { %v3439_v21 = vpop.eup %3438 }
 0x33a   :  { %v1740_v22 = vmul.f32 %v3439_v21, %v1736_v20  ;;  %v1967_v20 = vld [vmem:[%s7458_s12 + $0x3c8] sm:$0xff] }
 0x33b   :  { %v1959_v21 = vld [vmem:[%s7458_s12 + $0x388] sm:$0xff] }
 0x33c   :  { %v1741_v23 = vadd.f32 %v1740_v22, %v1631_v14  ;;  %v1975_v14 = vld [vmem:[%s7458_s12 + $0x408] sm:$0xff]  ;;  %v1961_v22 = vld [vmem:[%s7458_s12 + $0x398] sm:$0xff] }
 0x33d   :  { %2190 = vmatprep.subr.mxu1 %v1975_v14  ;;  %v1880_v14 = vld [vmem:[%s7458_s12 + $0x110] sm:$0xff] }
 0x33e   :  { %3393 = vmatmul.mubr.msk.f32.vlgmr.msra.gmra.mxu0 %vm1762_vm4, %v1741_v23  ;;  %2191 = vmatpush2.msra.mxu1 %v1974_v16  ;;  %v1958_v23 = vld [vmem:[%s7458_s12 + $0x380] sm:$0xff]  ;;  %v1871_v16 = vld [vmem:[%s7458_s12 + $0xc8] sm:$0xff] }
 0x33f   :  { %2062 = vmatpush1.msra.mxu0 %v1951_v25  ;;  %2192 = vmatprep.subr.mxu1 %v1968_v18  ;;  %v1960_v25 = vld [vmem:[%s7458_s12 + $0x390] sm:$0xff]  ;;  %v1865_v18 = vld [vmem:[%s7458_s12 + $0x98] sm:$0xff] }
 0x340   :  { %2063 = vmatprep.subr.mxu0 %v1945_v26  ;;  %2193 = vmatpush2.msra.mxu1 %v1967_v20  ;;  %v1956_v26 = vld [vmem:[%s7458_s12 + $0x370] sm:$0xff]  ;;  %v1866_v20 = vld [vmem:[%s7458_s12 + $0xa0] sm:$0xff] }
 0x341   :  { %2064 = vmatpush1.msra.mxu0 %v1944_v27  ;;  %2194 = vmatprep.subr.mxu1 %v1961_v22  ;;  %v1750_v27 = vld [vmem:[%s7457_s11] sm:$0x3]  ;;  %v1857_v22 = vld [vmem:[%s7458_s12 + $0x58] sm:$0xff] }
 0x342   :  { %2065 = vmatprep.subr.mxu0 %v1938_v28  ;;  %2195 = vmatpush2.msra.mxu1 %v1960_v25  ;;  %v1755_v28 = vrot.slane %v1750_v27, %v5038_v1  ;;  %v1851_v25 = vld [vmem:[%s7458_s12 + $0x28] sm:$0xff] }
 0x343   :  { %2066 = vmatpush1.msra.mxu0 %v1937_v29  ;;  %2274 = vmatprep.subr.mxu1 %v3486_v24  ;;  %v1759_v29 = vrot.slane %v1750_v27, %v5052_v39  ;;  %v1852_v27 = vld [vmem:[%s7458_s12 + $0x30] sm:$0xff] }
 0x344   :  { %2067 = vmatprep.subr.mxu0 %v1931_v31 }
 0x345   :  { %2068 = vmatpush1.msra.mxu0 %v1930_v32 }
 0x346   :  { %2069 = vmatprep.subr.mxu0 %v1924_v37 }
 0x347   :  { %2070 = vmatpush1.msra.mxu0 %v1923_v3 }
 0x348   :  { %2071 = vmatprep.subr.mxu0 %v1917_v9 }
 0x349   :  { %2072 = vmatpush1.msra.mxu0 %v1916_v40 }
 0x34a   :  { %2073 = vmatprep.subr.mxu0 %v1910_v12  ;;  %v1955_v12 = vld [vmem:[%s7458_s12 + $0x368] sm:$0xff] }
 0x34b   :  { %2074 = vmatpush1.msra.mxu0 %v1909_v41  ;;  %v1957_v41 = vld [vmem:[%s7458_s12 + $0x378] sm:$0xff] }
 0x34c   :  { %2075 = vmatprep.subr.mxu0 %v1903_v42  ;;  %v1949_v42 = vld [vmem:[%s7458_s12 + $0x338] sm:$0xff] }
 0x34d   :  { %2076 = vmatpush1.msra.mxu0 %v1902_v43  ;;  %v1948_v43 = vld [vmem:[%s7458_s12 + $0x330] sm:$0xff] }
 0x34e   :  { %2077 = vmatprep.subr.mxu0 %v1896_v44  ;;  %v1950_v44 = vld [vmem:[%s7458_s12 + $0x340] sm:$0xff] }
 0x34f   :  { %2078 = vmatpush1.msra.mxu0 %v1895_v45  ;;  %v1942_v45 = vld [vmem:[%s7458_s12 + $0x300] sm:$0xff] }
 0x350   :  { %2079 = vmatprep.subr.mxu0 %v1889_v46  ;;  %v1941_v46 = vld [vmem:[%s7458_s12 + $0x2f8] sm:$0xff] }
 0x351   :  { %2080 = vmatpush1.msra.mxu0 %v1888_v47  ;;  %v1943_v47 = vld [vmem:[%s7458_s12 + $0x308] sm:$0xff] }
 0x352   :  { %2081 = vmatprep.subr.mxu0 %v1882_v48  ;;  %v1935_v48 = vld [vmem:[%s7458_s12 + $0x2c8] sm:$0xff] }
 0x353   :  { %2082 = vmatpush1.msra.mxu0 %v1881_v49  ;;  %v1934_v49 = vld [vmem:[%s7458_s12 + $0x2c0] sm:$0xff] }
 0x354   :  { %2083 = vmatprep.subr.mxu0 %v1875_v50  ;;  %v1936_v50 = vld [vmem:[%s7458_s12 + $0x2d0] sm:$0xff] }
 0x355   :  { %2084 = vmatpush1.msra.mxu0 %v1874_v51  ;;  %v1928_v51 = vld [vmem:[%s7458_s12 + $0x290] sm:$0xff] }
 0x356   :  { %2085 = vmatprep.subr.mxu0 %v1868_v52  ;;  %v1927_v52 = vld [vmem:[%s7458_s12 + $0x288] sm:$0xff] }
 0x357   :  { %2086 = vmatpush1.msra.mxu0 %v1867_v53  ;;  %v1929_v53 = vld [vmem:[%s7458_s12 + $0x298] sm:$0xff] }
 0x358   :  { %2087 = vmatprep.subr.mxu0 %v1861_v55  ;;  %v1921_v55 = vld [vmem:[%s7458_s12 + $0x258] sm:$0xff] }
 0x359   :  { %2088 = vmatpush1.msra.mxu0 %v1860_v56  ;;  %v1920_v56 = vld [vmem:[%s7458_s12 + $0x250] sm:$0xff] }
 0x35a   :  { %2089 = vmatprep.subr.mxu0 %v1854_v57  ;;  %v1922_v57 = vld [vmem:[%s7458_s12 + $0x260] sm:$0xff] }
 0x35b   :  { %2090 = vmatpush1.msra.mxu0 %v1853_v58  ;;  %v1914_v58 = vld [vmem:[%s7458_s12 + $0x220] sm:$0xff] }
 0x35c   :  { %2091 = vmatprep.subr.mxu0 %v1847_v59  ;;  %v1913_v59 = vld [vmem:[%s7458_s12 + $0x218] sm:$0xff] }
 0x35d   :  { %2092 = vmatpush1.msra.mxu0 %v1846_v60  ;;  %v1915_v60 = vld [vmem:[%s7458_s12 + $0x228] sm:$0xff] }
 0x35e   :  { %2107 = vmatprep.subr.mxu0 %v2015_v61  ;;  %v1907_v61 = vld [vmem:[%s7458_s12 + $0x1e8] sm:$0xff] }
 0x35f   :  { %2108 = vmatpush2.msra.mxu0 %v2014_v62  ;;  %v1906_v62 = vld [vmem:[%s7458_s12 + $0x1e0] sm:$0xff] }
 0x360   :  { %2109 = vmatprep.subr.mxu0 %v2008_v63  ;;  %v1908_v63 = vld [vmem:[%s7458_s12 + $0x1f0] sm:$0xff] }
 0x361   :  { %2110 = vmatpush2.msra.mxu0 %v2007_v0  ;;  %v1900_v0 = vld [vmem:[%s7458_s12 + $0x1b0] sm:$0xff] }
 0x362   :  { %2111 = vmatprep.subr.mxu0 %v2001_v38  ;;  %v1899_v38 = vld [vmem:[%s7458_s12 + $0x1a8] sm:$0xff] }
 0x363   :  { %2112 = vmatpush2.msra.mxu0 %v2000_v2  ;;  %v1901_v2 = vld [vmem:[%s7458_s12 + $0x1b8] sm:$0xff] }
 0x364   :  { %2113 = vmatprep.subr.mxu0 %v1994_v4  ;;  %v1893_v4 = vld [vmem:[%s7458_s12 + $0x178] sm:$0xff] }
 0x365   :  { %2114 = vmatpush2.msra.mxu0 %v1993_v5  ;;  %v1892_v5 = vld [vmem:[%s7458_s12 + $0x170] sm:$0xff] }
 0x366   :  { %2115 = vmatprep.subr.mxu0 %v1987_v6  ;;  %v1894_v6 = vld [vmem:[%s7458_s12 + $0x180] sm:$0xff] }
 0x367   :  { %2116 = vmatpush2.msra.mxu0 %v1986_v7  ;;  %v1886_v7 = vld [vmem:[%s7458_s12 + $0x140] sm:$0xff] }
 0x368   :  { %2117 = vmatprep.subr.mxu0 %v1980_v8  ;;  %v1885_v8 = vld [vmem:[%s7458_s12 + $0x138] sm:$0xff] }
 0x369   :  { %2118 = vmatpush2.msra.mxu0 %v1979_v10  ;;  %v1887_v10 = vld [vmem:[%s7458_s12 + $0x148] sm:$0xff] }
 0x36a   :  { %2119 = vmatprep.subr.mxu0 %v1973_v13  ;;  %v1878_v13 = vld [vmem:[%s7458_s12 + $0x100] sm:$0xff] }
 0x36b   :  { %2120 = vmatpush2.msra.mxu0 %v1972_v15  ;;  %v1872_v15 = vld [vmem:[%s7458_s12 + $0xd0] sm:$0xff] }
 0x36c   :  { %2121 = vmatprep.subr.mxu0 %v1966_v17  ;;  %v1873_v17 = vld [vmem:[%s7458_s12 + $0xd8] sm:$0xff] }
 0x36d   :  { %2122 = vmatpush2.msra.mxu0 %v1965_v19  ;;  %v1864_v19 = vld [vmem:[%s7458_s12 + $0x90] sm:$0xff] }
 0x36e   :  { %2123 = vmatprep.subr.mxu0 %v1959_v21  ;;  %v1858_v21 = vld [vmem:[%s7458_s12 + $0x60] sm:$0xff] }
 0x36f   :  { %2124 = vmatpush2.msra.mxu0 %v1958_v23  ;;  %v1859_v23 = vld [vmem:[%s7458_s12 + $0x68] sm:$0xff] }
 0x370   :  { %2203 = vmatprep.subr.mxu0 %v1956_v26  ;;  %v1850_v26 = vld [vmem:[%s7458_s12 + $0x20] sm:$0xff] }
 0x3fe   :  { %v1839_v31 = vpop.f32.mrf.mxu0 }
 0x3ff   :  { %v1840_v32 = vadd.f32 %v1839_v31, %v1755_v28  ;;  %v2019_v28 = vld [vmem:[%s7458_s12 + $0x568] sm:$0xff]  ;;  %v2020_v31 = vld [vmem:[%s7458_s12 + $0x570] sm:$0xff] }
 0x400   :  { %v1841_v37 = vpop.f32.mrf.mxu0 }
 0x401   :  { %v1842_v3 = vadd.f32 %v1841_v37, %v1759_v29  ;;  %v5890_v40 = vmax.f32 %v1840_v32, 0.0  ;;  %v2018_v29 = vld [vmem:[%s7458_s12 + $0x560] sm:$0xff]  ;;  %v2012_v32 = vld [vmem:[%s7458_s12 + $0x530] sm:$0xff]  ;;  %v2011_v37 = vld [vmem:[%s7458_s12 + $0x528] sm:$0xff] }
 0x403   :  { %v1845_v9 = vmax.f32 %v1842_v3, 0.0  ;;  %v2013_v3 = vld [vmem:[%s7458_s12 + $0x538] sm:$0xff] }
 0x405   :  { %3394 = vmatprep.mubr.msk.f32.mxu0 %vm1560_vm2, %v1845_v9  ;;  %3395 = vmatprep.mubr.msk.f32.mxu1 %vm1560_vm2, %v1845_v9 }
 0x406   :  { %2126 = vmatmul.mubr.f32.vlgmr.msra.gmra.mxu0 %v5890_v40  ;;  %2197 = vmatmul.mubr.f32.vlgmr.msra.gmra.mxu1 %v5890_v40 }
 0x407   :  { %2204 = vmatpush1.msra.mxu0 %v1955_v12  ;;  %2275 = vmatpush1.msra.mxu1 %v1957_v41  ;;  %v2004_v12 = vld [vmem:[%s7458_s12 + $0x4f0] sm:$0xff]  ;;  %v2006_v41 = vld [vmem:[%s7458_s12 + $0x500] sm:$0xff] }
 0x408   :  { %2205 = vmatprep.subr.mxu0 %v1949_v42  ;;  %3396 = vmatprep.mubr.msk.f32.mxu0 %vm1560_vm2, %v1845_v9  ;;  %v1998_v42 = vld [vmem:[%s7458_s12 + $0x4c0] sm:$0xff] }
 0x409   :  { %2276 = vmatprep.subr.mxu1 %v3486_v24  ;;  %3397 = vmatprep.mubr.msk.f32.mxu1 %vm1560_vm2, %v1845_v9  ;;  %v2005_v9 = vld [vmem:[%s7458_s12 + $0x4f8] sm:$0xff] }
 0x40a   :  { %2206 = vmatpush1.msra.mxu0 %v1948_v43  ;;  %2277 = vmatpush1.msra.mxu1 %v1950_v44  ;;  %v1997_v43 = vld [vmem:[%s7458_s12 + $0x4b8] sm:$0xff]  ;;  %v1999_v44 = vld [vmem:[%s7458_s12 + $0x4c8] sm:$0xff] }
 0x40b   :  { %2207 = vmatprep.subr.mxu0 %v1942_v45  ;;  %2278 = vmatprep.subr.mxu1 %v3486_v24  ;;  %v1991_v45 = vld [vmem:[%s7458_s12 + $0x488] sm:$0xff] }
 0x40c   :  { %2208 = vmatpush1.msra.mxu0 %v1941_v46  ;;  %2279 = vmatpush1.msra.mxu1 %v1943_v47  ;;  %v1990_v46 = vld [vmem:[%s7458_s12 + $0x480] sm:$0xff]  ;;  %v1992_v47 = vld [vmem:[%s7458_s12 + $0x490] sm:$0xff] }
 0x40d   :  { %2209 = vmatprep.subr.mxu0 %v1935_v48  ;;  %2280 = vmatprep.subr.mxu1 %v3486_v24  ;;  %v1984_v48 = vld [vmem:[%s7458_s12 + $0x450] sm:$0xff] }
 0x40e   :  { %2210 = vmatpush1.msra.mxu0 %v1934_v49  ;;  %2281 = vmatpush1.msra.mxu1 %v1936_v50  ;;  %v1983_v49 = vld [vmem:[%s7458_s12 + $0x448] sm:$0xff]  ;;  %v1985_v50 = vld [vmem:[%s7458_s12 + $0x458] sm:$0xff] }
 0x40f   :  { %2211 = vmatprep.subr.mxu0 %v1928_v51  ;;  %2282 = vmatprep.subr.mxu1 %v3486_v24  ;;  %v1977_v51 = vld [vmem:[%s7458_s12 + $0x418] sm:$0xff] }
 0x410   :  { %2212 = vmatpush1.msra.mxu0 %v1927_v52  ;;  %2283 = vmatpush1.msra.mxu1 %v1929_v53  ;;  %v1976_v52 = vld [vmem:[%s7458_s12 + $0x410] sm:$0xff]  ;;  %v1978_v53 = vld [vmem:[%s7458_s12 + $0x420] sm:$0xff] }
 0x411   :  { %2213 = vmatprep.subr.mxu0 %v1921_v55  ;;  %2284 = vmatprep.subr.mxu1 %v3486_v24  ;;  %v1970_v55 = vld [vmem:[%s7458_s12 + $0x3e0] sm:$0xff] }
 0x412   :  { %2214 = vmatpush1.msra.mxu0 %v1920_v56  ;;  %2285 = vmatpush1.msra.mxu1 %v1922_v57  ;;  %v1969_v56 = vld [vmem:[%s7458_s12 + $0x3d8] sm:$0xff]  ;;  %v1971_v57 = vld [vmem:[%s7458_s12 + $0x3e8] sm:$0xff] }
 0x413   :  { %2215 = vmatprep.subr.mxu0 %v1914_v58  ;;  %2286 = vmatprep.subr.mxu1 %v3486_v24  ;;  %v1963_v58 = vld [vmem:[%s7458_s12 + $0x3a8] sm:$0xff] }
 0x414   :  { %2216 = vmatpush1.msra.mxu0 %v1913_v59  ;;  %2287 = vmatpush1.msra.mxu1 %v1915_v60  ;;  %v1962_v59 = vld [vmem:[%s7458_s12 + $0x3a0] sm:$0xff]  ;;  %v1964_v60 = vld [vmem:[%s7458_s12 + $0x3b0] sm:$0xff]  ;;  %s3487_s12 = smov [#allocation2]  }
 0x415   :  { %2217 = vmatprep.subr.mxu0 %v1907_v61  ;;  %2288 = vmatprep.subr.mxu1 %v3486_v24  ;;  %v2412_v61 = vld [vmem:[%s7460_s14 + $0x1e8] sm:$0xff]  ;;  %s3358_s3 = sshll.u32 %s3487_s12, 4  ;;  %s3359_s3 = int_to_ptr.vmem [resolvable:$true] %s3358_s3 }
 0x416   :  { %2218 = vmatpush1.msra.mxu0 %v1906_v62  ;;  %2289 = vmatpush1.msra.mxu1 %v1908_v63  ;;  %v2540_v62 = vld [vmem:[%s7460_s14 + $0x5e8] sm:$0xff]  ;;  %v2411_v63 = vld [vmem:[%s7460_s14 + $0x1e0] sm:$0xff]  ;;  %s3442_s1 = scalar_lea.vmem %s3359_s3, 128  ;;  %p3447_p1 = scmp.lt.s32.totalorder %s3359_s3, %s3359_s3 }
 0x417   :  { %2219 = vmatprep.subr.mxu0 %v1900_v0  ;;  %2290 = vmatprep.subr.mxu1 %v3486_v24  ;;  %v2539_v0 = vld [vmem:[%s7460_s14 + $0x5e0] sm:$0xff]  ;;  %p3443_p0 = scmp.ne.s32.totalorder %s3359_s3, %s3442_s1  ;;  %p3448_p2 = scmp.lt.s32.totalorder %s3442_s1, %s3442_s1 }
 0x418   :  { %2220 = vmatpush1.msra.mxu0 %v1899_v38  ;;  %2291 = vmatpush1.msra.mxu1 %v1901_v2  ;;  %v2408_v38 = vld [vmem:[%s7460_s14 + $0x1c8] sm:$0xff] }
 0x419   :  { %2221 = vmatprep.subr.mxu0 %v1893_v4  ;;  %2292 = vmatprep.subr.mxu1 %v3486_v24  ;;  %v2536_v2 = vld [vmem:[%s7460_s14 + $0x5c8] sm:$0xff]  ;;  %v2407_v4 = vld [vmem:[%s7460_s14 + $0x1c0] sm:$0xff]  ;;  %p3449_p3 = por %p3448_p2, %p3447_p1 }
 0x41a   :  { %2222 = vmatpush1.msra.mxu0 %v1892_v5  ;;  %2293 = vmatpush1.msra.mxu1 %v1894_v6  ;;  %v2535_v5 = vld [vmem:[%s7460_s14 + $0x5c0] sm:$0xff]  ;;  %v2532_v6 = vld [vmem:[%s7460_s14 + $0x5a8] sm:$0xff] }
 0x41b   :  { %2223 = vmatprep.subr.mxu0 %v1886_v7  ;;  %2294 = vmatprep.subr.mxu1 %v3486_v24  ;;  %v2403_v7 = vld [vmem:[%s7460_s14 + $0x1a0] sm:$0xff]  ;;  %p3450_p4 = pnand %p3449_p3, %p3443_p0 }
 0x41c   :  { %2224 = vmatpush1.msra.mxu0 %v1885_v8  ;;  %2295 = vmatpush1.msra.mxu1 %v1887_v10  ;;  %v2531_v8 = vld [vmem:[%s7460_s14 + $0x5a0] sm:$0xff]  ;;  %v2400_v10 = vld [vmem:[%s7460_s14 + $0x188] sm:$0xff] }
 0x41d   :  { %2225 = vmatprep.subr.mxu0 %v1879_v11  ;;  %2296 = vmatprep.subr.mxu1 %v3486_v24  ;;  %v2528_v11 = vld [vmem:[%s7460_s14 + $0x588] sm:$0xff] }
 0x41e   :  { %2226 = vmatpush1.msra.mxu0 %v1878_v13  ;;  %2297 = vmatpush1.msra.mxu1 %v1880_v14  ;;  %v2399_v13 = vld [vmem:[%s7460_s14 + $0x180] sm:$0xff] }
 0x41f   :  { %2227 = vmatprep.subr.mxu0 %v1872_v15  ;;  %2298 = vmatprep.subr.mxu1 %v3486_v24  ;;  %v2527_v14 = vld [vmem:[%s7460_s14 + $0x580] sm:$0xff]  ;;  %v2396_v15 = vld [vmem:[%s7460_s14 + $0x168] sm:$0xff] }
 0x420   :  { %2228 = vmatpush1.msra.mxu0 %v1871_v16  ;;  %2299 = vmatpush1.msra.mxu1 %v1873_v17  ;;  %v2524_v16 = vld [vmem:[%s7460_s14 + $0x568] sm:$0xff]  ;;  %v2395_v17 = vld [vmem:[%s7460_s14 + $0x160] sm:$0xff] }
 0x421   :  { %2229 = vmatprep.subr.mxu0 %v1865_v18  ;;  %2300 = vmatprep.subr.mxu1 %v3486_v24  ;;  %v2523_v18 = vld [vmem:[%s7460_s14 + $0x560] sm:$0xff] }
 0x422   :  { %2230 = vmatpush1.msra.mxu0 %v1864_v19  ;;  %2301 = vmatpush1.msra.mxu1 %v1866_v20  ;;  %v2392_v19 = vld [vmem:[%s7460_s14 + $0x148] sm:$0xff] }
 0x423   :  { %2231 = vmatprep.subr.mxu0 %v1858_v21  ;;  %2302 = vmatprep.subr.mxu1 %v3486_v24  ;;  %v2520_v20 = vld [vmem:[%s7460_s14 + $0x548] sm:$0xff]  ;;  %v2391_v21 = vld [vmem:[%s7460_s14 + $0x140] sm:$0xff] }
 0x424   :  { %2232 = vmatpush1.msra.mxu0 %v1857_v22  ;;  %2303 = vmatpush1.msra.mxu1 %v1859_v23  ;;  %v2519_v22 = vld [vmem:[%s7460_s14 + $0x540] sm:$0xff]  ;;  %v2388_v23 = vld [vmem:[%s7460_s14 + $0x128] sm:$0xff] }
 0x425   :  { %2233 = vmatprep.subr.mxu0 %v1851_v25  ;;  %2304 = vmatprep.subr.mxu1 %v3486_v24  ;;  %v2516_v25 = vld [vmem:[%s7460_s14 + $0x528] sm:$0xff] }
 0x426   :  { %2234 = vmatpush1.msra.mxu0 %v1850_v26  ;;  %2305 = vmatpush1.msra.mxu1 %v1852_v27  ;;  %v2387_v26 = vld [vmem:[%s7460_s14 + $0x120] sm:$0xff] }
 0x427   :  { %2249 = vmatprep.subr.mxu0 %v2019_v28  ;;  %2320 = vmatprep.subr.mxu1 %v3486_v24  ;;  %v2515_v27 = vld [vmem:[%s7460_s14 + $0x520] sm:$0xff]  ;;  %v2384_v28 = vld [vmem:[%s7460_s14 + $0x108] sm:$0xff] }
 0x428   :  { %2250 = vmatpush2.msra.mxu0 %v2018_v29  ;;  %2321 = vmatpush2.msra.mxu1 %v2020_v31  ;;  %v2512_v29 = vld [vmem:[%s7460_s14 + $0x508] sm:$0xff]  ;;  %v2383_v31 = vld [vmem:[%s7460_s14 + $0x100] sm:$0xff] }
 0x429   :  { %2251 = vmatprep.subr.mxu0 %v2012_v32  ;;  %2322 = vmatprep.subr.mxu1 %v3486_v24  ;;  %v2511_v32 = vld [vmem:[%s7460_s14 + $0x500] sm:$0xff] }
 0x42a   :  { %2252 = vmatpush2.msra.mxu0 %v2011_v37  ;;  %2323 = vmatpush2.msra.mxu1 %v2013_v3  ;;  %v2380_v37 = vld [vmem:[%s7460_s14 + $0xe8] sm:$0xff] }
 0x42b   :  { %2253 = vmatprep.subr.mxu0 %v2005_v9  ;;  %2324 = vmatprep.subr.mxu1 %v3486_v24  ;;  %v2508_v3 = vld [vmem:[%s7460_s14 + $0x4e8] sm:$0xff]  ;;  %v2379_v9 = vld [vmem:[%s7460_s14 + $0xe0] sm:$0xff] }
 0x42c   :  { %2254 = vmatpush2.msra.mxu0 %v2004_v12  ;;  %2325 = vmatpush2.msra.mxu1 %v2006_v41  ;;  %v2507_v12 = vld [vmem:[%s7460_s14 + $0x4e0] sm:$0xff]  ;;  %v2376_v41 = vld [vmem:[%s7460_s14 + $0xc8] sm:$0xff] }
 0x42d   :  { %2255 = vmatprep.subr.mxu0 %v1998_v42  ;;  %2326 = vmatprep.subr.mxu1 %v3486_v24  ;;  %v2504_v42 = vld [vmem:[%s7460_s14 + $0x4c8] sm:$0xff] }
 0x42e   :  { %2256 = vmatpush2.msra.mxu0 %v1997_v43  ;;  %2327 = vmatpush2.msra.mxu1 %v1999_v44  ;;  %v2375_v43 = vld [vmem:[%s7460_s14 + $0xc0] sm:$0xff] }
 0x42f   :  { %2257 = vmatprep.subr.mxu0 %v1991_v45  ;;  %2328 = vmatprep.subr.mxu1 %v3486_v24  ;;  %v2503_v44 = vld [vmem:[%s7460_s14 + $0x4c0] sm:$0xff]  ;;  %v2372_v45 = vld [vmem:[%s7460_s14 + $0xa8] sm:$0xff] }
 0x430   :  { %2258 = vmatpush2.msra.mxu0 %v1990_v46  ;;  %2329 = vmatpush2.msra.mxu1 %v1992_v47  ;;  %v2500_v46 = vld [vmem:[%s7460_s14 + $0x4a8] sm:$0xff]  ;;  %v2371_v47 = vld [vmem:[%s7460_s14 + $0xa0] sm:$0xff] }
 0x431   :  { %2259 = vmatprep.subr.mxu0 %v1984_v48  ;;  %2330 = vmatprep.subr.mxu1 %v3486_v24  ;;  %v2499_v48 = vld [vmem:[%s7460_s14 + $0x4a0] sm:$0xff] }
 0x432   :  { %2260 = vmatpush2.msra.mxu0 %v1983_v49  ;;  %2331 = vmatpush2.msra.mxu1 %v1985_v50  ;;  %v2368_v49 = vld [vmem:[%s7460_s14 + $0x88] sm:$0xff] }
 0x433   :  { %2261 = vmatprep.subr.mxu0 %v1977_v51  ;;  %2332 = vmatprep.subr.mxu1 %v3486_v24  ;;  %v2496_v50 = vld [vmem:[%s7460_s14 + $0x488] sm:$0xff]  ;;  %v2367_v51 = vld [vmem:[%s7460_s14 + $0x80] sm:$0xff] }
 0x434   :  { %2262 = vmatpush2.msra.mxu0 %v1976_v52  ;;  %2333 = vmatpush2.msra.mxu1 %v1978_v53  ;;  %v2495_v52 = vld [vmem:[%s7460_s14 + $0x480] sm:$0xff]  ;;  %v2364_v53 = vld [vmem:[%s7460_s14 + $0x68] sm:$0xff] }
 0x435   :  { %2263 = vmatprep.subr.mxu0 %v1970_v55  ;;  %2334 = vmatprep.subr.mxu1 %v3486_v24  ;;  %v2492_v55 = vld [vmem:[%s7460_s14 + $0x468] sm:$0xff] }
 0x436   :  { %2264 = vmatpush2.msra.mxu0 %v1969_v56  ;;  %2335 = vmatpush2.msra.mxu1 %v1971_v57  ;;  %v2363_v56 = vld [vmem:[%s7460_s14 + $0x60] sm:$0xff] }
 0x437   :  { %2265 = vmatprep.subr.mxu0 %v1963_v58  ;;  %2336 = vmatprep.subr.mxu1 %v3486_v24  ;;  %v2491_v57 = vld [vmem:[%s7460_s14 + $0x460] sm:$0xff]  ;;  %v2360_v58 = vld [vmem:[%s7460_s14 + $0x48] sm:$0xff] }
 0x438   :  { %2266 = vmatpush2.msra.mxu0 %v1962_v59  ;;  %2337 = vmatpush2.msra.mxu1 %v1964_v60  ;;  %v2488_v59 = vld [vmem:[%s7460_s14 + $0x448] sm:$0xff]  ;;  %v2359_v60 = vld [vmem:[%s7460_s14 + $0x40] sm:$0xff] }
 0x439   :  { %2268 = vmatmul.mubr.f32.vlgmr.msra.gmra.mxu0 %v5890_v40  ;;  %2339 = vmatmul.mubr.f32.vlgmr.msra.gmra.mxu1 %v5890_v40  ;;  %v2404_v40 = vld [vmem:[%s7460_s14 + $0x1a8] sm:$0xff] }
 0x43a   :  { %2776 = vmatprep.subr.mxu0 %v2412_v61  ;;  %2847 = vmatprep.subr.mxu1 %v2540_v62  ;;  %v2487_v61 = vld [vmem:[%s7460_s14 + $0x440] sm:$0xff]  ;;  %v2356_v62 = vld [vmem:[%s7460_s14 + $0x28] sm:$0xff] }
 0x43b   :  { %2777 = vmatpush1.msra.mxu0 %v2411_v63  ;;  %2848 = vmatpush1.msra.mxu1 %v2539_v0  ;;  %v2484_v63 = vld [vmem:[%s7460_s14 + $0x428] sm:$0xff]  ;;  %v2355_v0 = vld [vmem:[%s7460_s14 + $0x20] sm:$0xff] }
 0x43c   :  { %2778 = vmatprep.subr.mxu0 %v2408_v38  ;;  %2849 = vmatprep.subr.mxu1 %v2536_v2  ;;  %v2483_v38 = vld [vmem:[%s7460_s14 + $0x420] sm:$0xff]  ;;  %v2352_v2 = vld [vmem:[%s7460_s14 + $0x8] sm:$0xff] }
 0x43d   :  { %2779 = vmatpush1.msra.mxu0 %v2407_v4  ;;  %2850 = vmatpush1.msra.mxu1 %v2535_v5  ;;  %v2480_v4 = vld [vmem:[%s7460_s14 + $0x408] sm:$0xff]  ;;  %v2351_v5 = vld [vmem:[%s7460_s14] sm:$0xff] }
 0x43e   :  { %2780 = vmatprep.subr.mxu0 %v2404_v40  ;;  %2851 = vmatprep.subr.mxu1 %v2532_v6  ;;  %v2479_v40 = vld [vmem:[%s7460_s14 + $0x400] sm:$0xff]  ;;  %v2476_v6 = vld [vmem:[%s7460_s14 + $0x3e8] sm:$0xff] }
 0x43f   :  { %2781 = vmatpush1.msra.mxu0 %v2403_v7  ;;  %2852 = vmatpush1.msra.mxu1 %v2531_v8  ;;  %v2604_v7 = vld [vmem:[%s7460_s14 + $0x7e8] sm:$0xff]  ;;  %v2475_v8 = vld [vmem:[%s7460_s14 + $0x3e0] sm:$0xff] }
 0x440   :  { %2782 = vmatprep.subr.mxu0 %v2400_v10  ;;  %2853 = vmatprep.subr.mxu1 %v2528_v11  ;;  %v2603_v10 = vld [vmem:[%s7460_s14 + $0x7e0] sm:$0xff]  ;;  %v2472_v11 = vld [vmem:[%s7460_s14 + $0x3c8] sm:$0xff] }
 0x441   :  { %2783 = vmatpush1.msra.mxu0 %v2399_v13  ;;  %2854 = vmatpush1.msra.mxu1 %v2527_v14  ;;  %v2600_v13 = vld [vmem:[%s7460_s14 + $0x7c8] sm:$0xff]  ;;  %v2471_v14 = vld [vmem:[%s7460_s14 + $0x3c0] sm:$0xff] }
 0x442   :  { %2784 = vmatprep.subr.mxu0 %v2396_v15  ;;  %2855 = vmatprep.subr.mxu1 %v2524_v16  ;;  %v2599_v15 = vld [vmem:[%s7460_s14 + $0x7c0] sm:$0xff]  ;;  %v2468_v16 = vld [vmem:[%s7460_s14 + $0x3a8] sm:$0xff] }
 0x443   :  { %2785 = vmatpush1.msra.mxu0 %v2395_v17  ;;  %2856 = vmatpush1.msra.mxu1 %v2523_v18  ;;  %v2596_v17 = vld [vmem:[%s7460_s14 + $0x7a8] sm:$0xff]  ;;  %v2467_v18 = vld [vmem:[%s7460_s14 + $0x3a0] sm:$0xff] }
 0x444   :  { %2786 = vmatprep.subr.mxu0 %v2392_v19  ;;  %2857 = vmatprep.subr.mxu1 %v2520_v20  ;;  %v2595_v19 = vld [vmem:[%s7460_s14 + $0x7a0] sm:$0xff]  ;;  %v2464_v20 = vld [vmem:[%s7460_s14 + $0x388] sm:$0xff] }
 0x445   :  { %2787 = vmatpush1.msra.mxu0 %v2391_v21  ;;  %2858 = vmatpush1.msra.mxu1 %v2519_v22  ;;  %v2592_v21 = vld [vmem:[%s7460_s14 + $0x788] sm:$0xff]  ;;  %v2463_v22 = vld [vmem:[%s7460_s14 + $0x380] sm:$0xff] }
 0x446   :  { %2788 = vmatprep.subr.mxu0 %v2388_v23  ;;  %2859 = vmatprep.subr.mxu1 %v2516_v25  ;;  %v2591_v23 = vld [vmem:[%s7460_s14 + $0x780] sm:$0xff]  ;;  %v2460_v25 = vld [vmem:[%s7460_s14 + $0x368] sm:$0xff] }
 0x447   :  { %2789 = vmatpush1.msra.mxu0 %v2387_v26  ;;  %2860 = vmatpush1.msra.mxu1 %v2515_v27  ;;  %v2588_v26 = vld [vmem:[%s7460_s14 + $0x768] sm:$0xff]  ;;  %v2459_v27 = vld [vmem:[%s7460_s14 + $0x360] sm:$0xff] }
 0x448   :  { %2790 = vmatprep.subr.mxu0 %v2384_v28  ;;  %2861 = vmatprep.subr.mxu1 %v2512_v29  ;;  %v2587_v28 = vld [vmem:[%s7460_s14 + $0x760] sm:$0xff]  ;;  %v2456_v29 = vld [vmem:[%s7460_s14 + $0x348] sm:$0xff] }
 0x449   :  { %2791 = vmatpush1.msra.mxu0 %v2383_v31  ;;  %2862 = vmatpush1.msra.mxu1 %v2511_v32  ;;  %v2584_v31 = vld [vmem:[%s7460_s14 + $0x748] sm:$0xff]  ;;  %v2455_v32 = vld [vmem:[%s7460_s14 + $0x340] sm:$0xff] }
 0x44a   :  { %2792 = vmatprep.subr.mxu0 %v2380_v37  ;;  %2863 = vmatprep.subr.mxu1 %v2508_v3  ;;  %v2583_v37 = vld [vmem:[%s7460_s14 + $0x740] sm:$0xff]  ;;  %v2452_v3 = vld [vmem:[%s7460_s14 + $0x328] sm:$0xff] }
 0x44b   :  { %2793 = vmatpush1.msra.mxu0 %v2379_v9  ;;  %2864 = vmatpush1.msra.mxu1 %v2507_v12  ;;  %v2580_v9 = vld [vmem:[%s7460_s14 + $0x728] sm:$0xff]  ;;  %v2451_v12 = vld [vmem:[%s7460_s14 + $0x320] sm:$0xff] }
 0x44c   :  { %2794 = vmatprep.subr.mxu0 %v2376_v41  ;;  %2865 = vmatprep.subr.mxu1 %v2504_v42  ;;  %v2579_v41 = vld [vmem:[%s7460_s14 + $0x720] sm:$0xff]  ;;  %v2448_v42 = vld [vmem:[%s7460_s14 + $0x308] sm:$0xff] }
 0x44d   :  { %2795 = vmatpush1.msra.mxu0 %v2375_v43  ;;  %2866 = vmatpush1.msra.mxu1 %v2503_v44  ;;  %v2576_v43 = vld [vmem:[%s7460_s14 + $0x708] sm:$0xff]  ;;  %v2447_v44 = vld [vmem:[%s7460_s14 + $0x300] sm:$0xff] }
 0x44e   :  { %2796 = vmatprep.subr.mxu0 %v2372_v45  ;;  %2867 = vmatprep.subr.mxu1 %v2500_v46  ;;  %v2575_v45 = vld [vmem:[%s7460_s14 + $0x700] sm:$0xff]  ;;  %v2444_v46 = vld [vmem:[%s7460_s14 + $0x2e8] sm:$0xff] }
 0x44f   :  { %2797 = vmatpush1.msra.mxu0 %v2371_v47  ;;  %2868 = vmatpush1.msra.mxu1 %v2499_v48  ;;  %v2572_v47 = vld [vmem:[%s7460_s14 + $0x6e8] sm:$0xff]  ;;  %v2443_v48 = vld [vmem:[%s7460_s14 + $0x2e0] sm:$0xff] }
 0x450   :  { %2798 = vmatprep.subr.mxu0 %v2368_v49  ;;  %2869 = vmatprep.subr.mxu1 %v2496_v50  ;;  %v2571_v49 = vld [vmem:[%s7460_s14 + $0x6e0] sm:$0xff]  ;;  %v2440_v50 = vld [vmem:[%s7460_s14 + $0x2c8] sm:$0xff] }
 0x451   :  { %2799 = vmatpush1.msra.mxu0 %v2367_v51  ;;  %2870 = vmatpush1.msra.mxu1 %v2495_v52  ;;  %v2568_v51 = vld [vmem:[%s7460_s14 + $0x6c8] sm:$0xff]  ;;  %v2439_v52 = vld [vmem:[%s7460_s14 + $0x2c0] sm:$0xff] }
 0x452   :  { %2800 = vmatprep.subr.mxu0 %v2364_v53  ;;  %2871 = vmatprep.subr.mxu1 %v2492_v55  ;;  %v2567_v53 = vld [vmem:[%s7460_s14 + $0x6c0] sm:$0xff]  ;;  %v2436_v55 = vld [vmem:[%s7460_s14 + $0x2a8] sm:$0xff] }
 0x453   :  { %2801 = vmatpush1.msra.mxu0 %v2363_v56  ;;  %2872 = vmatpush1.msra.mxu1 %v2491_v57  ;;  %v2564_v56 = vld [vmem:[%s7460_s14 + $0x6a8] sm:$0xff]  ;;  %v2435_v57 = vld [vmem:[%s7460_s14 + $0x2a0] sm:$0xff] }
 0x454   :  { %2802 = vmatprep.subr.mxu0 %v2360_v58  ;;  %2873 = vmatprep.subr.mxu1 %v2488_v59  ;;  %v2563_v58 = vld [vmem:[%s7460_s14 + $0x6a0] sm:$0xff]  ;;  %v2432_v59 = vld [vmem:[%s7460_s14 + $0x288] sm:$0xff] }
 0x455   :  { %2803 = vmatpush1.msra.mxu0 %v2359_v60  ;;  %2874 = vmatpush1.msra.mxu1 %v2487_v61  ;;  %v2560_v60 = vld [vmem:[%s7460_s14 + $0x688] sm:$0xff]  ;;  %v2431_v61 = vld [vmem:[%s7460_s14 + $0x280] sm:$0xff] }
 0x456   :  { %2804 = vmatprep.subr.mxu0 %v2356_v62  ;;  %2875 = vmatprep.subr.mxu1 %v2484_v63  ;;  %v2559_v62 = vld [vmem:[%s7460_s14 + $0x680] sm:$0xff]  ;;  %v2428_v63 = vld [vmem:[%s7460_s14 + $0x268] sm:$0xff] }
 0x457   :  { %2805 = vmatpush1.msra.mxu0 %v2355_v0  ;;  %2876 = vmatpush1.msra.mxu1 %v2483_v38  ;;  %v2556_v0 = vld [vmem:[%s7460_s14 + $0x668] sm:$0xff]  ;;  %v2427_v38 = vld [vmem:[%s7460_s14 + $0x260] sm:$0xff] }
 0x458   :  { %2806 = vmatprep.subr.mxu0 %v2352_v2  ;;  %2877 = vmatprep.subr.mxu1 %v2480_v4  ;;  %v2555_v2 = vld [vmem:[%s7460_s14 + $0x660] sm:$0xff]  ;;  %v2424_v4 = vld [vmem:[%s7460_s14 + $0x248] sm:$0xff] }
 0x459   :  { %2807 = vmatpush1.msra.mxu0 %v2351_v5  ;;  %2878 = vmatpush1.msra.mxu1 %v2479_v40  ;;  %v2552_v5 = vld [vmem:[%s7460_s14 + $0x648] sm:$0xff]  ;;  %v2423_v40 = vld [vmem:[%s7460_s14 + $0x240] sm:$0xff] }
 0x45a   :  { %2808 = vmatprep.subr.mxu0 %v2476_v6  ;;  %2879 = vmatprep.subr.mxu1 %v2604_v7  ;;  %v2551_v6 = vld [vmem:[%s7460_s14 + $0x640] sm:$0xff]  ;;  %v2420_v7 = vld [vmem:[%s7460_s14 + $0x228] sm:$0xff] }
 0x45b   :  { %2809 = vmatpush2.msra.mxu0 %v2475_v8  ;;  %2880 = vmatpush2.msra.mxu1 %v2603_v10  ;;  %v2548_v8 = vld [vmem:[%s7460_s14 + $0x628] sm:$0xff]  ;;  %v2419_v10 = vld [vmem:[%s7460_s14 + $0x220] sm:$0xff] }
 0x45c   :  { %2810 = vmatprep.subr.mxu0 %v2472_v11  ;;  %2881 = vmatprep.subr.mxu1 %v2600_v13  ;;  %v2547_v11 = vld [vmem:[%s7460_s14 + $0x620] sm:$0xff]  ;;  %v2416_v13 = vld [vmem:[%s7460_s14 + $0x208] sm:$0xff] }
 0x45d   :  { %2811 = vmatpush2.msra.mxu0 %v2471_v14  ;;  %2882 = vmatpush2.msra.mxu1 %v2599_v15  ;;  %v2544_v14 = vld [vmem:[%s7460_s14 + $0x608] sm:$0xff]  ;;  %v2415_v15 = vld [vmem:[%s7460_s14 + $0x200] sm:$0xff] }
 0x45e   :  { %2812 = vmatprep.subr.mxu0 %v2468_v16  ;;  %2883 = vmatprep.subr.mxu1 %v2596_v17  ;;  %v2543_v16 = vld [vmem:[%s7460_s14 + $0x600] sm:$0xff]  ;;  %v2668_v17 = vld [vmem:[%s7460_s14 + $0x9e8] sm:$0xff] }
 0x45f   :  { %2813 = vmatpush2.msra.mxu0 %v2467_v18  ;;  %2884 = vmatpush2.msra.mxu1 %v2595_v19  ;;  %v2414_v18 = vld [vmem:[%s7460_s14 + $0x1f8] sm:$0xff]  ;;  %v6539_v19 = vld [vmem:[%s7459_s13] sm:$0x7f] }
 0x460   :  { %2814 = vmatprep.subr.mxu0 %v2464_v20  ;;  %2885 = vmatprep.subr.mxu1 %v2592_v21  ;;  %v2026_v20 = vrot.slane %v6539_v19, %v5038_v1  ;;  %v2034_v21 = vrot.slane %v6539_v19, %v5173_v30 }
 0x461   :  { %2815 = vmatpush2.msra.mxu0 %v2463_v22  ;;  %2886 = vmatpush2.msra.mxu1 %v2591_v23  ;;  %v2030_v22 = vrot.slane %v6539_v19, %v5052_v39  ;;  %v2038_v23 = vrot.slane %v6539_v19, %v5182_v34 }
 0x462   :  { %2816 = vmatprep.subr.mxu0 %v2460_v25  ;;  %2887 = vmatprep.subr.mxu1 %v2588_v26 }
 0x463   :  { %2817 = vmatpush2.msra.mxu0 %v2459_v27  ;;  %2888 = vmatpush2.msra.mxu1 %v2587_v28 }
 0x464   :  { %2818 = vmatprep.subr.mxu0 %v2456_v29  ;;  %2889 = vmatprep.subr.mxu1 %v2584_v31 }
 0x465   :  { %2819 = vmatpush2.msra.mxu0 %v2455_v32  ;;  %2890 = vmatpush2.msra.mxu1 %v2583_v37 }
 0x466   :  { %2820 = vmatprep.subr.mxu0 %v2452_v3  ;;  %2891 = vmatprep.subr.mxu1 %v2580_v9 }
 0x467   :  { %2821 = vmatpush2.msra.mxu0 %v2451_v12  ;;  %2892 = vmatpush2.msra.mxu1 %v2579_v41 }
 0x468   :  { %2822 = vmatprep.subr.mxu0 %v2448_v42  ;;  %2893 = vmatprep.subr.mxu1 %v2576_v43  ;;  %v2667_v42 = vld [vmem:[%s7460_s14 + $0x9e0] sm:$0xff]  ;;  %v2413_v43 = vld [vmem:[%s7460_s14 + $0x1f0] sm:$0xff] }
 0x469   :  { %2823 = vmatpush2.msra.mxu0 %v2447_v44  ;;  %2894 = vmatpush2.msra.mxu1 %v2575_v45  ;;  %v2664_v44 = vld [vmem:[%s7460_s14 + $0x9c8] sm:$0xff]  ;;  %v2410_v45 = vld [vmem:[%s7460_s14 + $0x1d8] sm:$0xff] }
 0x46a   :  { %2824 = vmatprep.subr.mxu0 %v2444_v46  ;;  %2895 = vmatprep.subr.mxu1 %v2572_v47  ;;  %v2663_v46 = vld [vmem:[%s7460_s14 + $0x9c0] sm:$0xff]  ;;  %v2409_v47 = vld [vmem:[%s7460_s14 + $0x1d0] sm:$0xff] }
 0x46b   :  { %2825 = vmatpush2.msra.mxu0 %v2443_v48  ;;  %2896 = vmatpush2.msra.mxu1 %v2571_v49  ;;  %v2660_v48 = vld [vmem:[%s7460_s14 + $0x9a8] sm:$0xff]  ;;  %v2406_v49 = vld [vmem:[%s7460_s14 + $0x1b8] sm:$0xff] }
 0x46c   :  { %2826 = vmatprep.subr.mxu0 %v2440_v50  ;;  %2897 = vmatprep.subr.mxu1 %v2568_v51  ;;  %v2659_v50 = vld [vmem:[%s7460_s14 + $0x9a0] sm:$0xff]  ;;  %v2405_v51 = vld [vmem:[%s7460_s14 + $0x1b0] sm:$0xff] }
 0x46d   :  { %2827 = vmatpush2.msra.mxu0 %v2439_v52  ;;  %2898 = vmatpush2.msra.mxu1 %v2567_v53  ;;  %v2656_v52 = vld [vmem:[%s7460_s14 + $0x988] sm:$0xff]  ;;  %v2402_v53 = vld [vmem:[%s7460_s14 + $0x198] sm:$0xff] }
 0x46e   :  { %2828 = vmatprep.subr.mxu0 %v2436_v55  ;;  %2899 = vmatprep.subr.mxu1 %v2564_v56  ;;  %v2655_v55 = vld [vmem:[%s7460_s14 + $0x980] sm:$0xff]  ;;  %v2401_v56 = vld [vmem:[%s7460_s14 + $0x190] sm:$0xff] }
 0x46f   :  { %2829 = vmatpush2.msra.mxu0 %v2435_v57  ;;  %2900 = vmatpush2.msra.mxu1 %v2563_v58  ;;  %v2652_v57 = vld [vmem:[%s7460_s14 + $0x968] sm:$0xff]  ;;  %v2398_v58 = vld [vmem:[%s7460_s14 + $0x178] sm:$0xff] }
 0x470   :  { %2830 = vmatprep.subr.mxu0 %v2432_v59  ;;  %2901 = vmatprep.subr.mxu1 %v2560_v60  ;;  %v2651_v59 = vld [vmem:[%s7460_s14 + $0x960] sm:$0xff]  ;;  %v2397_v60 = vld [vmem:[%s7460_s14 + $0x170] sm:$0xff] }
 0x471   :  { %2831 = vmatpush2.msra.mxu0 %v2431_v61  ;;  %2902 = vmatpush2.msra.mxu1 %v2559_v62  ;;  %v2648_v61 = vld [vmem:[%s7460_s14 + $0x948] sm:$0xff]  ;;  %v2394_v62 = vld [vmem:[%s7460_s14 + $0x158] sm:$0xff] }
 0x472   :  { %2832 = vmatprep.subr.mxu0 %v2428_v63  ;;  %2903 = vmatprep.subr.mxu1 %v2556_v0  ;;  %v2647_v63 = vld [vmem:[%s7460_s14 + $0x940] sm:$0xff]  ;;  %v2393_v0 = vld [vmem:[%s7460_s14 + $0x150] sm:$0xff] }
 0x473   :  { %2833 = vmatpush2.msra.mxu0 %v2427_v38  ;;  %2904 = vmatpush2.msra.mxu1 %v2555_v2  ;;  %v2644_v38 = vld [vmem:[%s7460_s14 + $0x928] sm:$0xff]  ;;  %v2390_v2 = vld [vmem:[%s7460_s14 + $0x138] sm:$0xff] }
 0x474   :  { %2834 = vmatprep.subr.mxu0 %v2424_v4  ;;  %2905 = vmatprep.subr.mxu1 %v2552_v5  ;;  %v2643_v4 = vld [vmem:[%s7460_s14 + $0x920] sm:$0xff]  ;;  %v2389_v5 = vld [vmem:[%s7460_s14 + $0x130] sm:$0xff] }
 0x475   :  { %2835 = vmatpush2.msra.mxu0 %v2423_v40  ;;  %2906 = vmatpush2.msra.mxu1 %v2551_v6  ;;  %v2640_v40 = vld [vmem:[%s7460_s14 + $0x908] sm:$0xff]  ;;  %v2386_v6 = vld [vmem:[%s7460_s14 + $0x118] sm:$0xff] }
 0x476   :  { %2836 = vmatprep.subr.mxu0 %v2420_v7  ;;  %2907 = vmatprep.subr.mxu1 %v2548_v8  ;;  %v2639_v7 = vld [vmem:[%s7460_s14 + $0x900] sm:$0xff]  ;;  %v2385_v8 = vld [vmem:[%s7460_s14 + $0x110] sm:$0xff] }
 0x477   :  { %2837 = vmatpush2.msra.mxu0 %v2419_v10  ;;  %2908 = vmatpush2.msra.mxu1 %v2547_v11  ;;  %v2636_v10 = vld [vmem:[%s7460_s14 + $0x8e8] sm:$0xff]  ;;  %v2382_v11 = vld [vmem:[%s7460_s14 + $0xf8] sm:$0xff] }
 0x478   :  { %2838 = vmatprep.subr.mxu0 %v2416_v13  ;;  %2909 = vmatprep.subr.mxu1 %v2544_v14  ;;  %v2635_v13 = vld [vmem:[%s7460_s14 + $0x8e0] sm:$0xff]  ;;  %v2381_v14 = vld [vmem:[%s7460_s14 + $0xf0] sm:$0xff] }
 0x479   :  { %2839 = vmatpush2.msra.mxu0 %v2415_v15  ;;  %2910 = vmatpush2.msra.mxu1 %v2543_v16  ;;  %v2632_v15 = vld [vmem:[%s7460_s14 + $0x8c8] sm:$0xff]  ;;  %v2378_v16 = vld [vmem:[%s7460_s14 + $0xd8] sm:$0xff] }
 0x47a   :  { %2918 = vmatprep.subr.mxu0 %v2668_v17  ;;  %3060 = vmatprep.subr.mxu1 %v2414_v18  ;;  %v2631_v17 = vld [vmem:[%s7460_s14 + $0x8c0] sm:$0xff]  ;;  %v2377_v18 = vld [vmem:[%s7460_s14 + $0xd0] sm:$0xff] }
 0x4c6   :  { %v2127_v25 = vpop.f32.mrf.mxu0  ;;  %v2198_v26 = vpop.f32.mrf.mxu1 }
 0x4c7   :  { %v6549_v27 = vadd.f32 %v2127_v25, %v2026_v20  ;;  %v6551_v28 = vadd.f32 %v2198_v26, %v2034_v21  ;;  %v2628_v20 = vld [vmem:[%s7460_s14 + $0x8a8] sm:$0xff]  ;;  %v2374_v21 = vld [vmem:[%s7460_s14 + $0xb8] sm:$0xff] }
 0x4c8   :  { %v2129_v29 = vpop.f32.mrf.mxu0  ;;  %v2200_v31 = vpop.f32.mrf.mxu1  ;;  %v2624_v25 = vld [vmem:[%s7460_s14 + $0x888] sm:$0xff]  ;;  %v2370_v26 = vld [vmem:[%s7460_s14 + $0x98] sm:$0xff] }
 0x4c9   :  { %v2130_v32 = vadd.f32 %v2129_v29, %v2030_v22  ;;  %v6553_v37 = vadd.f32 %v2200_v31, %v2038_v23  ;;  %v2344_v12 = vmax.f32 %v6549_v27, 0.0  ;;  %v2346_v41 = vmax.f32 %v6551_v28, 0.0  ;;  %v2627_v22 = vld [vmem:[%s7460_s14 + $0x8a0] sm:$0xff]  ;;  %v2373_v23 = vld [vmem:[%s7460_s14 + $0xb0] sm:$0xff]  ;;  %v2662_v27 = vld [vmem:[%s7460_s14 + $0x9b8] sm:$0xff] }
 0x4ca   :  { %v2623_v29 = vld [vmem:[%s7460_s14 + $0x880] sm:$0xff]  ;;  %v2369_v31 = vld [vmem:[%s7460_s14 + $0x90] sm:$0xff]  ;;  %v2738_v28 = vld [vmem:[%s7460_s14 + $0xc18] sm:$0xff] }
 0x4cb   :  { %v2345_v3 = vmax.f32 %v2130_v32, 0.0  ;;  %v2347_v9 = vmax.f32 %v6553_v37, 0.0  ;;  %v2620_v32 = vld [vmem:[%s7460_s14 + $0x868] sm:$0xff]  ;;  %v2645_v37 = vld [vmem:[%s7460_s14 + $0x930] sm:$0xff] }
 0x4cd   :  { %2840 = vmatprep.mubr.f32.mxu0 %v2345_v3  ;;  %2911 = vmatprep.mubr.f32.mxu1 %v2347_v9 }
 0x4ce   :  { %2841 = vmatmul.mubr.f32.vlgmr.msra.gmra.mxu0 %v2344_v12  ;;  %2912 = vmatmul.mubr.f32.vlgmr.msra.gmra.mxu1 %v2346_v41 }
 0x4cf   :  { %2919 = vmatpush1.msra.mxu0 %v2667_v42  ;;  %3061 = vmatpush1.msra.mxu1 %v2413_v43  ;;  %v2619_v42 = vld [vmem:[%s7460_s14 + $0x860] sm:$0xff]  ;;  %v2365_v43 = vld [vmem:[%s7460_s14 + $0x70] sm:$0xff] }
 0x4d0   :  { %2920 = vmatprep.subr.mxu0 %v2664_v44  ;;  %3062 = vmatprep.subr.mxu1 %v2410_v45  ;;  %v2616_v44 = vld [vmem:[%s7460_s14 + $0x848] sm:$0xff]  ;;  %v2362_v45 = vld [vmem:[%s7460_s14 + $0x58] sm:$0xff] }
 0x4d1   :  { %3124 = vmatprep.mubr.f32.mxu1 %v2345_v3  ;;  %2921 = vmatpush1.msra.mxu0 %v2663_v46  ;;  %v2366_v3 = vld [vmem:[%s7460_s14 + $0x78] sm:$0xff]  ;;  %v2615_v46 = vld [vmem:[%s7460_s14 + $0x840] sm:$0xff] }
 0x4d2   :  { %3063 = vmatpush1.msra.mxu1 %v2409_v47  ;;  %2922 = vmatprep.subr.mxu0 %v2660_v48  ;;  %v2361_v47 = vld [vmem:[%s7460_s14 + $0x50] sm:$0xff]  ;;  %v2612_v48 = vld [vmem:[%s7460_s14 + $0x828] sm:$0xff] }
 0x4d3   :  { %3064 = vmatprep.subr.mxu1 %v2406_v49  ;;  %2923 = vmatpush1.msra.mxu0 %v2659_v50  ;;  %v2358_v49 = vld [vmem:[%s7460_s14 + $0x38] sm:$0xff]  ;;  %v2611_v50 = vld [vmem:[%s7460_s14 + $0x820] sm:$0xff] }
 0x4d4   :  { %3065 = vmatpush1.msra.mxu1 %v2405_v51  ;;  %2924 = vmatprep.subr.mxu0 %v2656_v52  ;;  %v2357_v51 = vld [vmem:[%s7460_s14 + $0x30] sm:$0xff]  ;;  %v2608_v52 = vld [vmem:[%s7460_s14 + $0x808] sm:$0xff] }
 0x4d5   :  { %3066 = vmatprep.subr.mxu1 %v2402_v53  ;;  %2925 = vmatpush1.msra.mxu0 %v2655_v55  ;;  %v2354_v53 = vld [vmem:[%s7460_s14 + $0x18] sm:$0xff]  ;;  %v2607_v55 = vld [vmem:[%s7460_s14 + $0x800] sm:$0xff] }
 0x4d6   :  { %3067 = vmatpush1.msra.mxu1 %v2401_v56  ;;  %2926 = vmatprep.subr.mxu0 %v2652_v57  ;;  %v2353_v56 = vld [vmem:[%s7460_s14 + $0x10] sm:$0xff]  ;;  %v2732_v57 = vld [vmem:[%s7460_s14 + $0xbe8] sm:$0xff] }
 0x4d7   :  { %3068 = vmatprep.subr.mxu1 %v2398_v58  ;;  %2927 = vmatpush1.msra.mxu0 %v2651_v59  ;;  %v2478_v58 = vld [vmem:[%s7460_s14 + $0x3f8] sm:$0xff]  ;;  %v2731_v59 = vld [vmem:[%s7460_s14 + $0xbe0] sm:$0xff] }
 0x4d8   :  { %3069 = vmatpush1.msra.mxu1 %v2397_v60  ;;  %2928 = vmatprep.subr.mxu0 %v2648_v61  ;;  %v2477_v60 = vld [vmem:[%s7460_s14 + $0x3f0] sm:$0xff]  ;;  %v2728_v61 = vld [vmem:[%s7460_s14 + $0xbc8] sm:$0xff] }
 0x4d9   :  { %3070 = vmatprep.subr.mxu1 %v2394_v62  ;;  %2929 = vmatpush1.msra.mxu0 %v2647_v63  ;;  %v2474_v62 = vld [vmem:[%s7460_s14 + $0x3d8] sm:$0xff]  ;;  %v2727_v63 = vld [vmem:[%s7460_s14 + $0xbc0] sm:$0xff] }
 0x4da   :  { %3071 = vmatpush1.msra.mxu1 %v2393_v0  ;;  %2930 = vmatprep.subr.mxu0 %v2644_v38  ;;  %v2473_v0 = vld [vmem:[%s7460_s14 + $0x3d0] sm:$0xff]  ;;  %v2724_v38 = vld [vmem:[%s7460_s14 + $0xba8] sm:$0xff] }
 0x4db   :  { %3072 = vmatprep.subr.mxu1 %v2390_v2  ;;  %2931 = vmatpush1.msra.mxu0 %v2643_v4  ;;  %v2470_v2 = vld [vmem:[%s7460_s14 + $0x3b8] sm:$0xff]  ;;  %v2723_v4 = vld [vmem:[%s7460_s14 + $0xba0] sm:$0xff] }
 0x4dc   :  { %3073 = vmatpush1.msra.mxu1 %v2389_v5  ;;  %2932 = vmatprep.subr.mxu0 %v2640_v40  ;;  %v2469_v5 = vld [vmem:[%s7460_s14 + $0x3b0] sm:$0xff]  ;;  %v2720_v40 = vld [vmem:[%s7460_s14 + $0xb88] sm:$0xff] }
 0x4dd   :  { %3074 = vmatprep.subr.mxu1 %v2386_v6  ;;  %2933 = vmatpush1.msra.mxu0 %v2639_v7  ;;  %v2466_v6 = vld [vmem:[%s7460_s14 + $0x398] sm:$0xff]  ;;  %v2719_v7 = vld [vmem:[%s7460_s14 + $0xb80] sm:$0xff] }
 0x4de   :  { %3075 = vmatpush1.msra.mxu1 %v2385_v8  ;;  %2934 = vmatprep.subr.mxu0 %v2636_v10  ;;  %v2465_v8 = vld [vmem:[%s7460_s14 + $0x390] sm:$0xff]  ;;  %v2716_v10 = vld [vmem:[%s7460_s14 + $0xb68] sm:$0xff] }
 0x4df   :  { %3076 = vmatprep.subr.mxu1 %v2382_v11  ;;  %2935 = vmatpush1.msra.mxu0 %v2635_v13  ;;  %v2462_v11 = vld [vmem:[%s7460_s14 + $0x378] sm:$0xff]  ;;  %v2715_v13 = vld [vmem:[%s7460_s14 + $0xb60] sm:$0xff] }
 0x4e0   :  { %3077 = vmatpush1.msra.mxu1 %v2381_v14  ;;  %2936 = vmatprep.subr.mxu0 %v2632_v15  ;;  %v2461_v14 = vld [vmem:[%s7460_s14 + $0x370] sm:$0xff]  ;;  %v2712_v15 = vld [vmem:[%s7460_s14 + $0xb48] sm:$0xff] }
 0x4e1   :  { %3078 = vmatprep.subr.mxu1 %v2378_v16  ;;  %2937 = vmatpush1.msra.mxu0 %v2631_v17  ;;  %v2458_v16 = vld [vmem:[%s7460_s14 + $0x358] sm:$0xff]  ;;  %v2711_v17 = vld [vmem:[%s7460_s14 + $0xb40] sm:$0xff] }
 0x4e2   :  { %3079 = vmatpush1.msra.mxu1 %v2377_v18  ;;  %2938 = vmatprep.subr.mxu0 %v2628_v20  ;;  %v2457_v18 = vld [vmem:[%s7460_s14 + $0x350] sm:$0xff]  ;;  %v2708_v20 = vld [vmem:[%s7460_s14 + $0xb28] sm:$0xff] }
 0x4e3   :  { %3080 = vmatprep.subr.mxu1 %v2374_v21  ;;  %2939 = vmatpush1.msra.mxu0 %v2627_v22  ;;  %v2046_v21 = vrot.slane %v6539_v19, %v436_v36  ;;  %v2454_v22 = vld [vmem:[%s7460_s14 + $0x338] sm:$0xff]  ;;  %v2704_v36 = vld [vmem:[%s7460_s14 + $0xb08] sm:$0xff] }
 0x4e4   :  { %3081 = vmatpush1.msra.mxu1 %v2373_v23  ;;  %2940 = vmatprep.subr.mxu0 %v2624_v25  ;;  %v2707_v23 = vld [vmem:[%s7460_s14 + $0xb20] sm:$0xff] }
 0x4e5   :  { %3082 = vmatprep.subr.mxu1 %v2370_v26  ;;  %2941 = vmatpush1.msra.mxu0 %v2623_v29  ;;  %v2453_v29 = vld [vmem:[%s7460_s14 + $0x330] sm:$0xff] }
 0x4e6   :  { %3083 = vmatpush1.msra.mxu1 %v2369_v31  ;;  %2942 = vmatprep.subr.mxu0 %v2620_v32  ;;  %v2450_v31 = vld [vmem:[%s7460_s14 + $0x318] sm:$0xff]  ;;  %v2703_v32 = vld [vmem:[%s7460_s14 + $0xb00] sm:$0xff] }
 0x4e7   :  { %3084 = vmatprep.subr.mxu1 %v2366_v3  ;;  %2943 = vmatpush1.msra.mxu0 %v2619_v42 }
 0x4e8   :  { %3085 = vmatpush1.msra.mxu1 %v2365_v43  ;;  %2944 = vmatprep.subr.mxu0 %v2616_v44  ;;  %v2449_v43 = vld [vmem:[%s7460_s14 + $0x310] sm:$0xff]  ;;  %v2700_v44 = vld [vmem:[%s7460_s14 + $0xae8] sm:$0xff] }
 0x4e9   :  { %3086 = vmatprep.subr.mxu1 %v2362_v45  ;;  %2945 = vmatpush1.msra.mxu0 %v2615_v46  ;;  %v2446_v46 = vld [vmem:[%s7460_s14 + $0x2f8] sm:$0xff] }
 0x4ea   :  { %3087 = vmatpush1.msra.mxu1 %v2361_v47  ;;  %2946 = vmatprep.subr.mxu0 %v2612_v48  ;;  %v2699_v47 = vld [vmem:[%s7460_s14 + $0xae0] sm:$0xff]  ;;  %v2445_v48 = vld [vmem:[%s7460_s14 + $0x2f0] sm:$0xff] }
 0x4eb   :  { %3088 = vmatprep.subr.mxu1 %v2358_v49  ;;  %2947 = vmatpush1.msra.mxu0 %v2611_v50  ;;  %v2696_v50 = vld [vmem:[%s7460_s14 + $0xac8] sm:$0xff] }
 0x4ec   :  { %3089 = vmatpush1.msra.mxu1 %v2357_v51  ;;  %2948 = vmatprep.subr.mxu0 %v2608_v52  ;;  %v2442_v51 = vld [vmem:[%s7460_s14 + $0x2d8] sm:$0xff]  ;;  %v2695_v52 = vld [vmem:[%s7460_s14 + $0xac0] sm:$0xff] }
 0x4ed   :  { %3090 = vmatprep.subr.mxu1 %v2354_v53  ;;  %2949 = vmatpush1.msra.mxu0 %v2607_v55  ;;  %v2441_v53 = vld [vmem:[%s7460_s14 + $0x2d0] sm:$0xff]  ;;  %v2692_v55 = vld [vmem:[%s7460_s14 + $0xaa8] sm:$0xff] }
 0x4ee   :  { %3091 = vmatpush1.msra.mxu1 %v2353_v56  ;;  %2950 = vmatprep.subr.mxu0 %v2732_v57  ;;  %v2438_v56 = vld [vmem:[%s7460_s14 + $0x2b8] sm:$0xff]  ;;  %v2691_v57 = vld [vmem:[%s7460_s14 + $0xaa0] sm:$0xff] }
 0x4ef   :  { %3092 = vmatprep.subr.mxu1 %v2478_v58  ;;  %2951 = vmatpush2.msra.mxu0 %v2731_v59  ;;  %v2437_v58 = vld [vmem:[%s7460_s14 + $0x2b0] sm:$0xff]  ;;  %v2688_v59 = vld [vmem:[%s7460_s14 + $0xa88] sm:$0xff] }
 0x4f0   :  { %3093 = vmatpush2.msra.mxu1 %v2477_v60  ;;  %2952 = vmatprep.subr.mxu0 %v2728_v61  ;;  %v2434_v60 = vld [vmem:[%s7460_s14 + $0x298] sm:$0xff]  ;;  %v2687_v61 = vld [vmem:[%s7460_s14 + $0xa80] sm:$0xff] }
 0x4f1   :  { %3094 = vmatprep.subr.mxu1 %v2474_v62  ;;  %2953 = vmatpush2.msra.mxu0 %v2727_v63  ;;  %v2433_v62 = vld [vmem:[%s7460_s14 + $0x290] sm:$0xff]  ;;  %v2684_v63 = vld [vmem:[%s7460_s14 + $0xa68] sm:$0xff] }
 0x4f2   :  { %3095 = vmatpush2.msra.mxu1 %v2473_v0  ;;  %2954 = vmatprep.subr.mxu0 %v2724_v38  ;;  %v2430_v0 = vld [vmem:[%s7460_s14 + $0x278] sm:$0xff]  ;;  %v2042_v38 = vrot.slane %v6539_v19, %v432_v35 }
 0x4f3   :  { %3096 = vmatprep.subr.mxu1 %v2470_v2  ;;  %2955 = vmatpush2.msra.mxu0 %v2723_v4  ;;  %v2683_v2 = vld [vmem:[%s7460_s14 + $0xa60] sm:$0xff]  ;;  %v2429_v4 = vld [vmem:[%s7460_s14 + $0x270] sm:$0xff]  ;;  %v2426_v35 = vld [vmem:[%s7460_s14 + $0x258] sm:$0xff] }
 0x4f4   :  { %3097 = vmatpush2.msra.mxu1 %v2469_v5  ;;  %2956 = vmatprep.subr.mxu0 %v2720_v40  ;;  %v2680_v5 = vld [vmem:[%s7460_s14 + $0xa48] sm:$0xff]  ;;  %v2679_v40 = vld [vmem:[%s7460_s14 + $0xa40] sm:$0xff] }
 0x4f5   :  { %3098 = vmatprep.subr.mxu1 %v2466_v6  ;;  %2957 = vmatpush2.msra.mxu0 %v2719_v7  ;;  %v2425_v6 = vld [vmem:[%s7460_s14 + $0x250] sm:$0xff]  ;;  %v2676_v7 = vld [vmem:[%s7460_s14 + $0xa28] sm:$0xff] }
 0x4f6   :  { %3099 = vmatpush2.msra.mxu1 %v2465_v8  ;;  %2958 = vmatprep.subr.mxu0 %v2716_v10  ;;  %v2422_v8 = vld [vmem:[%s7460_s14 + $0x238] sm:$0xff] }
 0x4f7   :  { %3100 = vmatprep.subr.mxu1 %v2462_v11  ;;  %2959 = vmatpush2.msra.mxu0 %v2715_v13  ;;  %v2675_v11 = vld [vmem:[%s7460_s14 + $0xa20] sm:$0xff]  ;;  %v2421_v13 = vld [vmem:[%s7460_s14 + $0x230] sm:$0xff] }
 0x4f8   :  { %3101 = vmatpush2.msra.mxu1 %v2461_v14  ;;  %2960 = vmatprep.subr.mxu0 %v2712_v15  ;;  %v2672_v14 = vld [vmem:[%s7460_s14 + $0xa08] sm:$0xff]  ;;  %v2418_v15 = vld [vmem:[%s7460_s14 + $0x218] sm:$0xff] }
 0x4f9   :  { %v6834_v25 = vpop.f32.mrf.mxu0  ;;  %v6836_v26 = vpop.f32.mrf.mxu1  ;;  %3102 = vmatprep.subr.mxu1 %v2458_v16  ;;  %2961 = vmatpush2.msra.mxu0 %v2711_v17  ;;  %v2671_v16 = vld [vmem:[%s7460_s14 + $0xa00] sm:$0xff]  ;;  %v2417_v17 = vld [vmem:[%s7460_s14 + $0x210] sm:$0xff] }
 0x4fa   :  { %3103 = vmatpush2.msra.mxu1 %v2457_v18  ;;  %2962 = vmatprep.subr.mxu0 %v2708_v20  ;;  %v6940_v10 = vadd.f32 %v6834_v25, %v2042_v38  ;;  %v2748_v18 = vld [vmem:[%s7460_s14 + $0xc68] sm:$0xff]  ;;  %v2050_v25 = vrot.slane %v6539_v19, %v440_v54  ;;  %v2665_v54 = vld [vmem:[%s7460_s14 + $0x9d0] sm:$0xff]  ;;  %v2634_v38 = vld [vmem:[%s7460_s14 + $0x8d8] sm:$0xff] }
 0x4fb   :  { %v2271_v3 = vpop.f32.mrf.mxu0  ;;  %v2342_v42 = vpop.f32.mrf.mxu1  ;;  %3104 = vmatprep.subr.mxu1 %v2454_v22  ;;  %2963 = vmatpush2.msra.mxu0 %v2707_v23  ;;  %v2747_v22 = vld [vmem:[%s7460_s14 + $0xc60] sm:$0xff]  ;;  %v2669_v23 = vld [vmem:[%s7460_s14 + $0x9f0] sm:$0xff]  ;;  %v2740_v19 = vld [vmem:[%s7460_s14 + $0xc28] sm:$0xff] }
 0x4fc   :  { %v6856_v45 = vadd.f32 %v2271_v3, %v2046_v21  ;;  %3105 = vmatpush2.msra.mxu1 %v2453_v29  ;;  %2964 = vmatprep.subr.mxu0 %v2704_v36  ;;  %v2348_v20 = vmax.f32 %v6940_v10, 0.0  ;;  %v2670_v21 = vld [vmem:[%s7460_s14 + $0x9f8] sm:$0xff]  ;;  %v2744_v29 = vld [vmem:[%s7460_s14 + $0xc48] sm:$0xff] }
 0x4fd   :  { %3106 = vmatprep.subr.mxu1 %v2450_v31  ;;  %2965 = vmatpush2.msra.mxu0 %v2703_v32  ;;  %v2666_v36 = vld [vmem:[%s7460_s14 + $0x9d8] sm:$0xff]  ;;  %v7004_v31 = vadd.f32 %v6836_v26, %v2050_v25  ;;  %v2661_v32 = vld [vmem:[%s7460_s14 + $0x9b0] sm:$0xff]  ;;  %v2736_v3 = vld [vmem:[%s7460_s14 + $0xc08] sm:$0xff] }
 0x4fe   :  { %v2349_v49 = vmax.f32 %v6856_v45, 0.0  ;;  %3107 = vmatpush2.msra.mxu1 %v2449_v43  ;;  %2966 = vmatprep.subr.mxu0 %v2700_v44  ;;  %v2658_v42 = vld [vmem:[%s7460_s14 + $0x998] sm:$0xff]  ;;  %v2735_v26 = vld [vmem:[%s7460_s14 + $0xc00] sm:$0xff]  ;;  %v2657_v43 = vld [vmem:[%s7460_s14 + $0x990] sm:$0xff] }
 0x4ff   :  { %3108 = vmatprep.subr.mxu1 %v2446_v46  ;;  %2967 = vmatpush2.msra.mxu0 %v2699_v47  ;;  %v2542_v44 = vld [vmem:[%s7460_s14 + $0x5f8] sm:$0xff]  ;;  %v2350_v45 = vmax.f32 %v7004_v31, 0.0  ;;  %v2541_v47 = vld [vmem:[%s7460_s14 + $0x5f0] sm:$0xff] }
 0x500   :  { %2982 = vmatprep.mubr.f32.mxu0 %v2349_v49  ;;  %3109 = vmatpush2.msra.mxu1 %v2445_v48  ;;  %v2654_v46 = vld [vmem:[%s7460_s14 + $0x978] sm:$0xff]  ;;  %v2653_v48 = vld [vmem:[%s7460_s14 + $0x970] sm:$0xff] }
 0x501   :  { %2968 = vmatprep.subr.mxu0 %v2696_v50  ;;  %3110 = vmatprep.subr.mxu1 %v2442_v51  ;;  %v2650_v50 = vld [vmem:[%s7460_s14 + $0x958] sm:$0xff]  ;;  %v2537_v51 = vld [vmem:[%s7460_s14 + $0x5d0] sm:$0xff] }
 0x502   :  { %2969 = vmatpush2.msra.mxu0 %v2695_v52  ;;  %3111 = vmatpush2.msra.mxu1 %v2441_v53  ;;  %v2649_v52 = vld [vmem:[%s7460_s14 + $0x950] sm:$0xff]  ;;  %v2534_v53 = vld [vmem:[%s7460_s14 + $0x5b8] sm:$0xff] }
 0x503   :  { %2970 = vmatprep.subr.mxu0 %v2692_v55  ;;  %3112 = vmatprep.subr.mxu1 %v2438_v56  ;;  %v2646_v55 = vld [vmem:[%s7460_s14 + $0x938] sm:$0xff]  ;;  %v2533_v56 = vld [vmem:[%s7460_s14 + $0x5b0] sm:$0xff] }
 0x504   :  { %2971 = vmatpush2.msra.mxu0 %v2691_v57  ;;  %3113 = vmatpush2.msra.mxu1 %v2437_v58  ;;  %v2642_v57 = vld [vmem:[%s7460_s14 + $0x918] sm:$0xff]  ;;  %v2529_v58 = vld [vmem:[%s7460_s14 + $0x590] sm:$0xff] }
 0x505   :  { %2972 = vmatprep.subr.mxu0 %v2688_v59  ;;  %3114 = vmatprep.subr.mxu1 %v2434_v60  ;;  %v2641_v59 = vld [vmem:[%s7460_s14 + $0x910] sm:$0xff]  ;;  %v2526_v60 = vld [vmem:[%s7460_s14 + $0x578] sm:$0xff] }
 0x506   :  { %2973 = vmatpush2.msra.mxu0 %v2687_v61  ;;  %3115 = vmatpush2.msra.mxu1 %v2433_v62  ;;  %v2638_v61 = vld [vmem:[%s7460_s14 + $0x8f8] sm:$0xff]  ;;  %v2525_v62 = vld [vmem:[%s7460_s14 + $0x570] sm:$0xff] }
 0x507   :  { %2974 = vmatprep.subr.mxu0 %v2684_v63  ;;  %3116 = vmatprep.subr.mxu1 %v2430_v0  ;;  %v2637_v63 = vld [vmem:[%s7460_s14 + $0x8f0] sm:$0xff]  ;;  %v2522_v0 = vld [vmem:[%s7460_s14 + $0x558] sm:$0xff] }
 0x508   :  { %2975 = vmatpush2.msra.mxu0 %v2683_v2  ;;  %3117 = vmatpush2.msra.mxu1 %v2429_v4  ;;  %v2521_v2 = vld [vmem:[%s7460_s14 + $0x550] sm:$0xff]  ;;  %v2502_v25 = vld [vmem:[%s7460_s14 + $0x4b8] sm:$0xff] }
 0x509   :  { %2976 = vmatprep.subr.mxu0 %v2680_v5  ;;  %3118 = vmatprep.subr.mxu1 %v2426_v35  ;;  %v2633_v4 = vld [vmem:[%s7460_s14 + $0x8d0] sm:$0xff]  ;;  %v2518_v5 = vld [vmem:[%s7460_s14 + $0x538] sm:$0xff] }
 0x50a   :  { %2977 = vmatpush2.msra.mxu0 %v2679_v40  ;;  %3119 = vmatpush2.msra.mxu1 %v2425_v6  ;;  %v2630_v35 = vld [vmem:[%s7460_s14 + $0x8b8] sm:$0xff]  ;;  %v2517_v40 = vld [vmem:[%s7460_s14 + $0x530] sm:$0xff] }
 0x50b   :  { %2978 = vmatprep.subr.mxu0 %v2676_v7  ;;  %3120 = vmatprep.subr.mxu1 %v2422_v8  ;;  %v2629_v6 = vld [vmem:[%s7460_s14 + $0x8b0] sm:$0xff]  ;;  %v2514_v7 = vld [vmem:[%s7460_s14 + $0x518] sm:$0xff] }
 0x50c   :  { %2979 = vmatpush2.msra.mxu0 %v2675_v11  ;;  %3121 = vmatpush2.msra.mxu1 %v2421_v13  ;;  %v2626_v8 = vld [vmem:[%s7460_s14 + $0x898] sm:$0xff]  ;;  %v2513_v11 = vld [vmem:[%s7460_s14 + $0x510] sm:$0xff] }
 0x50d   :  { %2980 = vmatprep.subr.mxu0 %v2672_v14  ;;  %3122 = vmatprep.subr.mxu1 %v2418_v15  ;;  %v2625_v13 = vld [vmem:[%s7460_s14 + $0x890] sm:$0xff]  ;;  %v2510_v14 = vld [vmem:[%s7460_s14 + $0x4f8] sm:$0xff] }
 0x50e   :  { %2981 = vmatpush2.msra.mxu0 %v2671_v16  ;;  %3123 = vmatpush2.msra.mxu1 %v2417_v17  ;;  %v2622_v15 = vld [vmem:[%s7460_s14 + $0x878] sm:$0xff]  ;;  %v2509_v16 = vld [vmem:[%s7460_s14 + $0x4f0] sm:$0xff] }
 0x50f   :  { %2983 = vmatmul.mubr.f32.vlgmr.msra.gmra.mxu0 %v2348_v20  ;;  %3013 = vmatprep.subr.mxu0 %v2748_v18  ;;  %v2621_v17 = vld [vmem:[%s7460_s14 + $0x870] sm:$0xff]  ;;  %v2506_v18 = vld [vmem:[%s7460_s14 + $0x4d8] sm:$0xff] }
 0x510   :  { %3125 = vmatmul.mubr.f32.vlgmr.msra.gmra.mxu1 %v2344_v12  ;;  %3202 = vmatprep.subr.mxu1 %v2670_v21  ;;  %v2739_v12 = vld [vmem:[%s7460_s14 + $0xc20] sm:$0xff]  ;;  %v2618_v21 = vld [vmem:[%s7460_s14 + $0x858] sm:$0xff] }
 0x511   :  { %3014 = vmatpush1.msra.mxu0 %v2747_v22  ;;  %3203 = vmatpush1.msra.mxu1 %v2669_v23  ;;  %v2505_v22 = vld [vmem:[%s7460_s14 + $0x4d0] sm:$0xff]  ;;  %v2546_v10 = vld [vmem:[%s7460_s14 + $0x618] sm:$0xff] }
 0x512   :  { %3266 = vmatprep.mubr.f32.mxu1 %v2349_v49  ;;  %3015 = vmatprep.subr.mxu0 %v2744_v29  ;;  %v2538_v49 = vld [vmem:[%s7460_s14 + $0x5d8] sm:$0xff]  ;;  %v2617_v23 = vld [vmem:[%s7460_s14 + $0x850] sm:$0xff] }
 0x513   :  { %3204 = vmatprep.subr.mxu1 %v2666_v36  ;;  %3016 = vmatpush1.msra.mxu0 %v2743_v33  ;;  %v2614_v29 = vld [vmem:[%s7460_s14 + $0x838] sm:$0xff]  ;;  %v2501_v36 = vld [vmem:[%s7460_s14 + $0x4b0] sm:$0xff] }
 0x514   :  { %3205 = vmatpush1.msra.mxu1 %v2665_v54  ;;  %3017 = vmatprep.subr.mxu0 %v2740_v19  ;;  %v2613_v33 = vld [vmem:[%s7460_s14 + $0x830] sm:$0xff]  ;;  %v2498_v54 = vld [vmem:[%s7460_s14 + $0x498] sm:$0xff] }
 0x515   :  { %3206 = vmatprep.subr.mxu1 %v2662_v27  ;;  %3018 = vmatpush1.msra.mxu0 %v2739_v12  ;;  %v2610_v19 = vld [vmem:[%s7460_s14 + $0x818] sm:$0xff]  ;;  %v2497_v27 = vld [vmem:[%s7460_s14 + $0x490] sm:$0xff] }
 0x516   :  { %3207 = vmatpush1.msra.mxu1 %v2661_v32  ;;  %3019 = vmatprep.subr.mxu0 %v2736_v3  ;;  %v2609_v12 = vld [vmem:[%s7460_s14 + $0x810] sm:$0xff]  ;;  %v2494_v32 = vld [vmem:[%s7460_s14 + $0x478] sm:$0xff] }
 0x517   :  { %3208 = vmatprep.subr.mxu1 %v2658_v42  ;;  %3020 = vmatpush1.msra.mxu0 %v2735_v26  ;;  %v2734_v3 = vld [vmem:[%s7460_s14 + $0xbf8] sm:$0xff]  ;;  %v2493_v42 = vld [vmem:[%s7460_s14 + $0x470] sm:$0xff] }
 0x518   :  { %3053 = vmatprep.mubr.f32.mxu0 %v3486_v24  ;;  %3209 = vmatpush1.msra.mxu1 %v2657_v43  ;;  %v2733_v26 = vld [vmem:[%s7460_s14 + $0xbf0] sm:$0xff]  ;;  %v2490_v43 = vld [vmem:[%s7460_s14 + $0x458] sm:$0xff] }
 0x519   :  { %3398 = vmatmul.mubr.msk.f32.vlgmr.msra.gmra.mxu0 %vm1238_vm1, %v2350_v45  ;;  %3131 = vmatprep.subr.mxu0 %v2542_v44  ;;  %v2730_v44 = vld [vmem:[%s7460_s14 + $0xbd8] sm:$0xff] }
 0x51a   :  { %3210 = vmatprep.subr.mxu1 %v2654_v46  ;;  %3132 = vmatpush1.msra.mxu0 %v2541_v47  ;;  %v2489_v46 = vld [vmem:[%s7460_s14 + $0x450] sm:$0xff] }
 0x51b   :  { %3195 = vmatprep.mubr.f32.mxu0 %v2347_v9  ;;  %3211 = vmatpush1.msra.mxu1 %v2653_v48  ;;  %v2530_v9 = vld [vmem:[%s7460_s14 + $0x598] sm:$0xff]  ;;  %v2729_v47 = vld [vmem:[%s7460_s14 + $0xbd0] sm:$0xff] }
 0x51c   :  { %3133 = vmatprep.subr.mxu0 %v2538_v49  ;;  %3212 = vmatprep.subr.mxu1 %v2650_v50  ;;  %v2486_v48 = vld [vmem:[%s7460_s14 + $0x438] sm:$0xff]  ;;  %v2485_v50 = vld [vmem:[%s7460_s14 + $0x430] sm:$0xff] }
 0x51d   :  { %3134 = vmatpush1.msra.mxu0 %v2537_v51  ;;  %3213 = vmatpush1.msra.mxu1 %v2649_v52  ;;  %v2726_v49 = vld [vmem:[%s7460_s14 + $0xbb8] sm:$0xff]  ;;  %v2725_v51 = vld [vmem:[%s7460_s14 + $0xbb0] sm:$0xff] }
 0x51e   :  { %3135 = vmatprep.subr.mxu0 %v2534_v53  ;;  %3214 = vmatprep.subr.mxu1 %v2646_v55  ;;  %v2482_v52 = vld [vmem:[%s7460_s14 + $0x418] sm:$0xff]  ;;  %v2481_v55 = vld [vmem:[%s7460_s14 + $0x410] sm:$0xff] }
 0x51f   :  { %3136 = vmatpush1.msra.mxu0 %v2533_v56  ;;  %3215 = vmatpush1.msra.mxu1 %v2645_v37  ;;  %v2722_v53 = vld [vmem:[%s7460_s14 + $0xb98] sm:$0xff]  ;;  %v2721_v56 = vld [vmem:[%s7460_s14 + $0xb90] sm:$0xff] }
 0x520   :  { %3137 = vmatprep.subr.mxu0 %v2530_v9  ;;  %3216 = vmatprep.subr.mxu1 %v2642_v57  ;;  %v2606_v37 = vld [vmem:[%s7460_s14 + $0x7f8] sm:$0xff]  ;;  %v2605_v57 = vld [vmem:[%s7460_s14 + $0x7f0] sm:$0xff] }
 0x521   :  { %3138 = vmatpush1.msra.mxu0 %v2529_v58  ;;  %3217 = vmatpush1.msra.mxu1 %v2641_v59  ;;  %v2718_v9 = vld [vmem:[%s7460_s14 + $0xb78] sm:$0xff]  ;;  %v2717_v58 = vld [vmem:[%s7460_s14 + $0xb70] sm:$0xff] }
 0x522   :  { %3139 = vmatprep.subr.mxu0 %v2526_v60  ;;  %3218 = vmatprep.subr.mxu1 %v2638_v61  ;;  %v2602_v59 = vld [vmem:[%s7460_s14 + $0x7d8] sm:$0xff]  ;;  %v2601_v61 = vld [vmem:[%s7460_s14 + $0x7d0] sm:$0xff] }
 0x523   :  { %3140 = vmatpush1.msra.mxu0 %v2525_v62  ;;  %3219 = vmatpush1.msra.mxu1 %v2637_v63  ;;  %v2714_v60 = vld [vmem:[%s7460_s14 + $0xb58] sm:$0xff]  ;;  %v2713_v62 = vld [vmem:[%s7460_s14 + $0xb50] sm:$0xff] }
 0x524   :  { %3141 = vmatprep.subr.mxu0 %v2522_v0  ;;  %3220 = vmatprep.subr.mxu1 %v2634_v38  ;;  %v2598_v63 = vld [vmem:[%s7460_s14 + $0x7b8] sm:$0xff]  ;;  %v2597_v38 = vld [vmem:[%s7460_s14 + $0x7b0] sm:$0xff] }
 0x525   :  { %3142 = vmatpush1.msra.mxu0 %v2521_v2  ;;  %3221 = vmatpush1.msra.mxu1 %v2633_v4  ;;  %v2710_v0 = vld [vmem:[%s7460_s14 + $0xb38] sm:$0xff]  ;;  %v2709_v2 = vld [vmem:[%s7460_s14 + $0xb30] sm:$0xff] }
 0x526   :  { %3143 = vmatprep.subr.mxu0 %v2518_v5  ;;  %3222 = vmatprep.subr.mxu1 %v2630_v35  ;;  %v2594_v4 = vld [vmem:[%s7460_s14 + $0x798] sm:$0xff]  ;;  %v2593_v35 = vld [vmem:[%s7460_s14 + $0x790] sm:$0xff] }
 0x527   :  { %3144 = vmatpush1.msra.mxu0 %v2517_v40  ;;  %3223 = vmatpush1.msra.mxu1 %v2629_v6  ;;  %v2706_v5 = vld [vmem:[%s7460_s14 + $0xb18] sm:$0xff]  ;;  %v2705_v40 = vld [vmem:[%s7460_s14 + $0xb10] sm:$0xff] }
 0x528   :  { %3145 = vmatprep.subr.mxu0 %v2514_v7  ;;  %3224 = vmatprep.subr.mxu1 %v2626_v8  ;;  %v2590_v6 = vld [vmem:[%s7460_s14 + $0x778] sm:$0xff]  ;;  %v2589_v8 = vld [vmem:[%s7460_s14 + $0x770] sm:$0xff] }
 0x529   :  { %3146 = vmatpush1.msra.mxu0 %v2513_v11  ;;  %3225 = vmatpush1.msra.mxu1 %v2625_v13  ;;  %v2702_v7 = vld [vmem:[%s7460_s14 + $0xaf8] sm:$0xff]  ;;  %v2701_v11 = vld [vmem:[%s7460_s14 + $0xaf0] sm:$0xff] }
 0x52a   :  { %3147 = vmatprep.subr.mxu0 %v2510_v14  ;;  %3226 = vmatprep.subr.mxu1 %v2622_v15  ;;  %v2586_v13 = vld [vmem:[%s7460_s14 + $0x758] sm:$0xff]  ;;  %v2585_v15 = vld [vmem:[%s7460_s14 + $0x750] sm:$0xff] }
 0x52b   :  { %3148 = vmatpush1.msra.mxu0 %v2509_v16  ;;  %3227 = vmatpush1.msra.mxu1 %v2621_v17  ;;  %v2698_v14 = vld [vmem:[%s7460_s14 + $0xad8] sm:$0xff]  ;;  %v2697_v16 = vld [vmem:[%s7460_s14 + $0xad0] sm:$0xff] }
 0x52c   :  { %3149 = vmatprep.subr.mxu0 %v2506_v18  ;;  %3228 = vmatprep.subr.mxu1 %v2618_v21  ;;  %v2582_v17 = vld [vmem:[%s7460_s14 + $0x738] sm:$0xff]  ;;  %v2581_v21 = vld [vmem:[%s7460_s14 + $0x730] sm:$0xff] }
 0x52d   :  { %3150 = vmatpush1.msra.mxu0 %v2505_v22  ;;  %3229 = vmatpush1.msra.mxu1 %v2617_v23  ;;  %v2694_v18 = vld [vmem:[%s7460_s14 + $0xab8] sm:$0xff]  ;;  %v2693_v22 = vld [vmem:[%s7460_s14 + $0xab0] sm:$0xff] }
 0x52e   :  { %3151 = vmatprep.subr.mxu0 %v2502_v25  ;;  %3230 = vmatprep.subr.mxu1 %v2614_v29  ;;  %v2578_v23 = vld [vmem:[%s7460_s14 + $0x718] sm:$0xff]  ;;  %v2577_v29 = vld [vmem:[%s7460_s14 + $0x710] sm:$0xff] }
 0x52f   :  { %3152 = vmatpush1.msra.mxu0 %v2501_v36  ;;  %3231 = vmatpush1.msra.mxu1 %v2613_v33  ;;  %v2690_v25 = vld [vmem:[%s7460_s14 + $0xa98] sm:$0xff]  ;;  %v2689_v36 = vld [vmem:[%s7460_s14 + $0xa90] sm:$0xff] }
 0x530   :  { %3153 = vmatprep.subr.mxu0 %v2498_v54  ;;  %3232 = vmatprep.subr.mxu1 %v2610_v19  ;;  %v2574_v33 = vld [vmem:[%s7460_s14 + $0x6f8] sm:$0xff]  ;;  %v2573_v19 = vld [vmem:[%s7460_s14 + $0x6f0] sm:$0xff] }
 0x531   :  { %3154 = vmatpush1.msra.mxu0 %v2497_v27  ;;  %3233 = vmatpush1.msra.mxu1 %v2609_v12  ;;  %v2686_v54 = vld [vmem:[%s7460_s14 + $0xa78] sm:$0xff]  ;;  %v2685_v27 = vld [vmem:[%s7460_s14 + $0xa70] sm:$0xff] }
 0x532   :  { %3155 = vmatprep.subr.mxu0 %v2494_v32  ;;  %3234 = vmatprep.subr.mxu1 %v2734_v3  ;;  %v2570_v12 = vld [vmem:[%s7460_s14 + $0x6d8] sm:$0xff]  ;;  %v2569_v3 = vld [vmem:[%s7460_s14 + $0x6d0] sm:$0xff] }
 0x533   :  { %3156 = vmatpush1.msra.mxu0 %v2493_v42  ;;  %3235 = vmatpush2.msra.mxu1 %v2733_v26  ;;  %v2682_v32 = vld [vmem:[%s7460_s14 + $0xa58] sm:$0xff]  ;;  %v2681_v42 = vld [vmem:[%s7460_s14 + $0xa50] sm:$0xff] }
 0x534   :  { %3157 = vmatprep.subr.mxu0 %v2490_v43  ;;  %3236 = vmatprep.subr.mxu1 %v2730_v44  ;;  %v2566_v26 = vld [vmem:[%s7460_s14 + $0x6b8] sm:$0xff]  ;;  %v2565_v44 = vld [vmem:[%s7460_s14 + $0x6b0] sm:$0xff] }
 0x535   :  { %3158 = vmatpush1.msra.mxu0 %v2489_v46  ;;  %3237 = vmatpush2.msra.mxu1 %v2729_v47  ;;  %v2678_v43 = vld [vmem:[%s7460_s14 + $0xa38] sm:$0xff]  ;;  %v2677_v46 = vld [vmem:[%s7460_s14 + $0xa30] sm:$0xff] }
 0x536   :  { %3159 = vmatprep.subr.mxu0 %v2486_v48  ;;  %3238 = vmatprep.subr.mxu1 %v2726_v49  ;;  %v2562_v47 = vld [vmem:[%s7460_s14 + $0x698] sm:$0xff]  ;;  %v2561_v49 = vld [vmem:[%s7460_s14 + $0x690] sm:$0xff] }
 0x537   :  { %3160 = vmatpush1.msra.mxu0 %v2485_v50  ;;  %3239 = vmatpush2.msra.mxu1 %v2725_v51  ;;  %v2674_v48 = vld [vmem:[%s7460_s14 + $0xa18] sm:$0xff]  ;;  %v2673_v50 = vld [vmem:[%s7460_s14 + $0xa10] sm:$0xff] }
 0x538   :  { %3161 = vmatprep.subr.mxu0 %v2482_v52  ;;  %3240 = vmatprep.subr.mxu1 %v2722_v53  ;;  %v2558_v51 = vld [vmem:[%s7460_s14 + $0x678] sm:$0xff]  ;;  %v2557_v52 = vld [vmem:[%s7460_s14 + $0x670] sm:$0xff] }
 0x539   :  { %3162 = vmatpush1.msra.mxu0 %v2481_v55  ;;  %3241 = vmatpush2.msra.mxu1 %v2721_v56  ;;  %v2554_v53 = vld [vmem:[%s7460_s14 + $0x658] sm:$0xff]  ;;  %v2553_v55 = vld [vmem:[%s7460_s14 + $0x650] sm:$0xff] }
 0x53a   :  { %3163 = vmatprep.subr.mxu0 %v2606_v37  ;;  %3242 = vmatprep.subr.mxu1 %v2718_v9  ;;  %v2550_v56 = vld [vmem:[%s7460_s14 + $0x638] sm:$0xff]  ;;  %v2549_v37 = vld [vmem:[%s7460_s14 + $0x630] sm:$0xff] }
 0x53b   :  { %3164 = vmatpush2.msra.mxu0 %v2605_v57  ;;  %3243 = vmatpush2.msra.mxu1 %v2717_v58  ;;  %v2750_v9 = vld [vmem:[%s7460_s14 + $0xc78] sm:$0xff]  ;;  %v2749_v57 = vld [vmem:[%s7460_s14 + $0xc70] sm:$0xff] }
 0x53c   :  { %3165 = vmatprep.subr.mxu0 %v2602_v59  ;;  %3244 = vmatprep.subr.mxu1 %v2714_v60  ;;  %v2746_v58 = vld [vmem:[%s7460_s14 + $0xc58] sm:$0xff]  ;;  %v2745_v59 = vld [vmem:[%s7460_s14 + $0xc50] sm:$0xff] }
 0x53d   :  { %3166 = vmatpush2.msra.mxu0 %v2601_v61  ;;  %3245 = vmatpush2.msra.mxu1 %v2713_v62  ;;  %v2742_v60 = vld [vmem:[%s7460_s14 + $0xc38] sm:$0xff]  ;;  %v2741_v61 = vld [vmem:[%s7460_s14 + $0xc30] sm:$0xff] }
 0x53e   :  { %3167 = vmatprep.subr.mxu0 %v2598_v63  ;;  %3246 = vmatprep.subr.mxu1 %v2710_v0 }
 0x53f   :  { %3168 = vmatpush2.msra.mxu0 %v2597_v38  ;;  %3247 = vmatpush2.msra.mxu1 %v2709_v2 }
 0x540   :  { %3169 = vmatprep.subr.mxu0 %v2594_v4  ;;  %3248 = vmatprep.subr.mxu1 %v2706_v5 }
 0x541   :  { %3170 = vmatpush2.msra.mxu0 %v2593_v35  ;;  %3249 = vmatpush2.msra.mxu1 %v2705_v40 }
 0x542   :  { %3171 = vmatprep.subr.mxu0 %v2590_v6  ;;  %3250 = vmatprep.subr.mxu1 %v2702_v7 }
 0x543   :  { %3172 = vmatpush2.msra.mxu0 %v2589_v8  ;;  %3251 = vmatpush2.msra.mxu1 %v2701_v11 }
 0x544   :  { %3173 = vmatprep.subr.mxu0 %v2586_v13  ;;  %3252 = vmatprep.subr.mxu1 %v2698_v14 }
 0x545   :  { %3174 = vmatpush2.msra.mxu0 %v2585_v15  ;;  %3253 = vmatpush2.msra.mxu1 %v2697_v16 }
 0x546   :  { %3175 = vmatprep.subr.mxu0 %v2582_v17  ;;  %3254 = vmatprep.subr.mxu1 %v2694_v18 }
 0x547   :  { %3176 = vmatpush2.msra.mxu0 %v2581_v21  ;;  %3255 = vmatpush2.msra.mxu1 %v2693_v22 }
 0x548   :  { %3177 = vmatprep.subr.mxu0 %v2578_v23  ;;  %3256 = vmatprep.subr.mxu1 %v2690_v25 }
 0x549   :  { %3178 = vmatpush2.msra.mxu0 %v2577_v29  ;;  %3257 = vmatpush2.msra.mxu1 %v2689_v36 }
 0x54a   :  { %3179 = vmatprep.subr.mxu0 %v2574_v33  ;;  %3258 = vmatprep.subr.mxu1 %v2686_v54 }
 0x54b   :  { %3180 = vmatpush2.msra.mxu0 %v2573_v19  ;;  %3259 = vmatpush2.msra.mxu1 %v2685_v27 }
 0x54c   :  { %3181 = vmatprep.subr.mxu0 %v2570_v12  ;;  %3260 = vmatprep.subr.mxu1 %v2682_v32 }
 0x54d   :  { %3182 = vmatpush2.msra.mxu0 %v2569_v3  ;;  %3261 = vmatpush2.msra.mxu1 %v2681_v42 }
 0x54e   :  { %3183 = vmatprep.subr.mxu0 %v2566_v26  ;;  %3262 = vmatprep.subr.mxu1 %v2678_v43 }
 0x54f   :  { %3184 = vmatpush2.msra.mxu0 %v2565_v44  ;;  %3263 = vmatpush2.msra.mxu1 %v2677_v46 }
 0x550   :  { %3185 = vmatprep.subr.mxu0 %v2562_v47  ;;  %3264 = vmatprep.subr.mxu1 %v2674_v48 }
 0x551   :  { %3186 = vmatpush2.msra.mxu0 %v2561_v49  ;;  %3265 = vmatpush2.msra.mxu1 %v2673_v50 }
 0x552   :  { %3187 = vmatprep.subr.mxu0 %v2558_v51  ;;  %3267 = vmatmul.mubr.f32.vlgmr.msra.gmra.mxu1 %v2348_v20  ;;  %v2545_v20 = vld [vmem:[%s7460_s14 + $0x610] sm:$0xff] }
 0x553   :  { %3188 = vmatpush2.msra.mxu0 %v2557_v52 }
 0x554   :  { %3189 = vmatprep.subr.mxu0 %v2554_v53 }
 0x555   :  { %3190 = vmatpush2.msra.mxu0 %v2553_v55 }
 0x556   :  { %3191 = vmatprep.subr.mxu0 %v2550_v56 }
 0x557   :  { %3192 = vmatpush2.msra.mxu0 %v2549_v37 }
 0x558   :  { %3193 = vmatprep.subr.mxu0 %v2546_v10 }
 0x559   :  { %3194 = vmatpush2.msra.mxu0 %v2545_v20 }
 0x55a   :  { %3196 = vmatmul.mubr.f32.vlgmr.msra.gmra.mxu0 %v2346_v41  ;;  %3297 = vmatprep.subr.mxu0 %v2750_v9  ;;  %v2737_v41 = vld [vmem:[%s7460_s14 + $0xc10] sm:$0xff] }
 0x55b   :  { %3298 = vmatpush1.msra.mxu0 %v2749_v57  ;;  %3337 = vmatprep.mubr.f32.mxu0 %v3486_v24 }
 0x55c   :  { %3299 = vmatprep.subr.mxu0 %v2746_v58 }
 0x55d   :  { %3300 = vmatpush1.msra.mxu0 %v2745_v59 }
 0x55e   :  { %3301 = vmatprep.subr.mxu0 %v2742_v60 }
 0x55f   :  { %3302 = vmatpush1.msra.mxu0 %v2741_v61 }
 0x560   :  { %3303 = vmatprep.subr.mxu0 %v2738_v28 }
 0x561   :  { %3304 = vmatpush1.msra.mxu0 %v2737_v41 }
 0x562   :  { %3399 = vmatmul.mubr.msk.f32.vlgmr.msra.gmra.mxu0 %vm1238_vm1, %v2350_v45 }
 0x563   :  { %3453 = shalt.err (!%p3450_p4)
}
 0x564   :  { %3361 = dma.vmem_to_hbm [thread:$0]  %s3359_s3, 128, %s7463_s17, [#allocation3]  }
 0x565   :  { %s3462_s13 = scalar_lea.vmem %s3369_s19, 128  ;;  %p3467_p6 = scmp.lt.s32.totalorder %s3369_s19, %s3369_s19 }
 0x566   :  { %p3463_p5 = scmp.ne.s32.totalorder %s3369_s19, %s3462_s13  ;;  %p3468_p7 = scmp.lt.s32.totalorder %s3462_s13, %s3462_s13 }
 0x568   :  { %p3469_p8 = por %p3468_p7, %p3467_p6 }
 0x56a   :  { %p3470_p9 = pnand %p3469_p8, %p3463_p5 }
 0x56c   :  { %3473 = shalt.err (!%p3470_p9)
}
 0x56d   :  { %3371 = dma.vmem_to_hbm [thread:$0]  %s3369_s19, 128, %s7464_s18, [#allocation5]   ;;  %v2751_v24 = vld [vmem:[%s7461_s15] sm:$0xf] }
 0x56e   :  { %v2756_v45 = vrot.slane %v2751_v24, %v5038_v1  ;;  %v2760_v62 = vrot.slane %v2751_v24, %v5052_v39  ;;  %v2764_v15 = vrot.slane %v2751_v24, %v5173_v30  ;;  %v2768_v16 = vrot.slane %v2751_v24, %v5182_v34 }
 0x58e   :  { %v2842_v31 = vpop.f32.mrf.mxu0  ;;  %v2913_v38 = vpop.f32.mrf.mxu1 }
 0x58f   :  { %v2843_v0 = vadd.f32 %v2842_v31, %v2756_v45 }
 0x590   :  { %v2844_v63 = vpop.f32.mrf.mxu0  ;;  %v2915_v35 = vpop.f32.mrf.mxu1 }
 0x591   :  { %v2845_v4 = vadd.f32 %v2844_v63, %v2760_v62  ;;  %v2914_v5 = vadd.f32 %v2913_v38, %v2843_v0 }
 0x593   :  { %v2916_v6 = vadd.f32 %v2915_v35, %v2845_v4 }
 0x5cf   :  { %v2984_v2 = vpop.f32.mrf.mxu0 }
 0x5d0   :  { %v2985_v7 = vadd.f32 %v2984_v2, %v2914_v5  ;;  %v3126_v39 = vpop.f32.mrf.mxu1 }
 0x5d1   :  { %v2986_v40 = vpop.f32.mrf.mxu0  ;;  %v3127_v21 = vadd.f32 %v3126_v39, %v2764_v15 }
 0x5d2   :  { %v2987_v11 = vadd.f32 %v2986_v40, %v2916_v6  ;;  %v3128_v17 = vpop.f32.mrf.mxu1 }
 0x5d3   :  { %v3129_v23 = vadd.f32 %v3128_v17, %v2768_v16 }
 0x5d9   :  { %v3055_v8 = vpop.f32.mrf.mxu0 }
 0x5da   :  { %v3056_v13 = vadd.f32 %v3055_v8, %v2985_v7 }
 0x5db   :  { %v3057_v14 = vpop.f32.mrf.mxu0 }
 0x5dc   :  { %3344 = vst [vmem:[%s7462_s16] sm:$0xff] %v3056_v13  ;;  %v3058_v1 = vadd.f32 %v3057_v14, %v2987_v11 }
 0x5de   :  { %3345 = vst [vmem:[%s7462_s16 + $0x8] sm:$0xff] %v3058_v1 }
 0x612   :  { %v3268_v29 = vpop.f32.mrf.mxu1 }
 0x614   :  { %v3270_v54 = vpop.f32.mrf.mxu1 }
 0x61a   :  { %v3197_v18 = vpop.f32.mrf.mxu0 }
 0x61b   :  { %v3198_v25 = vadd.f32 %v3197_v18, %v3127_v21 }
 0x61c   :  { %v3199_v22 = vpop.f32.mrf.mxu0 }
 0x61d   :  { %v3200_v36 = vadd.f32 %v3199_v22, %v3129_v23  ;;  %v3269_v33 = vadd.f32 %v3268_v29, %v3198_v25 }
 0x61f   :  { %v3271_v12 = vadd.f32 %v3270_v54, %v3200_v36 }
 0x622   :  { %v3339_v19 = vpop.f32.mrf.mxu0 }
 0x623   :  { %v3340_v27 = vadd.f32 %v3339_v19, %v3269_v33 }
 0x624   :  { %v3341_v32 = vpop.f32.mrf.mxu0 }
 0x625   :  { %3346 = vst [vmem:[%s7462_s16 + $0x10] sm:$0xff] %v3340_v27  ;;  %v3342_v30 = vadd.f32 %v3341_v32, %v3271_v12 }
 0x627   :  { %3347 = vst.msk [vmem:[%s7462_s16 + $0x18] sm:$0xff] %vm449_vm0, %v3342_v30 }
 0x628   :  { %3482 = dma.done.wait [#allocation3], 128  }
 0x629   :  { %3483 = vsyncadd [#allocation3], 4294967168 }
 0x62a   :  { %3484 = dma.done.wait [#allocation5], 128  }
 0x62b   :  { %3485 = vsyncadd [#allocation5], 4294967168 }
 0x62c   :  { %3380 = vsyncpa [#allocation3], 1 }
 0x62d   :  { %3381 = vsyncpa [#allocation5], 1 }

</bundles_post_ra>
